<compile_context>
chip_gen: v7x
topology: tpu7x:2x2x1
jax: 0.10.0
libtpu: 0.0.40
codegen_flags: <defaults>
</compile_context>

<pallas_src>
import functools

import jax
import jax.numpy as jnp
import numpy as np
from jax.experimental import pallas as pl
from jax.experimental.pallas import tpu as pltpu


# ----------------------------------------------------------------------------
# Fused Pallas kernel: BiLSTM1 -> Linear1 -> BiLSTM2 -> Linear2
# ----------------------------------------------------------------------------
def _lstm_cell(pre_g, h, c, wh, nh):
    """One LSTM cell step; pre_g already holds x@Wx + b (PyTorch order i,f,g,o)."""
    g = pre_g + jnp.dot(h, wh, preferred_element_type=jnp.float32)   # (B, 4*nh)
    sig = jax.nn.sigmoid(g)     # full-vreg sigmoid (EUP slot)
    th = jnp.tanh(g)            # full-vreg tanh
    i = sig[:, 0 * nh:1 * nh]
    f = sig[:, 1 * nh:2 * nh]
    gg = th[:, 2 * nh:3 * nh]
    o = sig[:, 3 * nh:4 * nh]
    c_new = f * c + i * gg
    h_new = o * jnp.tanh(c_new)
    return h_new, c_new


def rnn_fused_kernel(x_ref, wx1_ref, wh1f_ref, wh1r_ref, b1_ref,
                     e1w_ref, e1b_ref,
                     wx2_ref, wh2f_ref, wh2r_ref, b2_ref,
                     e2w_ref, e2b_ref,
                     out_ref,
                     pre1_scr, y1_scr, pre2_scr, y2_scr,
                     *, T, B, NH):
    f32 = jnp.float32

    def bidir_layer(pre_scr, whf, whr, y_scr):
        # pre_scr: (T*B, 8*NH); lanes [0:4NH] = fwd pre-act, [4NH:8NH] = rev.
        hf = jnp.zeros((B, NH), f32)
        cf = jnp.zeros((B, NH), f32)
        hr = jnp.zeros((B, NH), f32)
        cr = jnp.zeros((B, NH), f32)
        for k in range(T):                      # fully unrolled (T is small)
            tf = k                              # forward time index
            tr = T - 1 - k                      # reverse time index
            pre_f = pre_scr[pl.ds(tf * B, B), pl.ds(0, 4 * NH)]
            pre_r = pre_scr[pl.ds(tr * B, B), pl.ds(4 * NH, 4 * NH)]
            hf, cf = _lstm_cell(pre_f, hf, cf, whf, NH)
            hr, cr = _lstm_cell(pre_r, hr, cr, whr, NH)
            y_scr[pl.ds(tf * B, B), pl.ds(0, NH)] = hf
            y_scr[pl.ds(tr * B, B), pl.ds(NH, NH)] = hr
        return y_scr[...]                       # (T*B, 2*NH)

    # ---- layer 1: hoisted input projection (one MXU matmul, both directions) --
    pre1_scr[...] = (jnp.dot(x_ref[...], wx1_ref[...],
                             preferred_element_type=f32) + b1_ref[...])
    y1 = bidir_layer(pre1_scr, wh1f_ref[...], wh1r_ref[...], y1_scr)

    # ---- embedding1 (intermediate stays in VMEM) ------------------------------
    z = jnp.dot(y1, e1w_ref[...], preferred_element_type=f32) + e1b_ref[...]

    # ---- layer 2 --------------------------------------------------------------
    pre2_scr[...] = (jnp.dot(z, wx2_ref[...],
                             preferred_element_type=f32) + b2_ref[...])
    y2 = bidir_layer(pre2_scr, wh2f_ref[...], wh2r_ref[...], y2_scr)

    # ---- embedding2 into a lane-dense (128-padded) output tile ---------------
    out_ref[...] = (jnp.dot(y2, e2w_ref[...], preferred_element_type=f32)
                    + e2b_ref[...]).astype(out_ref.dtype)


# ----------------------------------------------------------------------------
# Wrapper
# ----------------------------------------------------------------------------
def rnn_forward(x, params):
    T, B, D = x.shape
    p1, p2 = params["lstm1"], params["lstm2"]
    NH = p1["wh_f"].shape[0]
    nclass = params["emb2_w"].shape[1]
    npad = ((nclass + 127) // 128) * 128        # lane-dense output width

    # Cheap host-side packing (pure XLA, outside the serial path).
    x2d = x.reshape(T * B, D)
    wx1 = jnp.concatenate([p1["wx_f"], p1["wx_r"]], axis=1)   # (D, 8*NH)
    b1 = jnp.concatenate([p1["b_f"], p1["b_r"]], axis=1)      # (1, 8*NH)
    wx2 = jnp.concatenate([p2["wx_f"], p2["wx_r"]], axis=1)
    b2 = jnp.concatenate([p2["b_f"], p2["b_r"]], axis=1)
    e2w = jnp.pad(params["emb2_w"], ((0, 0), (0, npad - nclass)))
    e2b = jnp.pad(params["emb2_b"], ((0, 0), (0, npad - nclass)))

    vmem = pl.BlockSpec(memory_space=pltpu.MemorySpace.VMEM)
    out = pl.pallas_call(
        functools.partial(rnn_fused_kernel, T=T, B=B, NH=NH),
        out_shape=jax.ShapeDtypeStruct((T * B, npad), jnp.float32),
        in_specs=[vmem] * 13,
        out_specs=vmem,
        scratch_shapes=[
            pltpu.VMEM((T * B, 8 * NH), jnp.float32),   # layer-1 pre-activations
            pltpu.VMEM((T * B, 2 * NH), jnp.float32),   # layer-1 hidden outputs
            pltpu.VMEM((T * B, 8 * NH), jnp.float32),   # layer-2 pre-activations
            pltpu.VMEM((T * B, 2 * NH), jnp.float32),   # layer-2 hidden outputs
        ],
    )(x2d, wx1, p1["wh_f"], p1["wh_r"], b1,
      params["emb1_w"], params["emb1_b"],
      wx2, p2["wh_f"], p2["wh_r"], b2,
      e2w, e2b)
    return out[:, :nclass].reshape(T, B, nclass)


# ----------------------------------------------------------------------------
# Deterministic parameter init (PyTorch-style uniform(-k, k))
# ----------------------------------------------------------------------------
def _uniform(key, shape, k):
    return jax.random.uniform(key, shape, jnp.float32, -k, k)


def init_lstm_params(key, in_dim, nh):
    k = 1.0 / np.sqrt(nh)
    keys = jax.random.split(key, 8)
    p = {}
    for idx, d in enumerate(("f", "r")):
        w_ih = _uniform(keys[4 * idx + 0], (4 * nh, in_dim), k)   # torch layout
        w_hh = _uniform(keys[4 * idx + 1], (4 * nh, nh), k)
        b_ih = _uniform(keys[4 * idx + 2], (4 * nh,), k)
        b_hh = _uniform(keys[4 * idx + 3], (4 * nh,), k)
        p[f"wx_{d}"] = w_ih.T                                     # (in, 4*nh)
        p[f"wh_{d}"] = w_hh.T                                     # (nh, 4*nh)
        p[f"b_{d}"] = (b_ih + b_hh).reshape(1, 4 * nh)
    return p


def init_params(key, nclass, nh, in_dim=512):
    k1, k2, k3, k4, k5, k6 = jax.random.split(key, 6)
    ke1 = 1.0 / np.sqrt(2 * nh)
    ke2 = 1.0 / np.sqrt(2 * nh)
    return {
        "lstm1": init_lstm_params(k1, in_dim, nh),
        "emb1_w": _uniform(k3, (2 * nh, in_dim), ke1),            # (in, out)
        "emb1_b": _uniform(k4, (1, in_dim), ke1),
        "lstm2": init_lstm_params(k2, in_dim, nh),
        "emb2_w": _uniform(k5, (2 * nh, nclass), ke2),
        "emb2_b": _uniform(k6, (1, nclass), ke2),
    }


# ----------------------------------------------------------------------------
# Pure-JAX reference (for correctness check)
# ----------------------------------------------------------------------------
def _ref_lstm_dir(x, wx, wh, b, reverse):
    T, B, _ = x.shape
    NH = wh.shape[0]

    def step(carry, x_t):
        h, c = carry
        g = x_t @ wx + h @ wh + b[0]
        i = jax.nn.sigmoid(g[:, :NH])
        f = jax.nn.sigmoid(g[:, NH:2 * NH])
        gg = jnp.tanh(g[:, 2 * NH:3 * NH])
        o = jax.nn.sigmoid(g[:, 3 * NH:])
        c = f * c + i * gg
        h = o * jnp.tanh(c)
        return (h, c), h

    xs = x[::-1] if reverse else x
    _, hs = jax.lax.scan(step, (jnp.zeros((B, NH)), jnp.zeros((B, NH))), xs)
    return hs[::-1] if reverse else hs


def _ref_bidir(x, p):
    return jnp.concatenate([_ref_lstm_dir(x, p["wx_f"], p["wh_f"], p["b_f"], False),
                            _ref_lstm_dir(x, p["wx_r"], p["wh_r"], p["b_r"], True)],
                           axis=-1)


def ref_forward(x, params):
    y = _ref_bidir(x, params["lstm1"])
    T, B, H = y.shape
    y = (y.reshape(T * B, H) @ params["emb1_w"] + params["emb1_b"][0]).reshape(T, B, -1)
    y = _ref_bidir(y, params["lstm2"])
    T, B, H = y.shape
    y = (y.reshape(T * B, H) @ params["emb2_w"] + params["emb2_b"][0]).reshape(T, B, -1)
    return y


# ----------------------------------------------------------------------------
if __name__ == "__main__":
    T, B, D = 8, 2, 512       # D=512 is fixed by the module (LSTM(512, nh))
    NH, NCLASS = 32, 12

    key = jax.random.PRNGKey(0)
    kx, kp = jax.random.split(key)
    x = jax.random.normal(kx, (T, B, D), jnp.float32)
    params = init_params(kp, NCLASS, NH, D)

    out = jax.block_until_ready(jax.jit(rnn_forward)(x, params))
    assert out.shape == (T, B, NCLASS), out.shape

    ref = jax.block_until_ready(ref_forward(x, params))
    np.testing.assert_allclose(np.asarray(out), np.asarray(ref),
                               rtol=1e-3, atol=1e-4)

    print("KERNEL_OK")
</pallas_src>

<mosaic_0001>
module attributes {stable_mosaic.version = 11 : i64} {
  func.func @rnn_fused_kernel(%arg0: memref<16x512xf32, #tpu.memory_space<vmem>>, %arg1: memref<512x256xf32, #tpu.memory_space<vmem>>, %arg2: memref<32x128xf32, #tpu.memory_space<vmem>>, %arg3: memref<32x128xf32, #tpu.memory_space<vmem>>, %arg4: memref<1x256xf32, #tpu.memory_space<vmem>>, %arg5: memref<64x512xf32, #tpu.memory_space<vmem>>, %arg6: memref<1x512xf32, #tpu.memory_space<vmem>>, %arg7: memref<512x256xf32, #tpu.memory_space<vmem>>, %arg8: memref<32x128xf32, #tpu.memory_space<vmem>>, %arg9: memref<32x128xf32, #tpu.memory_space<vmem>>, %arg10: memref<1x256xf32, #tpu.memory_space<vmem>>, %arg11: memref<64x128xf32, #tpu.memory_space<vmem>>, %arg12: memref<1x128xf32, #tpu.memory_space<vmem>>, %arg13: memref<16x128xf32, #tpu.memory_space<vmem>>, %arg14: memref<16x256xf32, #tpu.memory_space<vmem>>, %arg15: memref<16x64xf32, #tpu.memory_space<vmem>>, %arg16: memref<16x256xf32, #tpu.memory_space<vmem>>, %arg17: memref<16x64xf32, #tpu.memory_space<vmem>>) attributes {dimension_semantics = [], scalar_prefetch = 0 : i64, scratch_operands = 4 : i64, tpu.core_type = #tpu.core_type<tc>} {
    %c0 = arith.constant 0 : index
    %c0_0 = arith.constant 0 : index
    %0 = vector.load %arg0[%c0, %c0_0] : memref<16x512xf32, #tpu.memory_space<vmem>>, vector<16x512xf32>
    %c0_1 = arith.constant 0 : index
    %c0_2 = arith.constant 0 : index
    %1 = vector.load %arg1[%c0_1, %c0_2] : memref<512x256xf32, #tpu.memory_space<vmem>>, vector<512x256xf32>
    %cst = arith.constant dense<0.000000e+00> : vector<16x256xf32>
    %2 = tpu.matmul %0, %1, %cst {dimension_numbers = #tpu.dot_dimension_numbers<[1], [0], [0], [1], [0, 0, 1, 1], [], []>} : vector<16x512xf32>, vector<512x256xf32>, vector<16x256xf32> -> vector<16x256xf32>
    %c0_3 = arith.constant 0 : index
    %c0_4 = arith.constant 0 : index
    %3 = vector.load %arg4[%c0_3, %c0_4] : memref<1x256xf32, #tpu.memory_space<vmem>>, vector<1x256xf32>
    %4 = vector.broadcast %3 : vector<1x256xf32> to vector<16x256xf32>
    %5 = arith.addf %2, %4 : vector<16x256xf32>
    %c0_5 = arith.constant 0 : index
    %c0_6 = arith.constant 0 : index
    %6 = vector.load %arg14[%c0_5, %c0_6] : memref<16x256xf32, #tpu.memory_space<vmem>>, vector<16x256xf32>
    tpu.vector_store %arg14[%c0_5, %c0_6], %5 {strides = array<i32>} : memref<16x256xf32, #tpu.memory_space<vmem>>, vector<16x256xf32>,
    %c0_7 = arith.constant 0 : index
    %c0_8 = arith.constant 0 : index
    %7 = vector.load %arg2[%c0_7, %c0_8] : memref<32x128xf32, #tpu.memory_space<vmem>>, vector<32x128xf32>
    %c0_9 = arith.constant 0 : index
    %c0_10 = arith.constant 0 : index
    %8 = vector.load %arg3[%c0_9, %c0_10] : memref<32x128xf32, #tpu.memory_space<vmem>>, vector<32x128xf32>
    %cst_11 = arith.constant 0.000000e+00 : f32
    %9 = vector.broadcast %cst_11 : f32 to vector<2x32xf32>
    %cst_12 = arith.constant 0.000000e+00 : f32
    %10 = vector.broadcast %cst_12 : f32 to vector<2x32xf32>
    %cst_13 = arith.constant 0.000000e+00 : f32
    %11 = vector.broadcast %cst_13 : f32 to vector<2x32xf32>
    %cst_14 = arith.constant 0.000000e+00 : f32
    %12 = vector.broadcast %cst_14 : f32 to vector<2x32xf32>
    %c0_15 = arith.constant 0 : index
    %c0_16 = arith.constant 0 : index
    %13 = vector.load %arg14[%c0_15, %c0_16] : memref<16x256xf32, #tpu.memory_space<vmem>>, vector<2x128xf32>
    %c14 = arith.constant 14 : index
    %c128 = arith.constant 128 : index
    %14 = vector.load %arg14[%c14, %c128] : memref<16x256xf32, #tpu.memory_space<vmem>>, vector<2x128xf32>
    %cst_17 = arith.constant dense<0.000000e+00> : vector<2x128xf32>
    %15 = tpu.matmul %9, %7, %cst_17 {dimension_numbers = #tpu.dot_dimension_numbers<[1], [0], [0], [1], [0, 0, 1, 1], [], []>} : vector<2x32xf32>, vector<32x128xf32>, vector<2x128xf32> -> vector<2x128xf32>
    %16 = arith.addf %13, %15 : vector<2x128xf32>
    %17 = arith.negf %16 : vector<2x128xf32>
    %18 = math.exp %17 : vector<2x128xf32>
    %cst_18 = arith.constant 1.000000e+00 : f32
    %19 = vector.broadcast %cst_18 : f32 to vector<2x128xf32>
    %20 = arith.addf %19, %18 : vector<2x128xf32>
    %21 = arith.divf %19, %20 : vector<2x128xf32>
    %22 = math.tanh %16 : vector<2x128xf32>
    %23 = vector.extract_strided_slice %21 {offsets = [0, 0], sizes = [2, 32], strides = [1, 1]} : vector<2x128xf32> to vector<2x32xf32>
    %24 = vector.extract_strided_slice %21 {offsets = [0, 32], sizes = [2, 32], strides = [1, 1]} : vector<2x128xf32> to vector<2x32xf32>
    %25 = vector.extract_strided_slice %22 {offsets = [0, 64], sizes = [2, 32], strides = [1, 1]} : vector<2x128xf32> to vector<2x32xf32>
    %26 = vector.extract_strided_slice %21 {offsets = [0, 96], sizes = [2, 32], strides = [1, 1]} : vector<2x128xf32> to vector<2x32xf32>
    %27 = arith.mulf %24, %10 : vector<2x32xf32>
    %28 = arith.mulf %23, %25 : vector<2x32xf32>
    %29 = arith.addf %27, %28 : vector<2x32xf32>
    %30 = math.tanh %29 : vector<2x32xf32>
    %31 = arith.mulf %26, %30 : vector<2x32xf32>
    %cst_19 = arith.constant dense<0.000000e+00> : vector<2x128xf32>
    %32 = tpu.matmul %11, %8, %cst_19 {dimension_numbers = #tpu.dot_dimension_numbers<[1], [0], [0], [1], [0, 0, 1, 1], [], []>} : vector<2x32xf32>, vector<32x128xf32>, vector<2x128xf32> -> vector<2x128xf32>
    %33 = arith.addf %14, %32 : vector<2x128xf32>
    %34 = arith.negf %33 : vector<2x128xf32>
    %35 = math.exp %34 : vector<2x128xf32>
    %cst_20 = arith.constant 1.000000e+00 : f32
    %36 = vector.broadcast %cst_20 : f32 to vector<2x128xf32>
    %37 = arith.addf %36, %35 : vector<2x128xf32>
    %38 = arith.divf %36, %37 : vector<2x128xf32>
    %39 = math.tanh %33 : vector<2x128xf32>
    %40 = vector.extract_strided_slice %38 {offsets = [0, 0], sizes = [2, 32], strides = [1, 1]} : vector<2x128xf32> to vector<2x32xf32>
    %41 = vector.extract_strided_slice %38 {offsets = [0, 32], sizes = [2, 32], strides = [1, 1]} : vector<2x128xf32> to vector<2x32xf32>
    %42 = vector.extract_strided_slice %39 {offsets = [0, 64], sizes = [2, 32], strides = [1, 1]} : vector<2x128xf32> to vector<2x32xf32>
    %43 = vector.extract_strided_slice %38 {offsets = [0, 96], sizes = [2, 32], strides = [1, 1]} : vector<2x128xf32> to vector<2x32xf32>
    %44 = arith.mulf %41, %12 : vector<2x32xf32>
    %45 = arith.mulf %40, %42 : vector<2x32xf32>
    %46 = arith.addf %44, %45 : vector<2x32xf32>
    %47 = math.tanh %46 : vector<2x32xf32>
    %48 = arith.mulf %43, %47 : vector<2x32xf32>
    %c0_21 = arith.constant 0 : index
    %c0_22 = arith.constant 0 : index
    %49 = vector.load %arg15[%c0_21, %c0_22] : memref<16x64xf32, #tpu.memory_space<vmem>>, vector<2x32xf32>
    tpu.vector_store %arg15[%c0_21, %c0_22], %31 {strides = array<i32>} : memref<16x64xf32, #tpu.memory_space<vmem>>, vector<2x32xf32>,
    %c14_23 = arith.constant 14 : index
    %c32 = arith.constant 32 : index
    %50 = vector.load %arg15[%c14_23, %c32] : memref<16x64xf32, #tpu.memory_space<vmem>>, vector<2x32xf32>
    tpu.vector_store %arg15[%c14_23, %c32], %48 {strides = array<i32>} : memref<16x64xf32, #tpu.memory_space<vmem>>, vector<2x32xf32>,
    %c2 = arith.constant 2 : index
    %c0_24 = arith.constant 0 : index
    %51 = vector.load %arg14[%c2, %c0_24] : memref<16x256xf32, #tpu.memory_space<vmem>>, vector<2x128xf32>
    %c12 = arith.constant 12 : index
    %c128_25 = arith.constant 128 : index
    %52 = vector.load %arg14[%c12, %c128_25] : memref<16x256xf32, #tpu.memory_space<vmem>>, vector<2x128xf32>
    %cst_26 = arith.constant dense<0.000000e+00> : vector<2x128xf32>
    %53 = tpu.matmul %31, %7, %cst_26 {dimension_numbers = #tpu.dot_dimension_numbers<[1], [0], [0], [1], [0, 0, 1, 1], [], []>} : vector<2x32xf32>, vector<32x128xf32>, vector<2x128xf32> -> vector<2x128xf32>
    %54 = arith.addf %51, %53 : vector<2x128xf32>
    %55 = arith.negf %54 : vector<2x128xf32>
    %56 = math.exp %55 : vector<2x128xf32>
    %cst_27 = arith.constant 1.000000e+00 : f32
    %57 = vector.broadcast %cst_27 : f32 to vector<2x128xf32>
    %58 = arith.addf %57, %56 : vector<2x128xf32>
    %59 = arith.divf %57, %58 : vector<2x128xf32>
    %60 = math.tanh %54 : vector<2x128xf32>
    %61 = vector.extract_strided_slice %59 {offsets = [0, 0], sizes = [2, 32], strides = [1, 1]} : vector<2x128xf32> to vector<2x32xf32>
    %62 = vector.extract_strided_slice %59 {offsets = [0, 32], sizes = [2, 32], strides = [1, 1]} : vector<2x128xf32> to vector<2x32xf32>
    %63 = vector.extract_strided_slice %60 {offsets = [0, 64], sizes = [2, 32], strides = [1, 1]} : vector<2x128xf32> to vector<2x32xf32>
    %64 = vector.extract_strided_slice %59 {offsets = [0, 96], sizes = [2, 32], strides = [1, 1]} : vector<2x128xf32> to vector<2x32xf32>
    %65 = arith.mulf %62, %29 : vector<2x32xf32>
    %66 = arith.mulf %61, %63 : vector<2x32xf32>
    %67 = arith.addf %65, %66 : vector<2x32xf32>
    %68 = math.tanh %67 : vector<2x32xf32>
    %69 = arith.mulf %64, %68 : vector<2x32xf32>
    %cst_28 = arith.constant dense<0.000000e+00> : vector<2x128xf32>
    %70 = tpu.matmul %48, %8, %cst_28 {dimension_numbers = #tpu.dot_dimension_numbers<[1], [0], [0], [1], [0, 0, 1, 1], [], []>} : vector<2x32xf32>, vector<32x128xf32>, vector<2x128xf32> -> vector<2x128xf32>
    %71 = arith.addf %52, %70 : vector<2x128xf32>
    %72 = arith.negf %71 : vector<2x128xf32>
    %73 = math.exp %72 : vector<2x128xf32>
    %cst_29 = arith.constant 1.000000e+00 : f32
    %74 = vector.broadcast %cst_29 : f32 to vector<2x128xf32>
    %75 = arith.addf %74, %73 : vector<2x128xf32>
    %76 = arith.divf %74, %75 : vector<2x128xf32>
    %77 = math.tanh %71 : vector<2x128xf32>
    %78 = vector.extract_strided_slice %76 {offsets = [0, 0], sizes = [2, 32], strides = [1, 1]} : vector<2x128xf32> to vector<2x32xf32>
    %79 = vector.extract_strided_slice %76 {offsets = [0, 32], sizes = [2, 32], strides = [1, 1]} : vector<2x128xf32> to vector<2x32xf32>
    %80 = vector.extract_strided_slice %77 {offsets = [0, 64], sizes = [2, 32], strides = [1, 1]} : vector<2x128xf32> to vector<2x32xf32>
    %81 = vector.extract_strided_slice %76 {offsets = [0, 96], sizes = [2, 32], strides = [1, 1]} : vector<2x128xf32> to vector<2x32xf32>
    %82 = arith.mulf %79, %46 : vector<2x32xf32>
    %83 = arith.mulf %78, %80 : vector<2x32xf32>
    %84 = arith.addf %82, %83 : vector<2x32xf32>
    %85 = math.tanh %84 : vector<2x32xf32>
    %86 = arith.mulf %81, %85 : vector<2x32xf32>
    %c2_30 = arith.constant 2 : index
    %c0_31 = arith.constant 0 : index
    %87 = vector.load %arg15[%c2_30, %c0_31] : memref<16x64xf32, #tpu.memory_space<vmem>>, vector<2x32xf32>
    tpu.vector_store %arg15[%c2_30, %c0_31], %69 {strides = array<i32>} : memref<16x64xf32, #tpu.memory_space<vmem>>, vector<2x32xf32>,
    %c12_32 = arith.constant 12 : index
    %c32_33 = arith.constant 32 : index
    %88 = vector.load %arg15[%c12_32, %c32_33] : memref<16x64xf32, #tpu.memory_space<vmem>>, vector<2x32xf32>
    tpu.vector_store %arg15[%c12_32, %c32_33], %86 {strides = array<i32>} : memref<16x64xf32, #tpu.memory_space<vmem>>, vector<2x32xf32>,
    %c4 = arith.constant 4 : index
    %c0_34 = arith.constant 0 : index
    %89 = vector.load %arg14[%c4, %c0_34] : memref<16x256xf32, #tpu.memory_space<vmem>>, vector<2x128xf32>
    %c10 = arith.constant 10 : index
    %c128_35 = arith.constant 128 : index
    %90 = vector.load %arg14[%c10, %c128_35] : memref<16x256xf32, #tpu.memory_space<vmem>>, vector<2x128xf32>
    %cst_36 = arith.constant dense<0.000000e+00> : vector<2x128xf32>
    %91 = tpu.matmul %69, %7, %cst_36 {dimension_numbers = #tpu.dot_dimension_numbers<[1], [0], [0], [1], [0, 0, 1, 1], [], []>} : vector<2x32xf32>, vector<32x128xf32>, vector<2x128xf32> -> vector<2x128xf32>
    %92 = arith.addf %89, %91 : vector<2x128xf32>
    %93 = arith.negf %92 : vector<2x128xf32>
    %94 = math.exp %93 : vector<2x128xf32>
    %cst_37 = arith.constant 1.000000e+00 : f32
    %95 = vector.broadcast %cst_37 : f32 to vector<2x128xf32>
    %96 = arith.addf %95, %94 : vector<2x128xf32>
    %97 = arith.divf %95, %96 : vector<2x128xf32>
    %98 = math.tanh %92 : vector<2x128xf32>
    %99 = vector.extract_strided_slice %97 {offsets = [0, 0], sizes = [2, 32], strides = [1, 1]} : vector<2x128xf32> to vector<2x32xf32>
    %100 = vector.extract_strided_slice %97 {offsets = [0, 32], sizes = [2, 32], strides = [1, 1]} : vector<2x128xf32> to vector<2x32xf32>
    %101 = vector.extract_strided_slice %98 {offsets = [0, 64], sizes = [2, 32], strides = [1, 1]} : vector<2x128xf32> to vector<2x32xf32>
    %102 = vector.extract_strided_slice %97 {offsets = [0, 96], sizes = [2, 32], strides = [1, 1]} : vector<2x128xf32> to vector<2x32xf32>
    %103 = arith.mulf %100, %67 : vector<2x32xf32>
    %104 = arith.mulf %99, %101 : vector<2x32xf32>
    %105 = arith.addf %103, %104 : vector<2x32xf32>
    %106 = math.tanh %105 : vector<2x32xf32>
    %107 = arith.mulf %102, %106 : vector<2x32xf32>
    %cst_38 = arith.constant dense<0.000000e+00> : vector<2x128xf32>
    %108 = tpu.matmul %86, %8, %cst_38 {dimension_numbers = #tpu.dot_dimension_numbers<[1], [0], [0], [1], [0, 0, 1, 1], [], []>} : vector<2x32xf32>, vector<32x128xf32>, vector<2x128xf32> -> vector<2x128xf32>
    %109 = arith.addf %90, %108 : vector<2x128xf32>
    %110 = arith.negf %109 : vector<2x128xf32>
    %111 = math.exp %110 : vector<2x128xf32>
    %cst_39 = arith.constant 1.000000e+00 : f32
    %112 = vector.broadcast %cst_39 : f32 to vector<2x128xf32>
    %113 = arith.addf %112, %111 : vector<2x128xf32>
    %114 = arith.divf %112, %113 : vector<2x128xf32>
    %115 = math.tanh %109 : vector<2x128xf32>
    %116 = vector.extract_strided_slice %114 {offsets = [0, 0], sizes = [2, 32], strides = [1, 1]} : vector<2x128xf32> to vector<2x32xf32>
    %117 = vector.extract_strided_slice %114 {offsets = [0, 32], sizes = [2, 32], strides = [1, 1]} : vector<2x128xf32> to vector<2x32xf32>
    %118 = vector.extract_strided_slice %115 {offsets = [0, 64], sizes = [2, 32], strides = [1, 1]} : vector<2x128xf32> to vector<2x32xf32>
    %119 = vector.extract_strided_slice %114 {offsets = [0, 96], sizes = [2, 32], strides = [1, 1]} : vector<2x128xf32> to vector<2x32xf32>
    %120 = arith.mulf %117, %84 : vector<2x32xf32>
    %121 = arith.mulf %116, %118 : vector<2x32xf32>
    %122 = arith.addf %120, %121 : vector<2x32xf32>
    %123 = math.tanh %122 : vector<2x32xf32>
    %124 = arith.mulf %119, %123 : vector<2x32xf32>
    %c4_40 = arith.constant 4 : index
    %c0_41 = arith.constant 0 : index
    %125 = vector.load %arg15[%c4_40, %c0_41] : memref<16x64xf32, #tpu.memory_space<vmem>>, vector<2x32xf32>
    tpu.vector_store %arg15[%c4_40, %c0_41], %107 {strides = array<i32>} : memref<16x64xf32, #tpu.memory_space<vmem>>, vector<2x32xf32>,
    %c10_42 = arith.constant 10 : index
    %c32_43 = arith.constant 32 : index
    %126 = vector.load %arg15[%c10_42, %c32_43] : memref<16x64xf32, #tpu.memory_space<vmem>>, vector<2x32xf32>
    tpu.vector_store %arg15[%c10_42, %c32_43], %124 {strides = array<i32>} : memref<16x64xf32, #tpu.memory_space<vmem>>, vector<2x32xf32>,
    %c6 = arith.constant 6 : index
    %c0_44 = arith.constant 0 : index
    %127 = vector.load %arg14[%c6, %c0_44] : memref<16x256xf32, #tpu.memory_space<vmem>>, vector<2x128xf32>
    %c8 = arith.constant 8 : index
    %c128_45 = arith.constant 128 : index
    %128 = vector.load %arg14[%c8, %c128_45] : memref<16x256xf32, #tpu.memory_space<vmem>>, vector<2x128xf32>
    %cst_46 = arith.constant dense<0.000000e+00> : vector<2x128xf32>
    %129 = tpu.matmul %107, %7, %cst_46 {dimension_numbers = #tpu.dot_dimension_numbers<[1], [0], [0], [1], [0, 0, 1, 1], [], []>} : vector<2x32xf32>, vector<32x128xf32>, vector<2x128xf32> -> vector<2x128xf32>
    %130 = arith.addf %127, %129 : vector<2x128xf32>
    %131 = arith.negf %130 : vector<2x128xf32>
    %132 = math.exp %131 : vector<2x128xf32>
    %cst_47 = arith.constant 1.000000e+00 : f32
    %133 = vector.broadcast %cst_47 : f32 to vector<2x128xf32>
    %134 = arith.addf %133, %132 : vector<2x128xf32>
    %135 = arith.divf %133, %134 : vector<2x128xf32>
    %136 = math.tanh %130 : vector<2x128xf32>
    %137 = vector.extract_strided_slice %135 {offsets = [0, 0], sizes = [2, 32], strides = [1, 1]} : vector<2x128xf32> to vector<2x32xf32>
    %138 = vector.extract_strided_slice %135 {offsets = [0, 32], sizes = [2, 32], strides = [1, 1]} : vector<2x128xf32> to vector<2x32xf32>
    %139 = vector.extract_strided_slice %136 {offsets = [0, 64], sizes = [2, 32], strides = [1, 1]} : vector<2x128xf32> to vector<2x32xf32>
    %140 = vector.extract_strided_slice %135 {offsets = [0, 96], sizes = [2, 32], strides = [1, 1]} : vector<2x128xf32> to vector<2x32xf32>
    %141 = arith.mulf %138, %105 : vector<2x32xf32>
    %142 = arith.mulf %137, %139 : vector<2x32xf32>
    %143 = arith.addf %141, %142 : vector<2x32xf32>
    %144 = math.tanh %143 : vector<2x32xf32>
    %145 = arith.mulf %140, %144 : vector<2x32xf32>
    %cst_48 = arith.constant dense<0.000000e+00> : vector<2x128xf32>
    %146 = tpu.matmul %124, %8, %cst_48 {dimension_numbers = #tpu.dot_dimension_numbers<[1], [0], [0], [1], [0, 0, 1, 1], [], []>} : vector<2x32xf32>, vector<32x128xf32>, vector<2x128xf32> -> vector<2x128xf32>
    %147 = arith.addf %128, %146 : vector<2x128xf32>
    %148 = arith.negf %147 : vector<2x128xf32>
    %149 = math.exp %148 : vector<2x128xf32>
    %cst_49 = arith.constant 1.000000e+00 : f32
    %150 = vector.broadcast %cst_49 : f32 to vector<2x128xf32>
    %151 = arith.addf %150, %149 : vector<2x128xf32>
    %152 = arith.divf %150, %151 : vector<2x128xf32>
    %153 = math.tanh %147 : vector<2x128xf32>
    %154 = vector.extract_strided_slice %152 {offsets = [0, 0], sizes = [2, 32], strides = [1, 1]} : vector<2x128xf32> to vector<2x32xf32>
    %155 = vector.extract_strided_slice %152 {offsets = [0, 32], sizes = [2, 32], strides = [1, 1]} : vector<2x128xf32> to vector<2x32xf32>
    %156 = vector.extract_strided_slice %153 {offsets = [0, 64], sizes = [2, 32], strides = [1, 1]} : vector<2x128xf32> to vector<2x32xf32>
    %157 = vector.extract_strided_slice %152 {offsets = [0, 96], sizes = [2, 32], strides = [1, 1]} : vector<2x128xf32> to vector<2x32xf32>
    %158 = arith.mulf %155, %122 : vector<2x32xf32>
    %159 = arith.mulf %154, %156 : vector<2x32xf32>
    %160 = arith.addf %158, %159 : vector<2x32xf32>
    %161 = math.tanh %160 : vector<2x32xf32>
    %162 = arith.mulf %157, %161 : vector<2x32xf32>
    %c6_50 = arith.constant 6 : index
    %c0_51 = arith.constant 0 : index
    %163 = vector.load %arg15[%c6_50, %c0_51] : memref<16x64xf32, #tpu.memory_space<vmem>>, vector<2x32xf32>
    tpu.vector_store %arg15[%c6_50, %c0_51], %145 {strides = array<i32>} : memref<16x64xf32, #tpu.memory_space<vmem>>, vector<2x32xf32>,
    %c8_52 = arith.constant 8 : index
    %c32_53 = arith.constant 32 : index
    %164 = vector.load %arg15[%c8_52, %c32_53] : memref<16x64xf32, #tpu.memory_space<vmem>>, vector<2x32xf32>
    tpu.vector_store %arg15[%c8_52, %c32_53], %162 {strides = array<i32>} : memref<16x64xf32, #tpu.memory_space<vmem>>, vector<2x32xf32>,
    %c8_54 = arith.constant 8 : index
    %c0_55 = arith.constant 0 : index
    %165 = vector.load %arg14[%c8_54, %c0_55] : memref<16x256xf32, #tpu.memory_space<vmem>>, vector<2x128xf32>
    %c6_56 = arith.constant 6 : index
    %c128_57 = arith.constant 128 : index
    %166 = vector.load %arg14[%c6_56, %c128_57] : memref<16x256xf32, #tpu.memory_space<vmem>>, vector<2x128xf32>
    %cst_58 = arith.constant dense<0.000000e+00> : vector<2x128xf32>
    %167 = tpu.matmul %145, %7, %cst_58 {dimension_numbers = #tpu.dot_dimension_numbers<[1], [0], [0], [1], [0, 0, 1, 1], [], []>} : vector<2x32xf32>, vector<32x128xf32>, vector<2x128xf32> -> vector<2x128xf32>
    %168 = arith.addf %165, %167 : vector<2x128xf32>
    %169 = arith.negf %168 : vector<2x128xf32>
    %170 = math.exp %169 : vector<2x128xf32>
    %cst_59 = arith.constant 1.000000e+00 : f32
    %171 = vector.broadcast %cst_59 : f32 to vector<2x128xf32>
    %172 = arith.addf %171, %170 : vector<2x128xf32>
    %173 = arith.divf %171, %172 : vector<2x128xf32>
    %174 = math.tanh %168 : vector<2x128xf32>
    %175 = vector.extract_strided_slice %173 {offsets = [0, 0], sizes = [2, 32], strides = [1, 1]} : vector<2x128xf32> to vector<2x32xf32>
    %176 = vector.extract_strided_slice %173 {offsets = [0, 32], sizes = [2, 32], strides = [1, 1]} : vector<2x128xf32> to vector<2x32xf32>
    %177 = vector.extract_strided_slice %174 {offsets = [0, 64], sizes = [2, 32], strides = [1, 1]} : vector<2x128xf32> to vector<2x32xf32>
    %178 = vector.extract_strided_slice %173 {offsets = [0, 96], sizes = [2, 32], strides = [1, 1]} : vector<2x128xf32> to vector<2x32xf32>
    %179 = arith.mulf %176, %143 : vector<2x32xf32>
    %180 = arith.mulf %175, %177 : vector<2x32xf32>
    %181 = arith.addf %179, %180 : vector<2x32xf32>
    %182 = math.tanh %181 : vector<2x32xf32>
    %183 = arith.mulf %178, %182 : vector<2x32xf32>
    %cst_60 = arith.constant dense<0.000000e+00> : vector<2x128xf32>
    %184 = tpu.matmul %162, %8, %cst_60 {dimension_numbers = #tpu.dot_dimension_numbers<[1], [0], [0], [1], [0, 0, 1, 1], [], []>} : vector<2x32xf32>, vector<32x128xf32>, vector<2x128xf32> -> vector<2x128xf32>
    %185 = arith.addf %166, %184 : vector<2x128xf32>
    %186 = arith.negf %185 : vector<2x128xf32>
    %187 = math.exp %186 : vector<2x128xf32>
    %cst_61 = arith.constant 1.000000e+00 : f32
    %188 = vector.broadcast %cst_61 : f32 to vector<2x128xf32>
    %189 = arith.addf %188, %187 : vector<2x128xf32>
    %190 = arith.divf %188, %189 : vector<2x128xf32>
    %191 = math.tanh %185 : vector<2x128xf32>
    %192 = vector.extract_strided_slice %190 {offsets = [0, 0], sizes = [2, 32], strides = [1, 1]} : vector<2x128xf32> to vector<2x32xf32>
    %193 = vector.extract_strided_slice %190 {offsets = [0, 32], sizes = [2, 32], strides = [1, 1]} : vector<2x128xf32> to vector<2x32xf32>
    %194 = vector.extract_strided_slice %191 {offsets = [0, 64], sizes = [2, 32], strides = [1, 1]} : vector<2x128xf32> to vector<2x32xf32>
    %195 = vector.extract_strided_slice %190 {offsets = [0, 96], sizes = [2, 32], strides = [1, 1]} : vector<2x128xf32> to vector<2x32xf32>
    %196 = arith.mulf %193, %160 : vector<2x32xf32>
    %197 = arith.mulf %192, %194 : vector<2x32xf32>
    %198 = arith.addf %196, %197 : vector<2x32xf32>
    %199 = math.tanh %198 : vector<2x32xf32>
    %200 = arith.mulf %195, %199 : vector<2x32xf32>
    %c8_62 = arith.constant 8 : index
    %c0_63 = arith.constant 0 : index
    %201 = vector.load %arg15[%c8_62, %c0_63] : memref<16x64xf32, #tpu.memory_space<vmem>>, vector<2x32xf32>
    tpu.vector_store %arg15[%c8_62, %c0_63], %183 {strides = array<i32>} : memref<16x64xf32, #tpu.memory_space<vmem>>, vector<2x32xf32>,
    %c6_64 = arith.constant 6 : index
    %c32_65 = arith.constant 32 : index
    %202 = vector.load %arg15[%c6_64, %c32_65] : memref<16x64xf32, #tpu.memory_space<vmem>>, vector<2x32xf32>
    tpu.vector_store %arg15[%c6_64, %c32_65], %200 {strides = array<i32>} : memref<16x64xf32, #tpu.memory_space<vmem>>, vector<2x32xf32>,
    %c10_66 = arith.constant 10 : index
    %c0_67 = arith.constant 0 : index
    %203 = vector.load %arg14[%c10_66, %c0_67] : memref<16x256xf32, #tpu.memory_space<vmem>>, vector<2x128xf32>
    %c4_68 = arith.constant 4 : index
    %c128_69 = arith.constant 128 : index
    %204 = vector.load %arg14[%c4_68, %c128_69] : memref<16x256xf32, #tpu.memory_space<vmem>>, vector<2x128xf32>
    %cst_70 = arith.constant dense<0.000000e+00> : vector<2x128xf32>
    %205 = tpu.matmul %183, %7, %cst_70 {dimension_numbers = #tpu.dot_dimension_numbers<[1], [0], [0], [1], [0, 0, 1, 1], [], []>} : vector<2x32xf32>, vector<32x128xf32>, vector<2x128xf32> -> vector<2x128xf32>
    %206 = arith.addf %203, %205 : vector<2x128xf32>
    %207 = arith.negf %206 : vector<2x128xf32>
    %208 = math.exp %207 : vector<2x128xf32>
    %cst_71 = arith.constant 1.000000e+00 : f32
    %209 = vector.broadcast %cst_71 : f32 to vector<2x128xf32>
    %210 = arith.addf %209, %208 : vector<2x128xf32>
    %211 = arith.divf %209, %210 : vector<2x128xf32>
    %212 = math.tanh %206 : vector<2x128xf32>
    %213 = vector.extract_strided_slice %211 {offsets = [0, 0], sizes = [2, 32], strides = [1, 1]} : vector<2x128xf32> to vector<2x32xf32>
    %214 = vector.extract_strided_slice %211 {offsets = [0, 32], sizes = [2, 32], strides = [1, 1]} : vector<2x128xf32> to vector<2x32xf32>
    %215 = vector.extract_strided_slice %212 {offsets = [0, 64], sizes = [2, 32], strides = [1, 1]} : vector<2x128xf32> to vector<2x32xf32>
    %216 = vector.extract_strided_slice %211 {offsets = [0, 96], sizes = [2, 32], strides = [1, 1]} : vector<2x128xf32> to vector<2x32xf32>
    %217 = arith.mulf %214, %181 : vector<2x32xf32>
    %218 = arith.mulf %213, %215 : vector<2x32xf32>
    %219 = arith.addf %217, %218 : vector<2x32xf32>
    %220 = math.tanh %219 : vector<2x32xf32>
    %221 = arith.mulf %216, %220 : vector<2x32xf32>
    %cst_72 = arith.constant dense<0.000000e+00> : vector<2x128xf32>
    %222 = tpu.matmul %200, %8, %cst_72 {dimension_numbers = #tpu.dot_dimension_numbers<[1], [0], [0], [1], [0, 0, 1, 1], [], []>} : vector<2x32xf32>, vector<32x128xf32>, vector<2x128xf32> -> vector<2x128xf32>
    %223 = arith.addf %204, %222 : vector<2x128xf32>
    %224 = arith.negf %223 : vector<2x128xf32>
    %225 = math.exp %224 : vector<2x128xf32>
    %cst_73 = arith.constant 1.000000e+00 : f32
    %226 = vector.broadcast %cst_73 : f32 to vector<2x128xf32>
    %227 = arith.addf %226, %225 : vector<2x128xf32>
    %228 = arith.divf %226, %227 : vector<2x128xf32>
    %229 = math.tanh %223 : vector<2x128xf32>
    %230 = vector.extract_strided_slice %228 {offsets = [0, 0], sizes = [2, 32], strides = [1, 1]} : vector<2x128xf32> to vector<2x32xf32>
    %231 = vector.extract_strided_slice %228 {offsets = [0, 32], sizes = [2, 32], strides = [1, 1]} : vector<2x128xf32> to vector<2x32xf32>
    %232 = vector.extract_strided_slice %229 {offsets = [0, 64], sizes = [2, 32], strides = [1, 1]} : vector<2x128xf32> to vector<2x32xf32>
    %233 = vector.extract_strided_slice %228 {offsets = [0, 96], sizes = [2, 32], strides = [1, 1]} : vector<2x128xf32> to vector<2x32xf32>
    %234 = arith.mulf %231, %198 : vector<2x32xf32>
    %235 = arith.mulf %230, %232 : vector<2x32xf32>
    %236 = arith.addf %234, %235 : vector<2x32xf32>
    %237 = math.tanh %236 : vector<2x32xf32>
    %238 = arith.mulf %233, %237 : vector<2x32xf32>
    %c10_74 = arith.constant 10 : index
    %c0_75 = arith.constant 0 : index
    %239 = vector.load %arg15[%c10_74, %c0_75] : memref<16x64xf32, #tpu.memory_space<vmem>>, vector<2x32xf32>
    tpu.vector_store %arg15[%c10_74, %c0_75], %221 {strides = array<i32>} : memref<16x64xf32, #tpu.memory_space<vmem>>, vector<2x32xf32>,
    %c4_76 = arith.constant 4 : index
    %c32_77 = arith.constant 32 : index
    %240 = vector.load %arg15[%c4_76, %c32_77] : memref<16x64xf32, #tpu.memory_space<vmem>>, vector<2x32xf32>
    tpu.vector_store %arg15[%c4_76, %c32_77], %238 {strides = array<i32>} : memref<16x64xf32, #tpu.memory_space<vmem>>, vector<2x32xf32>,
    %c12_78 = arith.constant 12 : index
    %c0_79 = arith.constant 0 : index
    %241 = vector.load %arg14[%c12_78, %c0_79] : memref<16x256xf32, #tpu.memory_space<vmem>>, vector<2x128xf32>
    %c2_80 = arith.constant 2 : index
    %c128_81 = arith.constant 128 : index
    %242 = vector.load %arg14[%c2_80, %c128_81] : memref<16x256xf32, #tpu.memory_space<vmem>>, vector<2x128xf32>
    %cst_82 = arith.constant dense<0.000000e+00> : vector<2x128xf32>
    %243 = tpu.matmul %221, %7, %cst_82 {dimension_numbers = #tpu.dot_dimension_numbers<[1], [0], [0], [1], [0, 0, 1, 1], [], []>} : vector<2x32xf32>, vector<32x128xf32>, vector<2x128xf32> -> vector<2x128xf32>
    %244 = arith.addf %241, %243 : vector<2x128xf32>
    %245 = arith.negf %244 : vector<2x128xf32>
    %246 = math.exp %245 : vector<2x128xf32>
    %cst_83 = arith.constant 1.000000e+00 : f32
    %247 = vector.broadcast %cst_83 : f32 to vector<2x128xf32>
    %248 = arith.addf %247, %246 : vector<2x128xf32>
    %249 = arith.divf %247, %248 : vector<2x128xf32>
    %250 = math.tanh %244 : vector<2x128xf32>
    %251 = vector.extract_strided_slice %249 {offsets = [0, 0], sizes = [2, 32], strides = [1, 1]} : vector<2x128xf32> to vector<2x32xf32>
    %252 = vector.extract_strided_slice %249 {offsets = [0, 32], sizes = [2, 32], strides = [1, 1]} : vector<2x128xf32> to vector<2x32xf32>
    %253 = vector.extract_strided_slice %250 {offsets = [0, 64], sizes = [2, 32], strides = [1, 1]} : vector<2x128xf32> to vector<2x32xf32>
    %254 = vector.extract_strided_slice %249 {offsets = [0, 96], sizes = [2, 32], strides = [1, 1]} : vector<2x128xf32> to vector<2x32xf32>
    %255 = arith.mulf %252, %219 : vector<2x32xf32>
    %256 = arith.mulf %251, %253 : vector<2x32xf32>
    %257 = arith.addf %255, %256 : vector<2x32xf32>
    %258 = math.tanh %257 : vector<2x32xf32>
    %259 = arith.mulf %254, %258 : vector<2x32xf32>
    %cst_84 = arith.constant dense<0.000000e+00> : vector<2x128xf32>
    %260 = tpu.matmul %238, %8, %cst_84 {dimension_numbers = #tpu.dot_dimension_numbers<[1], [0], [0], [1], [0, 0, 1, 1], [], []>} : vector<2x32xf32>, vector<32x128xf32>, vector<2x128xf32> -> vector<2x128xf32>
    %261 = arith.addf %242, %260 : vector<2x128xf32>
    %262 = arith.negf %261 : vector<2x128xf32>
    %263 = math.exp %262 : vector<2x128xf32>
    %cst_85 = arith.constant 1.000000e+00 : f32
    %264 = vector.broadcast %cst_85 : f32 to vector<2x128xf32>
    %265 = arith.addf %264, %263 : vector<2x128xf32>
    %266 = arith.divf %264, %265 : vector<2x128xf32>
    %267 = math.tanh %261 : vector<2x128xf32>
    %268 = vector.extract_strided_slice %266 {offsets = [0, 0], sizes = [2, 32], strides = [1, 1]} : vector<2x128xf32> to vector<2x32xf32>
    %269 = vector.extract_strided_slice %266 {offsets = [0, 32], sizes = [2, 32], strides = [1, 1]} : vector<2x128xf32> to vector<2x32xf32>
    %270 = vector.extract_strided_slice %267 {offsets = [0, 64], sizes = [2, 32], strides = [1, 1]} : vector<2x128xf32> to vector<2x32xf32>
    %271 = vector.extract_strided_slice %266 {offsets = [0, 96], sizes = [2, 32], strides = [1, 1]} : vector<2x128xf32> to vector<2x32xf32>
    %272 = arith.mulf %269, %236 : vector<2x32xf32>
    %273 = arith.mulf %268, %270 : vector<2x32xf32>
    %274 = arith.addf %272, %273 : vector<2x32xf32>
    %275 = math.tanh %274 : vector<2x32xf32>
    %276 = arith.mulf %271, %275 : vector<2x32xf32>
    %c12_86 = arith.constant 12 : index
    %c0_87 = arith.constant 0 : index
    %277 = vector.load %arg15[%c12_86, %c0_87] : memref<16x64xf32, #tpu.memory_space<vmem>>, vector<2x32xf32>
    tpu.vector_store %arg15[%c12_86, %c0_87], %259 {strides = array<i32>} : memref<16x64xf32, #tpu.memory_space<vmem>>, vector<2x32xf32>,
    %c2_88 = arith.constant 2 : index
    %c32_89 = arith.constant 32 : index
    %278 = vector.load %arg15[%c2_88, %c32_89] : memref<16x64xf32, #tpu.memory_space<vmem>>, vector<2x32xf32>
    tpu.vector_store %arg15[%c2_88, %c32_89], %276 {strides = array<i32>} : memref<16x64xf32, #tpu.memory_space<vmem>>, vector<2x32xf32>,
    %c14_90 = arith.constant 14 : index
    %c0_91 = arith.constant 0 : index
    %279 = vector.load %arg14[%c14_90, %c0_91] : memref<16x256xf32, #tpu.memory_space<vmem>>, vector<2x128xf32>
    %c0_92 = arith.constant 0 : index
    %c128_93 = arith.constant 128 : index
    %280 = vector.load %arg14[%c0_92, %c128_93] : memref<16x256xf32, #tpu.memory_space<vmem>>, vector<2x128xf32>
    %cst_94 = arith.constant dense<0.000000e+00> : vector<2x128xf32>
    %281 = tpu.matmul %259, %7, %cst_94 {dimension_numbers = #tpu.dot_dimension_numbers<[1], [0], [0], [1], [0, 0, 1, 1], [], []>} : vector<2x32xf32>, vector<32x128xf32>, vector<2x128xf32> -> vector<2x128xf32>
    %282 = arith.addf %279, %281 : vector<2x128xf32>
    %283 = arith.negf %282 : vector<2x128xf32>
    %284 = math.exp %283 : vector<2x128xf32>
    %cst_95 = arith.constant 1.000000e+00 : f32
    %285 = vector.broadcast %cst_95 : f32 to vector<2x128xf32>
    %286 = arith.addf %285, %284 : vector<2x128xf32>
    %287 = arith.divf %285, %286 : vector<2x128xf32>
    %288 = math.tanh %282 : vector<2x128xf32>
    %289 = vector.extract_strided_slice %287 {offsets = [0, 0], sizes = [2, 32], strides = [1, 1]} : vector<2x128xf32> to vector<2x32xf32>
    %290 = vector.extract_strided_slice %287 {offsets = [0, 32], sizes = [2, 32], strides = [1, 1]} : vector<2x128xf32> to vector<2x32xf32>
    %291 = vector.extract_strided_slice %288 {offsets = [0, 64], sizes = [2, 32], strides = [1, 1]} : vector<2x128xf32> to vector<2x32xf32>
    %292 = vector.extract_strided_slice %287 {offsets = [0, 96], sizes = [2, 32], strides = [1, 1]} : vector<2x128xf32> to vector<2x32xf32>
    %293 = arith.mulf %290, %257 : vector<2x32xf32>
    %294 = arith.mulf %289, %291 : vector<2x32xf32>
    %295 = arith.addf %293, %294 : vector<2x32xf32>
    %296 = math.tanh %295 : vector<2x32xf32>
    %297 = arith.mulf %292, %296 : vector<2x32xf32>
    %cst_96 = arith.constant dense<0.000000e+00> : vector<2x128xf32>
    %298 = tpu.matmul %276, %8, %cst_96 {dimension_numbers = #tpu.dot_dimension_numbers<[1], [0], [0], [1], [0, 0, 1, 1], [], []>} : vector<2x32xf32>, vector<32x128xf32>, vector<2x128xf32> -> vector<2x128xf32>
    %299 = arith.addf %280, %298 : vector<2x128xf32>
    %300 = arith.negf %299 : vector<2x128xf32>
    %301 = math.exp %300 : vector<2x128xf32>
    %cst_97 = arith.constant 1.000000e+00 : f32
    %302 = vector.broadcast %cst_97 : f32 to vector<2x128xf32>
    %303 = arith.addf %302, %301 : vector<2x128xf32>
    %304 = arith.divf %302, %303 : vector<2x128xf32>
    %305 = math.tanh %299 : vector<2x128xf32>
    %306 = vector.extract_strided_slice %304 {offsets = [0, 0], sizes = [2, 32], strides = [1, 1]} : vector<2x128xf32> to vector<2x32xf32>
    %307 = vector.extract_strided_slice %304 {offsets = [0, 32], sizes = [2, 32], strides = [1, 1]} : vector<2x128xf32> to vector<2x32xf32>
    %308 = vector.extract_strided_slice %305 {offsets = [0, 64], sizes = [2, 32], strides = [1, 1]} : vector<2x128xf32> to vector<2x32xf32>
    %309 = vector.extract_strided_slice %304 {offsets = [0, 96], sizes = [2, 32], strides = [1, 1]} : vector<2x128xf32> to vector<2x32xf32>
    %310 = arith.mulf %307, %274 : vector<2x32xf32>
    %311 = arith.mulf %306, %308 : vector<2x32xf32>
    %312 = arith.addf %310, %311 : vector<2x32xf32>
    %313 = math.tanh %312 : vector<2x32xf32>
    %314 = arith.mulf %309, %313 : vector<2x32xf32>
    %c14_98 = arith.constant 14 : index
    %c0_99 = arith.constant 0 : index
    %315 = vector.load %arg15[%c14_98, %c0_99] : memref<16x64xf32, #tpu.memory_space<vmem>>, vector<2x32xf32>
    tpu.vector_store %arg15[%c14_98, %c0_99], %297 {strides = array<i32>} : memref<16x64xf32, #tpu.memory_space<vmem>>, vector<2x32xf32>,
    %c0_100 = arith.constant 0 : index
    %c32_101 = arith.constant 32 : index
    %316 = vector.load %arg15[%c0_100, %c32_101] : memref<16x64xf32, #tpu.memory_space<vmem>>, vector<2x32xf32>
    tpu.vector_store %arg15[%c0_100, %c32_101], %314 {strides = array<i32>} : memref<16x64xf32, #tpu.memory_space<vmem>>, vector<2x32xf32>,
    %c0_102 = arith.constant 0 : index
    %c0_103 = arith.constant 0 : index
    %317 = vector.load %arg15[%c0_102, %c0_103] : memref<16x64xf32, #tpu.memory_space<vmem>>, vector<16x64xf32>
    %c0_104 = arith.constant 0 : index
    %c0_105 = arith.constant 0 : index
    %318 = vector.load %arg5[%c0_104, %c0_105] : memref<64x512xf32, #tpu.memory_space<vmem>>, vector<64x512xf32>
    %cst_106 = arith.constant dense<0.000000e+00> : vector<16x512xf32>
    %319 = tpu.matmul %317, %318, %cst_106 {dimension_numbers = #tpu.dot_dimension_numbers<[1], [0], [0], [1], [0, 0, 1, 1], [], []>} : vector<16x64xf32>, vector<64x512xf32>, vector<16x512xf32> -> vector<16x512xf32>
    %c0_107 = arith.constant 0 : index
    %c0_108 = arith.constant 0 : index
    %320 = vector.load %arg6[%c0_107, %c0_108] : memref<1x512xf32, #tpu.memory_space<vmem>>, vector<1x512xf32>
    %321 = vector.broadcast %320 : vector<1x512xf32> to vector<16x512xf32>
    %322 = arith.addf %319, %321 : vector<16x512xf32>
    %c0_109 = arith.constant 0 : index
    %c0_110 = arith.constant 0 : index
    %323 = vector.load %arg7[%c0_109, %c0_110] : memref<512x256xf32, #tpu.memory_space<vmem>>, vector<512x256xf32>
    %cst_111 = arith.constant dense<0.000000e+00> : vector<16x256xf32>
    %324 = tpu.matmul %322, %323, %cst_111 {dimension_numbers = #tpu.dot_dimension_numbers<[1], [0], [0], [1], [0, 0, 1, 1], [], []>} : vector<16x512xf32>, vector<512x256xf32>, vector<16x256xf32> -> vector<16x256xf32>
    %c0_112 = arith.constant 0 : index
    %c0_113 = arith.constant 0 : index
    %325 = vector.load %arg10[%c0_112, %c0_113] : memref<1x256xf32, #tpu.memory_space<vmem>>, vector<1x256xf32>
    %326 = vector.broadcast %325 : vector<1x256xf32> to vector<16x256xf32>
    %327 = arith.addf %324, %326 : vector<16x256xf32>
    %c0_114 = arith.constant 0 : index
    %c0_115 = arith.constant 0 : index
    %328 = vector.load %arg16[%c0_114, %c0_115] : memref<16x256xf32, #tpu.memory_space<vmem>>, vector<16x256xf32>
    tpu.vector_store %arg16[%c0_114, %c0_115], %327 {strides = array<i32>} : memref<16x256xf32, #tpu.memory_space<vmem>>, vector<16x256xf32>,
    %c0_116 = arith.constant 0 : index
    %c0_117 = arith.constant 0 : index
    %329 = vector.load %arg8[%c0_116, %c0_117] : memref<32x128xf32, #tpu.memory_space<vmem>>, vector<32x128xf32>
    %c0_118 = arith.constant 0 : index
    %c0_119 = arith.constant 0 : index
    %330 = vector.load %arg9[%c0_118, %c0_119] : memref<32x128xf32, #tpu.memory_space<vmem>>, vector<32x128xf32>
    %cst_120 = arith.constant 0.000000e+00 : f32
    %331 = vector.broadcast %cst_120 : f32 to vector<2x32xf32>
    %cst_121 = arith.constant 0.000000e+00 : f32
    %332 = vector.broadcast %cst_121 : f32 to vector<2x32xf32>
    %cst_122 = arith.constant 0.000000e+00 : f32
    %333 = vector.broadcast %cst_122 : f32 to vector<2x32xf32>
    %cst_123 = arith.constant 0.000000e+00 : f32
    %334 = vector.broadcast %cst_123 : f32 to vector<2x32xf32>
    %c0_124 = arith.constant 0 : index
    %c0_125 = arith.constant 0 : index
    %335 = vector.load %arg16[%c0_124, %c0_125] : memref<16x256xf32, #tpu.memory_space<vmem>>, vector<2x128xf32>
    %c14_126 = arith.constant 14 : index
    %c128_127 = arith.constant 128 : index
    %336 = vector.load %arg16[%c14_126, %c128_127] : memref<16x256xf32, #tpu.memory_space<vmem>>, vector<2x128xf32>
    %cst_128 = arith.constant dense<0.000000e+00> : vector<2x128xf32>
    %337 = tpu.matmul %331, %329, %cst_128 {dimension_numbers = #tpu.dot_dimension_numbers<[1], [0], [0], [1], [0, 0, 1, 1], [], []>} : vector<2x32xf32>, vector<32x128xf32>, vector<2x128xf32> -> vector<2x128xf32>
    %338 = arith.addf %335, %337 : vector<2x128xf32>
    %339 = arith.negf %338 : vector<2x128xf32>
    %340 = math.exp %339 : vector<2x128xf32>
    %cst_129 = arith.constant 1.000000e+00 : f32
    %341 = vector.broadcast %cst_129 : f32 to vector<2x128xf32>
    %342 = arith.addf %341, %340 : vector<2x128xf32>
    %343 = arith.divf %341, %342 : vector<2x128xf32>
    %344 = math.tanh %338 : vector<2x128xf32>
    %345 = vector.extract_strided_slice %343 {offsets = [0, 0], sizes = [2, 32], strides = [1, 1]} : vector<2x128xf32> to vector<2x32xf32>
    %346 = vector.extract_strided_slice %343 {offsets = [0, 32], sizes = [2, 32], strides = [1, 1]} : vector<2x128xf32> to vector<2x32xf32>
    %347 = vector.extract_strided_slice %344 {offsets = [0, 64], sizes = [2, 32], strides = [1, 1]} : vector<2x128xf32> to vector<2x32xf32>
    %348 = vector.extract_strided_slice %343 {offsets = [0, 96], sizes = [2, 32], strides = [1, 1]} : vector<2x128xf32> to vector<2x32xf32>
    %349 = arith.mulf %346, %332 : vector<2x32xf32>
    %350 = arith.mulf %345, %347 : vector<2x32xf32>
    %351 = arith.addf %349, %350 : vector<2x32xf32>
    %352 = math.tanh %351 : vector<2x32xf32>
    %353 = arith.mulf %348, %352 : vector<2x32xf32>
    %cst_130 = arith.constant dense<0.000000e+00> : vector<2x128xf32>
    %354 = tpu.matmul %333, %330, %cst_130 {dimension_numbers = #tpu.dot_dimension_numbers<[1], [0], [0], [1], [0, 0, 1, 1], [], []>} : vector<2x32xf32>, vector<32x128xf32>, vector<2x128xf32> -> vector<2x128xf32>
    %355 = arith.addf %336, %354 : vector<2x128xf32>
    %356 = arith.negf %355 : vector<2x128xf32>
    %357 = math.exp %356 : vector<2x128xf32>
    %cst_131 = arith.constant 1.000000e+00 : f32
    %358 = vector.broadcast %cst_131 : f32 to vector<2x128xf32>
    %359 = arith.addf %358, %357 : vector<2x128xf32>
    %360 = arith.divf %358, %359 : vector<2x128xf32>
    %361 = math.tanh %355 : vector<2x128xf32>
    %362 = vector.extract_strided_slice %360 {offsets = [0, 0], sizes = [2, 32], strides = [1, 1]} : vector<2x128xf32> to vector<2x32xf32>
    %363 = vector.extract_strided_slice %360 {offsets = [0, 32], sizes = [2, 32], strides = [1, 1]} : vector<2x128xf32> to vector<2x32xf32>
    %364 = vector.extract_strided_slice %361 {offsets = [0, 64], sizes = [2, 32], strides = [1, 1]} : vector<2x128xf32> to vector<2x32xf32>
    %365 = vector.extract_strided_slice %360 {offsets = [0, 96], sizes = [2, 32], strides = [1, 1]} : vector<2x128xf32> to vector<2x32xf32>
    %366 = arith.mulf %363, %334 : vector<2x32xf32>
    %367 = arith.mulf %362, %364 : vector<2x32xf32>
    %368 = arith.addf %366, %367 : vector<2x32xf32>
    %369 = math.tanh %368 : vector<2x32xf32>
    %370 = arith.mulf %365, %369 : vector<2x32xf32>
    %c0_132 = arith.constant 0 : index
    %c0_133 = arith.constant 0 : index
    %371 = vector.load %arg17[%c0_132, %c0_133] : memref<16x64xf32, #tpu.memory_space<vmem>>, vector<2x32xf32>
    tpu.vector_store %arg17[%c0_132, %c0_133], %353 {strides = array<i32>} : memref<16x64xf32, #tpu.memory_space<vmem>>, vector<2x32xf32>,
    %c14_134 = arith.constant 14 : index
    %c32_135 = arith.constant 32 : index
    %372 = vector.load %arg17[%c14_134, %c32_135] : memref<16x64xf32, #tpu.memory_space<vmem>>, vector<2x32xf32>
    tpu.vector_store %arg17[%c14_134, %c32_135], %370 {strides = array<i32>} : memref<16x64xf32, #tpu.memory_space<vmem>>, vector<2x32xf32>,
    %c2_136 = arith.constant 2 : index
    %c0_137 = arith.constant 0 : index
    %373 = vector.load %arg16[%c2_136, %c0_137] : memref<16x256xf32, #tpu.memory_space<vmem>>, vector<2x128xf32>
    %c12_138 = arith.constant 12 : index
    %c128_139 = arith.constant 128 : index
    %374 = vector.load %arg16[%c12_138, %c128_139] : memref<16x256xf32, #tpu.memory_space<vmem>>, vector<2x128xf32>
    %cst_140 = arith.constant dense<0.000000e+00> : vector<2x128xf32>
    %375 = tpu.matmul %353, %329, %cst_140 {dimension_numbers = #tpu.dot_dimension_numbers<[1], [0], [0], [1], [0, 0, 1, 1], [], []>} : vector<2x32xf32>, vector<32x128xf32>, vector<2x128xf32> -> vector<2x128xf32>
    %376 = arith.addf %373, %375 : vector<2x128xf32>
    %377 = arith.negf %376 : vector<2x128xf32>
    %378 = math.exp %377 : vector<2x128xf32>
    %cst_141 = arith.constant 1.000000e+00 : f32
    %379 = vector.broadcast %cst_141 : f32 to vector<2x128xf32>
    %380 = arith.addf %379, %378 : vector<2x128xf32>
    %381 = arith.divf %379, %380 : vector<2x128xf32>
    %382 = math.tanh %376 : vector<2x128xf32>
    %383 = vector.extract_strided_slice %381 {offsets = [0, 0], sizes = [2, 32], strides = [1, 1]} : vector<2x128xf32> to vector<2x32xf32>
    %384 = vector.extract_strided_slice %381 {offsets = [0, 32], sizes = [2, 32], strides = [1, 1]} : vector<2x128xf32> to vector<2x32xf32>
    %385 = vector.extract_strided_slice %382 {offsets = [0, 64], sizes = [2, 32], strides = [1, 1]} : vector<2x128xf32> to vector<2x32xf32>
    %386 = vector.extract_strided_slice %381 {offsets = [0, 96], sizes = [2, 32], strides = [1, 1]} : vector<2x128xf32> to vector<2x32xf32>
    %387 = arith.mulf %384, %351 : vector<2x32xf32>
    %388 = arith.mulf %383, %385 : vector<2x32xf32>
    %389 = arith.addf %387, %388 : vector<2x32xf32>
    %390 = math.tanh %389 : vector<2x32xf32>
    %391 = arith.mulf %386, %390 : vector<2x32xf32>
    %cst_142 = arith.constant dense<0.000000e+00> : vector<2x128xf32>
    %392 = tpu.matmul %370, %330, %cst_142 {dimension_numbers = #tpu.dot_dimension_numbers<[1], [0], [0], [1], [0, 0, 1, 1], [], []>} : vector<2x32xf32>, vector<32x128xf32>, vector<2x128xf32> -> vector<2x128xf32>
    %393 = arith.addf %374, %392 : vector<2x128xf32>
    %394 = arith.negf %393 : vector<2x128xf32>
    %395 = math.exp %394 : vector<2x128xf32>
    %cst_143 = arith.constant 1.000000e+00 : f32
    %396 = vector.broadcast %cst_143 : f32 to vector<2x128xf32>
    %397 = arith.addf %396, %395 : vector<2x128xf32>
    %398 = arith.divf %396, %397 : vector<2x128xf32>
    %399 = math.tanh %393 : vector<2x128xf32>
    %400 = vector.extract_strided_slice %398 {offsets = [0, 0], sizes = [2, 32], strides = [1, 1]} : vector<2x128xf32> to vector<2x32xf32>
    %401 = vector.extract_strided_slice %398 {offsets = [0, 32], sizes = [2, 32], strides = [1, 1]} : vector<2x128xf32> to vector<2x32xf32>
    %402 = vector.extract_strided_slice %399 {offsets = [0, 64], sizes = [2, 32], strides = [1, 1]} : vector<2x128xf32> to vector<2x32xf32>
    %403 = vector.extract_strided_slice %398 {offsets = [0, 96], sizes = [2, 32], strides = [1, 1]} : vector<2x128xf32> to vector<2x32xf32>
    %404 = arith.mulf %401, %368 : vector<2x32xf32>
    %405 = arith.mulf %400, %402 : vector<2x32xf32>
    %406 = arith.addf %404, %405 : vector<2x32xf32>
    %407 = math.tanh %406 : vector<2x32xf32>
    %408 = arith.mulf %403, %407 : vector<2x32xf32>
    %c2_144 = arith.constant 2 : index
    %c0_145 = arith.constant 0 : index
    %409 = vector.load %arg17[%c2_144, %c0_145] : memref<16x64xf32, #tpu.memory_space<vmem>>, vector<2x32xf32>
    tpu.vector_store %arg17[%c2_144, %c0_145], %391 {strides = array<i32>} : memref<16x64xf32, #tpu.memory_space<vmem>>, vector<2x32xf32>,
    %c12_146 = arith.constant 12 : index
    %c32_147 = arith.constant 32 : index
    %410 = vector.load %arg17[%c12_146, %c32_147] : memref<16x64xf32, #tpu.memory_space<vmem>>, vector<2x32xf32>
    tpu.vector_store %arg17[%c12_146, %c32_147], %408 {strides = array<i32>} : memref<16x64xf32, #tpu.memory_space<vmem>>, vector<2x32xf32>,
    %c4_148 = arith.constant 4 : index
    %c0_149 = arith.constant 0 : index
    %411 = vector.load %arg16[%c4_148, %c0_149] : memref<16x256xf32, #tpu.memory_space<vmem>>, vector<2x128xf32>
    %c10_150 = arith.constant 10 : index
    %c128_151 = arith.constant 128 : index
    %412 = vector.load %arg16[%c10_150, %c128_151] : memref<16x256xf32, #tpu.memory_space<vmem>>, vector<2x128xf32>
    %cst_152 = arith.constant dense<0.000000e+00> : vector<2x128xf32>
    %413 = tpu.matmul %391, %329, %cst_152 {dimension_numbers = #tpu.dot_dimension_numbers<[1], [0], [0], [1], [0, 0, 1, 1], [], []>} : vector<2x32xf32>, vector<32x128xf32>, vector<2x128xf32> -> vector<2x128xf32>
    %414 = arith.addf %411, %413 : vector<2x128xf32>
    %415 = arith.negf %414 : vector<2x128xf32>
    %416 = math.exp %415 : vector<2x128xf32>
    %cst_153 = arith.constant 1.000000e+00 : f32
    %417 = vector.broadcast %cst_153 : f32 to vector<2x128xf32>
    %418 = arith.addf %417, %416 : vector<2x128xf32>
    %419 = arith.divf %417, %418 : vector<2x128xf32>
    %420 = math.tanh %414 : vector<2x128xf32>
    %421 = vector.extract_strided_slice %419 {offsets = [0, 0], sizes = [2, 32], strides = [1, 1]} : vector<2x128xf32> to vector<2x32xf32>
    %422 = vector.extract_strided_slice %419 {offsets = [0, 32], sizes = [2, 32], strides = [1, 1]} : vector<2x128xf32> to vector<2x32xf32>
    %423 = vector.extract_strided_slice %420 {offsets = [0, 64], sizes = [2, 32], strides = [1, 1]} : vector<2x128xf32> to vector<2x32xf32>
    %424 = vector.extract_strided_slice %419 {offsets = [0, 96], sizes = [2, 32], strides = [1, 1]} : vector<2x128xf32> to vector<2x32xf32>
    %425 = arith.mulf %422, %389 : vector<2x32xf32>
    %426 = arith.mulf %421, %423 : vector<2x32xf32>
    %427 = arith.addf %425, %426 : vector<2x32xf32>
    %428 = math.tanh %427 : vector<2x32xf32>
    %429 = arith.mulf %424, %428 : vector<2x32xf32>
    %cst_154 = arith.constant dense<0.000000e+00> : vector<2x128xf32>
    %430 = tpu.matmul %408, %330, %cst_154 {dimension_numbers = #tpu.dot_dimension_numbers<[1], [0], [0], [1], [0, 0, 1, 1], [], []>} : vector<2x32xf32>, vector<32x128xf32>, vector<2x128xf32> -> vector<2x128xf32>
    %431 = arith.addf %412, %430 : vector<2x128xf32>
    %432 = arith.negf %431 : vector<2x128xf32>
    %433 = math.exp %432 : vector<2x128xf32>
    %cst_155 = arith.constant 1.000000e+00 : f32
    %434 = vector.broadcast %cst_155 : f32 to vector<2x128xf32>
    %435 = arith.addf %434, %433 : vector<2x128xf32>
    %436 = arith.divf %434, %435 : vector<2x128xf32>
    %437 = math.tanh %431 : vector<2x128xf32>
    %438 = vector.extract_strided_slice %436 {offsets = [0, 0], sizes = [2, 32], strides = [1, 1]} : vector<2x128xf32> to vector<2x32xf32>
    %439 = vector.extract_strided_slice %436 {offsets = [0, 32], sizes = [2, 32], strides = [1, 1]} : vector<2x128xf32> to vector<2x32xf32>
    %440 = vector.extract_strided_slice %437 {offsets = [0, 64], sizes = [2, 32], strides = [1, 1]} : vector<2x128xf32> to vector<2x32xf32>
    %441 = vector.extract_strided_slice %436 {offsets = [0, 96], sizes = [2, 32], strides = [1, 1]} : vector<2x128xf32> to vector<2x32xf32>
    %442 = arith.mulf %439, %406 : vector<2x32xf32>
    %443 = arith.mulf %438, %440 : vector<2x32xf32>
    %444 = arith.addf %442, %443 : vector<2x32xf32>
    %445 = math.tanh %444 : vector<2x32xf32>
    %446 = arith.mulf %441, %445 : vector<2x32xf32>
    %c4_156 = arith.constant 4 : index
    %c0_157 = arith.constant 0 : index
    %447 = vector.load %arg17[%c4_156, %c0_157] : memref<16x64xf32, #tpu.memory_space<vmem>>, vector<2x32xf32>
    tpu.vector_store %arg17[%c4_156, %c0_157], %429 {strides = array<i32>} : memref<16x64xf32, #tpu.memory_space<vmem>>, vector<2x32xf32>,
    %c10_158 = arith.constant 10 : index
    %c32_159 = arith.constant 32 : index
    %448 = vector.load %arg17[%c10_158, %c32_159] : memref<16x64xf32, #tpu.memory_space<vmem>>, vector<2x32xf32>
    tpu.vector_store %arg17[%c10_158, %c32_159], %446 {strides = array<i32>} : memref<16x64xf32, #tpu.memory_space<vmem>>, vector<2x32xf32>,
    %c6_160 = arith.constant 6 : index
    %c0_161 = arith.constant 0 : index
    %449 = vector.load %arg16[%c6_160, %c0_161] : memref<16x256xf32, #tpu.memory_space<vmem>>, vector<2x128xf32>
    %c8_162 = arith.constant 8 : index
    %c128_163 = arith.constant 128 : index
    %450 = vector.load %arg16[%c8_162, %c128_163] : memref<16x256xf32, #tpu.memory_space<vmem>>, vector<2x128xf32>
    %cst_164 = arith.constant dense<0.000000e+00> : vector<2x128xf32>
    %451 = tpu.matmul %429, %329, %cst_164 {dimension_numbers = #tpu.dot_dimension_numbers<[1], [0], [0], [1], [0, 0, 1, 1], [], []>} : vector<2x32xf32>, vector<32x128xf32>, vector<2x128xf32> -> vector<2x128xf32>
    %452 = arith.addf %449, %451 : vector<2x128xf32>
    %453 = arith.negf %452 : vector<2x128xf32>
    %454 = math.exp %453 : vector<2x128xf32>
    %cst_165 = arith.constant 1.000000e+00 : f32
    %455 = vector.broadcast %cst_165 : f32 to vector<2x128xf32>
    %456 = arith.addf %455, %454 : vector<2x128xf32>
    %457 = arith.divf %455, %456 : vector<2x128xf32>
    %458 = math.tanh %452 : vector<2x128xf32>
    %459 = vector.extract_strided_slice %457 {offsets = [0, 0], sizes = [2, 32], strides = [1, 1]} : vector<2x128xf32> to vector<2x32xf32>
    %460 = vector.extract_strided_slice %457 {offsets = [0, 32], sizes = [2, 32], strides = [1, 1]} : vector<2x128xf32> to vector<2x32xf32>
    %461 = vector.extract_strided_slice %458 {offsets = [0, 64], sizes = [2, 32], strides = [1, 1]} : vector<2x128xf32> to vector<2x32xf32>
    %462 = vector.extract_strided_slice %457 {offsets = [0, 96], sizes = [2, 32], strides = [1, 1]} : vector<2x128xf32> to vector<2x32xf32>
    %463 = arith.mulf %460, %427 : vector<2x32xf32>
    %464 = arith.mulf %459, %461 : vector<2x32xf32>
    %465 = arith.addf %463, %464 : vector<2x32xf32>
    %466 = math.tanh %465 : vector<2x32xf32>
    %467 = arith.mulf %462, %466 : vector<2x32xf32>
    %cst_166 = arith.constant dense<0.000000e+00> : vector<2x128xf32>
    %468 = tpu.matmul %446, %330, %cst_166 {dimension_numbers = #tpu.dot_dimension_numbers<[1], [0], [0], [1], [0, 0, 1, 1], [], []>} : vector<2x32xf32>, vector<32x128xf32>, vector<2x128xf32> -> vector<2x128xf32>
    %469 = arith.addf %450, %468 : vector<2x128xf32>
    %470 = arith.negf %469 : vector<2x128xf32>
    %471 = math.exp %470 : vector<2x128xf32>
    %cst_167 = arith.constant 1.000000e+00 : f32
    %472 = vector.broadcast %cst_167 : f32 to vector<2x128xf32>
    %473 = arith.addf %472, %471 : vector<2x128xf32>
    %474 = arith.divf %472, %473 : vector<2x128xf32>
    %475 = math.tanh %469 : vector<2x128xf32>
    %476 = vector.extract_strided_slice %474 {offsets = [0, 0], sizes = [2, 32], strides = [1, 1]} : vector<2x128xf32> to vector<2x32xf32>
    %477 = vector.extract_strided_slice %474 {offsets = [0, 32], sizes = [2, 32], strides = [1, 1]} : vector<2x128xf32> to vector<2x32xf32>
    %478 = vector.extract_strided_slice %475 {offsets = [0, 64], sizes = [2, 32], strides = [1, 1]} : vector<2x128xf32> to vector<2x32xf32>
    %479 = vector.extract_strided_slice %474 {offsets = [0, 96], sizes = [2, 32], strides = [1, 1]} : vector<2x128xf32> to vector<2x32xf32>
    %480 = arith.mulf %477, %444 : vector<2x32xf32>
    %481 = arith.mulf %476, %478 : vector<2x32xf32>
    %482 = arith.addf %480, %481 : vector<2x32xf32>
    %483 = math.tanh %482 : vector<2x32xf32>
    %484 = arith.mulf %479, %483 : vector<2x32xf32>
    %c6_168 = arith.constant 6 : index
    %c0_169 = arith.constant 0 : index
    %485 = vector.load %arg17[%c6_168, %c0_169] : memref<16x64xf32, #tpu.memory_space<vmem>>, vector<2x32xf32>
    tpu.vector_store %arg17[%c6_168, %c0_169], %467 {strides = array<i32>} : memref<16x64xf32, #tpu.memory_space<vmem>>, vector<2x32xf32>,
    %c8_170 = arith.constant 8 : index
    %c32_171 = arith.constant 32 : index
    %486 = vector.load %arg17[%c8_170, %c32_171] : memref<16x64xf32, #tpu.memory_space<vmem>>, vector<2x32xf32>
    tpu.vector_store %arg17[%c8_170, %c32_171], %484 {strides = array<i32>} : memref<16x64xf32, #tpu.memory_space<vmem>>, vector<2x32xf32>,
    %c8_172 = arith.constant 8 : index
    %c0_173 = arith.constant 0 : index
    %487 = vector.load %arg16[%c8_172, %c0_173] : memref<16x256xf32, #tpu.memory_space<vmem>>, vector<2x128xf32>
    %c6_174 = arith.constant 6 : index
    %c128_175 = arith.constant 128 : index
    %488 = vector.load %arg16[%c6_174, %c128_175] : memref<16x256xf32, #tpu.memory_space<vmem>>, vector<2x128xf32>
    %cst_176 = arith.constant dense<0.000000e+00> : vector<2x128xf32>
    %489 = tpu.matmul %467, %329, %cst_176 {dimension_numbers = #tpu.dot_dimension_numbers<[1], [0], [0], [1], [0, 0, 1, 1], [], []>} : vector<2x32xf32>, vector<32x128xf32>, vector<2x128xf32> -> vector<2x128xf32>
    %490 = arith.addf %487, %489 : vector<2x128xf32>
    %491 = arith.negf %490 : vector<2x128xf32>
    %492 = math.exp %491 : vector<2x128xf32>
    %cst_177 = arith.constant 1.000000e+00 : f32
    %493 = vector.broadcast %cst_177 : f32 to vector<2x128xf32>
    %494 = arith.addf %493, %492 : vector<2x128xf32>
    %495 = arith.divf %493, %494 : vector<2x128xf32>
    %496 = math.tanh %490 : vector<2x128xf32>
    %497 = vector.extract_strided_slice %495 {offsets = [0, 0], sizes = [2, 32], strides = [1, 1]} : vector<2x128xf32> to vector<2x32xf32>
    %498 = vector.extract_strided_slice %495 {offsets = [0, 32], sizes = [2, 32], strides = [1, 1]} : vector<2x128xf32> to vector<2x32xf32>
    %499 = vector.extract_strided_slice %496 {offsets = [0, 64], sizes = [2, 32], strides = [1, 1]} : vector<2x128xf32> to vector<2x32xf32>
    %500 = vector.extract_strided_slice %495 {offsets = [0, 96], sizes = [2, 32], strides = [1, 1]} : vector<2x128xf32> to vector<2x32xf32>
    %501 = arith.mulf %498, %465 : vector<2x32xf32>
    %502 = arith.mulf %497, %499 : vector<2x32xf32>
    %503 = arith.addf %501, %502 : vector<2x32xf32>
    %504 = math.tanh %503 : vector<2x32xf32>
    %505 = arith.mulf %500, %504 : vector<2x32xf32>
    %cst_178 = arith.constant dense<0.000000e+00> : vector<2x128xf32>
    %506 = tpu.matmul %484, %330, %cst_178 {dimension_numbers = #tpu.dot_dimension_numbers<[1], [0], [0], [1], [0, 0, 1, 1], [], []>} : vector<2x32xf32>, vector<32x128xf32>, vector<2x128xf32> -> vector<2x128xf32>
    %507 = arith.addf %488, %506 : vector<2x128xf32>
    %508 = arith.negf %507 : vector<2x128xf32>
    %509 = math.exp %508 : vector<2x128xf32>
    %cst_179 = arith.constant 1.000000e+00 : f32
    %510 = vector.broadcast %cst_179 : f32 to vector<2x128xf32>
    %511 = arith.addf %510, %509 : vector<2x128xf32>
    %512 = arith.divf %510, %511 : vector<2x128xf32>
    %513 = math.tanh %507 : vector<2x128xf32>
    %514 = vector.extract_strided_slice %512 {offsets = [0, 0], sizes = [2, 32], strides = [1, 1]} : vector<2x128xf32> to vector<2x32xf32>
    %515 = vector.extract_strided_slice %512 {offsets = [0, 32], sizes = [2, 32], strides = [1, 1]} : vector<2x128xf32> to vector<2x32xf32>
    %516 = vector.extract_strided_slice %513 {offsets = [0, 64], sizes = [2, 32], strides = [1, 1]} : vector<2x128xf32> to vector<2x32xf32>
    %517 = vector.extract_strided_slice %512 {offsets = [0, 96], sizes = [2, 32], strides = [1, 1]} : vector<2x128xf32> to vector<2x32xf32>
    %518 = arith.mulf %515, %482 : vector<2x32xf32>
    %519 = arith.mulf %514, %516 : vector<2x32xf32>
    %520 = arith.addf %518, %519 : vector<2x32xf32>
    %521 = math.tanh %520 : vector<2x32xf32>
    %522 = arith.mulf %517, %521 : vector<2x32xf32>
    %c8_180 = arith.constant 8 : index
    %c0_181 = arith.constant 0 : index
    %523 = vector.load %arg17[%c8_180, %c0_181] : memref<16x64xf32, #tpu.memory_space<vmem>>, vector<2x32xf32>
    tpu.vector_store %arg17[%c8_180, %c0_181], %505 {strides = array<i32>} : memref<16x64xf32, #tpu.memory_space<vmem>>, vector<2x32xf32>,
    %c6_182 = arith.constant 6 : index
    %c32_183 = arith.constant 32 : index
    %524 = vector.load %arg17[%c6_182, %c32_183] : memref<16x64xf32, #tpu.memory_space<vmem>>, vector<2x32xf32>
    tpu.vector_store %arg17[%c6_182, %c32_183], %522 {strides = array<i32>} : memref<16x64xf32, #tpu.memory_space<vmem>>, vector<2x32xf32>,
    %c10_184 = arith.constant 10 : index
    %c0_185 = arith.constant 0 : index
    %525 = vector.load %arg16[%c10_184, %c0_185] : memref<16x256xf32, #tpu.memory_space<vmem>>, vector<2x128xf32>
    %c4_186 = arith.constant 4 : index
    %c128_187 = arith.constant 128 : index
    %526 = vector.load %arg16[%c4_186, %c128_187] : memref<16x256xf32, #tpu.memory_space<vmem>>, vector<2x128xf32>
    %cst_188 = arith.constant dense<0.000000e+00> : vector<2x128xf32>
    %527 = tpu.matmul %505, %329, %cst_188 {dimension_numbers = #tpu.dot_dimension_numbers<[1], [0], [0], [1], [0, 0, 1, 1], [], []>} : vector<2x32xf32>, vector<32x128xf32>, vector<2x128xf32> -> vector<2x128xf32>
    %528 = arith.addf %525, %527 : vector<2x128xf32>
    %529 = arith.negf %528 : vector<2x128xf32>
    %530 = math.exp %529 : vector<2x128xf32>
    %cst_189 = arith.constant 1.000000e+00 : f32
    %531 = vector.broadcast %cst_189 : f32 to vector<2x128xf32>
    %532 = arith.addf %531, %530 : vector<2x128xf32>
    %533 = arith.divf %531, %532 : vector<2x128xf32>
    %534 = math.tanh %528 : vector<2x128xf32>
    %535 = vector.extract_strided_slice %533 {offsets = [0, 0], sizes = [2, 32], strides = [1, 1]} : vector<2x128xf32> to vector<2x32xf32>
    %536 = vector.extract_strided_slice %533 {offsets = [0, 32], sizes = [2, 32], strides = [1, 1]} : vector<2x128xf32> to vector<2x32xf32>
    %537 = vector.extract_strided_slice %534 {offsets = [0, 64], sizes = [2, 32], strides = [1, 1]} : vector<2x128xf32> to vector<2x32xf32>
    %538 = vector.extract_strided_slice %533 {offsets = [0, 96], sizes = [2, 32], strides = [1, 1]} : vector<2x128xf32> to vector<2x32xf32>
    %539 = arith.mulf %536, %503 : vector<2x32xf32>
    %540 = arith.mulf %535, %537 : vector<2x32xf32>
    %541 = arith.addf %539, %540 : vector<2x32xf32>
    %542 = math.tanh %541 : vector<2x32xf32>
    %543 = arith.mulf %538, %542 : vector<2x32xf32>
    %cst_190 = arith.constant dense<0.000000e+00> : vector<2x128xf32>
    %544 = tpu.matmul %522, %330, %cst_190 {dimension_numbers = #tpu.dot_dimension_numbers<[1], [0], [0], [1], [0, 0, 1, 1], [], []>} : vector<2x32xf32>, vector<32x128xf32>, vector<2x128xf32> -> vector<2x128xf32>
    %545 = arith.addf %526, %544 : vector<2x128xf32>
    %546 = arith.negf %545 : vector<2x128xf32>
    %547 = math.exp %546 : vector<2x128xf32>
    %cst_191 = arith.constant 1.000000e+00 : f32
    %548 = vector.broadcast %cst_191 : f32 to vector<2x128xf32>
    %549 = arith.addf %548, %547 : vector<2x128xf32>
    %550 = arith.divf %548, %549 : vector<2x128xf32>
    %551 = math.tanh %545 : vector<2x128xf32>
    %552 = vector.extract_strided_slice %550 {offsets = [0, 0], sizes = [2, 32], strides = [1, 1]} : vector<2x128xf32> to vector<2x32xf32>
    %553 = vector.extract_strided_slice %550 {offsets = [0, 32], sizes = [2, 32], strides = [1, 1]} : vector<2x128xf32> to vector<2x32xf32>
    %554 = vector.extract_strided_slice %551 {offsets = [0, 64], sizes = [2, 32], strides = [1, 1]} : vector<2x128xf32> to vector<2x32xf32>
    %555 = vector.extract_strided_slice %550 {offsets = [0, 96], sizes = [2, 32], strides = [1, 1]} : vector<2x128xf32> to vector<2x32xf32>
    %556 = arith.mulf %553, %520 : vector<2x32xf32>
    %557 = arith.mulf %552, %554 : vector<2x32xf32>
    %558 = arith.addf %556, %557 : vector<2x32xf32>
    %559 = math.tanh %558 : vector<2x32xf32>
    %560 = arith.mulf %555, %559 : vector<2x32xf32>
    %c10_192 = arith.constant 10 : index
    %c0_193 = arith.constant 0 : index
    %561 = vector.load %arg17[%c10_192, %c0_193] : memref<16x64xf32, #tpu.memory_space<vmem>>, vector<2x32xf32>
    tpu.vector_store %arg17[%c10_192, %c0_193], %543 {strides = array<i32>} : memref<16x64xf32, #tpu.memory_space<vmem>>, vector<2x32xf32>,
    %c4_194 = arith.constant 4 : index
    %c32_195 = arith.constant 32 : index
    %562 = vector.load %arg17[%c4_194, %c32_195] : memref<16x64xf32, #tpu.memory_space<vmem>>, vector<2x32xf32>
    tpu.vector_store %arg17[%c4_194, %c32_195], %560 {strides = array<i32>} : memref<16x64xf32, #tpu.memory_space<vmem>>, vector<2x32xf32>,
    %c12_196 = arith.constant 12 : index
    %c0_197 = arith.constant 0 : index
    %563 = vector.load %arg16[%c12_196, %c0_197] : memref<16x256xf32, #tpu.memory_space<vmem>>, vector<2x128xf32>
    %c2_198 = arith.constant 2 : index
    %c128_199 = arith.constant 128 : index
    %564 = vector.load %arg16[%c2_198, %c128_199] : memref<16x256xf32, #tpu.memory_space<vmem>>, vector<2x128xf32>
    %cst_200 = arith.constant dense<0.000000e+00> : vector<2x128xf32>
    %565 = tpu.matmul %543, %329, %cst_200 {dimension_numbers = #tpu.dot_dimension_numbers<[1], [0], [0], [1], [0, 0, 1, 1], [], []>} : vector<2x32xf32>, vector<32x128xf32>, vector<2x128xf32> -> vector<2x128xf32>
    %566 = arith.addf %563, %565 : vector<2x128xf32>
    %567 = arith.negf %566 : vector<2x128xf32>
    %568 = math.exp %567 : vector<2x128xf32>
    %cst_201 = arith.constant 1.000000e+00 : f32
    %569 = vector.broadcast %cst_201 : f32 to vector<2x128xf32>
    %570 = arith.addf %569, %568 : vector<2x128xf32>
    %571 = arith.divf %569, %570 : vector<2x128xf32>
    %572 = math.tanh %566 : vector<2x128xf32>
    %573 = vector.extract_strided_slice %571 {offsets = [0, 0], sizes = [2, 32], strides = [1, 1]} : vector<2x128xf32> to vector<2x32xf32>
    %574 = vector.extract_strided_slice %571 {offsets = [0, 32], sizes = [2, 32], strides = [1, 1]} : vector<2x128xf32> to vector<2x32xf32>
    %575 = vector.extract_strided_slice %572 {offsets = [0, 64], sizes = [2, 32], strides = [1, 1]} : vector<2x128xf32> to vector<2x32xf32>
    %576 = vector.extract_strided_slice %571 {offsets = [0, 96], sizes = [2, 32], strides = [1, 1]} : vector<2x128xf32> to vector<2x32xf32>
    %577 = arith.mulf %574, %541 : vector<2x32xf32>
    %578 = arith.mulf %573, %575 : vector<2x32xf32>
    %579 = arith.addf %577, %578 : vector<2x32xf32>
    %580 = math.tanh %579 : vector<2x32xf32>
    %581 = arith.mulf %576, %580 : vector<2x32xf32>
    %cst_202 = arith.constant dense<0.000000e+00> : vector<2x128xf32>
    %582 = tpu.matmul %560, %330, %cst_202 {dimension_numbers = #tpu.dot_dimension_numbers<[1], [0], [0], [1], [0, 0, 1, 1], [], []>} : vector<2x32xf32>, vector<32x128xf32>, vector<2x128xf32> -> vector<2x128xf32>
    %583 = arith.addf %564, %582 : vector<2x128xf32>
    %584 = arith.negf %583 : vector<2x128xf32>
    %585 = math.exp %584 : vector<2x128xf32>
    %cst_203 = arith.constant 1.000000e+00 : f32
    %586 = vector.broadcast %cst_203 : f32 to vector<2x128xf32>
    %587 = arith.addf %586, %585 : vector<2x128xf32>
    %588 = arith.divf %586, %587 : vector<2x128xf32>
    %589 = math.tanh %583 : vector<2x128xf32>
    %590 = vector.extract_strided_slice %588 {offsets = [0, 0], sizes = [2, 32], strides = [1, 1]} : vector<2x128xf32> to vector<2x32xf32>
    %591 = vector.extract_strided_slice %588 {offsets = [0, 32], sizes = [2, 32], strides = [1, 1]} : vector<2x128xf32> to vector<2x32xf32>
    %592 = vector.extract_strided_slice %589 {offsets = [0, 64], sizes = [2, 32], strides = [1, 1]} : vector<2x128xf32> to vector<2x32xf32>
    %593 = vector.extract_strided_slice %588 {offsets = [0, 96], sizes = [2, 32], strides = [1, 1]} : vector<2x128xf32> to vector<2x32xf32>
    %594 = arith.mulf %591, %558 : vector<2x32xf32>
    %595 = arith.mulf %590, %592 : vector<2x32xf32>
    %596 = arith.addf %594, %595 : vector<2x32xf32>
    %597 = math.tanh %596 : vector<2x32xf32>
    %598 = arith.mulf %593, %597 : vector<2x32xf32>
    %c12_204 = arith.constant 12 : index
    %c0_205 = arith.constant 0 : index
    %599 = vector.load %arg17[%c12_204, %c0_205] : memref<16x64xf32, #tpu.memory_space<vmem>>, vector<2x32xf32>
    tpu.vector_store %arg17[%c12_204, %c0_205], %581 {strides = array<i32>} : memref<16x64xf32, #tpu.memory_space<vmem>>, vector<2x32xf32>,
    %c2_206 = arith.constant 2 : index
    %c32_207 = arith.constant 32 : index
    %600 = vector.load %arg17[%c2_206, %c32_207] : memref<16x64xf32, #tpu.memory_space<vmem>>, vector<2x32xf32>
    tpu.vector_store %arg17[%c2_206, %c32_207], %598 {strides = array<i32>} : memref<16x64xf32, #tpu.memory_space<vmem>>, vector<2x32xf32>,
    %c14_208 = arith.constant 14 : index
    %c0_209 = arith.constant 0 : index
    %601 = vector.load %arg16[%c14_208, %c0_209] : memref<16x256xf32, #tpu.memory_space<vmem>>, vector<2x128xf32>
    %c0_210 = arith.constant 0 : index
    %c128_211 = arith.constant 128 : index
    %602 = vector.load %arg16[%c0_210, %c128_211] : memref<16x256xf32, #tpu.memory_space<vmem>>, vector<2x128xf32>
    %cst_212 = arith.constant dense<0.000000e+00> : vector<2x128xf32>
    %603 = tpu.matmul %581, %329, %cst_212 {dimension_numbers = #tpu.dot_dimension_numbers<[1], [0], [0], [1], [0, 0, 1, 1], [], []>} : vector<2x32xf32>, vector<32x128xf32>, vector<2x128xf32> -> vector<2x128xf32>
    %604 = arith.addf %601, %603 : vector<2x128xf32>
    %605 = arith.negf %604 : vector<2x128xf32>
    %606 = math.exp %605 : vector<2x128xf32>
    %cst_213 = arith.constant 1.000000e+00 : f32
    %607 = vector.broadcast %cst_213 : f32 to vector<2x128xf32>
    %608 = arith.addf %607, %606 : vector<2x128xf32>
    %609 = arith.divf %607, %608 : vector<2x128xf32>
    %610 = math.tanh %604 : vector<2x128xf32>
    %611 = vector.extract_strided_slice %609 {offsets = [0, 0], sizes = [2, 32], strides = [1, 1]} : vector<2x128xf32> to vector<2x32xf32>
    %612 = vector.extract_strided_slice %609 {offsets = [0, 32], sizes = [2, 32], strides = [1, 1]} : vector<2x128xf32> to vector<2x32xf32>
    %613 = vector.extract_strided_slice %610 {offsets = [0, 64], sizes = [2, 32], strides = [1, 1]} : vector<2x128xf32> to vector<2x32xf32>
    %614 = vector.extract_strided_slice %609 {offsets = [0, 96], sizes = [2, 32], strides = [1, 1]} : vector<2x128xf32> to vector<2x32xf32>
    %615 = arith.mulf %612, %579 : vector<2x32xf32>
    %616 = arith.mulf %611, %613 : vector<2x32xf32>
    %617 = arith.addf %615, %616 : vector<2x32xf32>
    %618 = math.tanh %617 : vector<2x32xf32>
    %619 = arith.mulf %614, %618 : vector<2x32xf32>
    %cst_214 = arith.constant dense<0.000000e+00> : vector<2x128xf32>
    %620 = tpu.matmul %598, %330, %cst_214 {dimension_numbers = #tpu.dot_dimension_numbers<[1], [0], [0], [1], [0, 0, 1, 1], [], []>} : vector<2x32xf32>, vector<32x128xf32>, vector<2x128xf32> -> vector<2x128xf32>
    %621 = arith.addf %602, %620 : vector<2x128xf32>
    %622 = arith.negf %621 : vector<2x128xf32>
    %623 = math.exp %622 : vector<2x128xf32>
    %cst_215 = arith.constant 1.000000e+00 : f32
    %624 = vector.broadcast %cst_215 : f32 to vector<2x128xf32>
    %625 = arith.addf %624, %623 : vector<2x128xf32>
    %626 = arith.divf %624, %625 : vector<2x128xf32>
    %627 = math.tanh %621 : vector<2x128xf32>
    %628 = vector.extract_strided_slice %626 {offsets = [0, 0], sizes = [2, 32], strides = [1, 1]} : vector<2x128xf32> to vector<2x32xf32>
    %629 = vector.extract_strided_slice %626 {offsets = [0, 32], sizes = [2, 32], strides = [1, 1]} : vector<2x128xf32> to vector<2x32xf32>
    %630 = vector.extract_strided_slice %627 {offsets = [0, 64], sizes = [2, 32], strides = [1, 1]} : vector<2x128xf32> to vector<2x32xf32>
    %631 = vector.extract_strided_slice %626 {offsets = [0, 96], sizes = [2, 32], strides = [1, 1]} : vector<2x128xf32> to vector<2x32xf32>
    %632 = arith.mulf %629, %596 : vector<2x32xf32>
    %633 = arith.mulf %628, %630 : vector<2x32xf32>
    %634 = arith.addf %632, %633 : vector<2x32xf32>
    %635 = math.tanh %634 : vector<2x32xf32>
    %636 = arith.mulf %631, %635 : vector<2x32xf32>
    %c14_216 = arith.constant 14 : index
    %c0_217 = arith.constant 0 : index
    %637 = vector.load %arg17[%c14_216, %c0_217] : memref<16x64xf32, #tpu.memory_space<vmem>>, vector<2x32xf32>
    tpu.vector_store %arg17[%c14_216, %c0_217], %619 {strides = array<i32>} : memref<16x64xf32, #tpu.memory_space<vmem>>, vector<2x32xf32>,
    %c0_218 = arith.constant 0 : index
    %c32_219 = arith.constant 32 : index
    %638 = vector.load %arg17[%c0_218, %c32_219] : memref<16x64xf32, #tpu.memory_space<vmem>>, vector<2x32xf32>
    tpu.vector_store %arg17[%c0_218, %c32_219], %636 {strides = array<i32>} : memref<16x64xf32, #tpu.memory_space<vmem>>, vector<2x32xf32>,
    %c0_220 = arith.constant 0 : index
    %c0_221 = arith.constant 0 : index
    %639 = vector.load %arg17[%c0_220, %c0_221] : memref<16x64xf32, #tpu.memory_space<vmem>>, vector<16x64xf32>
    %c0_222 = arith.constant 0 : index
    %c0_223 = arith.constant 0 : index
    %640 = vector.load %arg11[%c0_222, %c0_223] : memref<64x128xf32, #tpu.memory_space<vmem>>, vector<64x128xf32>
    %cst_224 = arith.constant dense<0.000000e+00> : vector<16x128xf32>
    %641 = tpu.matmul %639, %640, %cst_224 {dimension_numbers = #tpu.dot_dimension_numbers<[1], [0], [0], [1], [0, 0, 1, 1], [], []>} : vector<16x64xf32>, vector<64x128xf32>, vector<16x128xf32> -> vector<16x128xf32>
    %c0_225 = arith.constant 0 : index
    %c0_226 = arith.constant 0 : index
    %642 = vector.load %arg12[%c0_225, %c0_226] : memref<1x128xf32, #tpu.memory_space<vmem>>, vector<1x128xf32>
    %643 = vector.broadcast %642 : vector<1x128xf32> to vector<16x128xf32>
    %644 = arith.addf %641, %643 : vector<16x128xf32>
    %c0_227 = arith.constant 0 : index
    %c0_228 = arith.constant 0 : index
    %645 = vector.load %arg13[%c0_227, %c0_228] : memref<16x128xf32, #tpu.memory_space<vmem>>, vector<16x128xf32>
    tpu.vector_store %arg13[%c0_227, %c0_228], %644 {strides = array<i32>} : memref<16x128xf32, #tpu.memory_space<vmem>>, vector<16x128xf32>,
    return
  }
}

</mosaic_0001>

<bundles_post_ra>
// kernel: rnn_forward.1
= control target key start
LH: loop header
LB: loop body
LE: loop exit
PB: predicated region body
PF: predicated region fallthrough
CT: control target
= control target key end

     0   :  { %v5932_v7 = vmov 0.0|0.0   ;;  %vm5933_vm0 = vmmov 0   ;;  %v5934_v21 = vmov 0.0   ;;  %s7677_s0 = inlined_call_operand.vmem [shape: f32[16,512], index: 0, kind: input, shape index: {}]   ;;  %s7678_s1 = inlined_call_operand.vmem [shape: f32[512,256], index: 1, kind: input, shape index: {}]   ;;  %s7679_s2 = inlined_call_operand.vmem [shape: f32[32,128], index: 2, kind: input, shape index: {}]   ;;  %s7680_s3 = inlined_call_operand.vmem [shape: f32[32,128], index: 3, kind: input, shape index: {}]   ;;  %s7681_s4 = inlined_call_operand.vmem [shape: f32[1,256], index: 4, kind: input, shape index: {}]   ;;  %s7682_s5 = inlined_call_operand.vmem [shape: f32[64,512], index: 5, kind: input, shape index: {}]   ;;  %s7683_s6 = inlined_call_operand.vmem [shape: f32[1,512], index: 6, kind: input, shape index: {}]   ;;  %s7684_s7 = inlined_call_operand.vmem [shape: f32[512,256], index: 7, kind: input, shape index: {}]   ;;  %s7685_s8 = inlined_call_operand.vmem [shape: f32[32,128], index: 8, kind: input, shape index: {}]   ;;  %s7686_s9 = inlined_call_operand.vmem [shape: f32[32,128], index: 9, kind: input, shape index: {}]   ;;  %s7687_s10 = inlined_call_operand.vmem [shape: f32[1,256], index: 10, kind: input, shape index: {}]   ;;  %s7688_s11 = inlined_call_operand.vmem [shape: f32[64,128], index: 11, kind: input, shape index: {}]   ;;  %s7689_s12 = inlined_call_operand.vmem [shape: f32[1,128], index: 12, kind: input, shape index: {}]   ;;  %s7690_s13 = inlined_call_operand.hbm [shape: f32[16,128], index: 13, kind: output, shape index: {}]  }
   0x1   :  { %v54_v0 = vld [vmem:[%s7678_s1 + $0x8] sm:$0xff]  ;;  %v56_v1 = vld [vmem:[%s7678_s1 + $0x18] sm:$0xff]  ;;  %v53_v2 = vld [vmem:[%s7678_s1] sm:$0xff]  ;;  %5260 = vmatprep.subr.bf16.mxu1 %v5932_v7  ;;  %4769 = vmatprep.mubr.msk.f32.mxu1 %vm5933_vm0, %v5934_v21 }
   0x2   :  { %v5132_v3 = vpack.c.bf16 %v56_v1, %v54_v0  ;;  %v55_v4 = vld [vmem:[%s7678_s1 + $0x10] sm:$0xff]  ;;  %v58_v5 = vld [vmem:[%s7678_s1 + $0x28] sm:$0xff]  ;;  %v60_v6 = vld [vmem:[%s7678_s1 + $0x38] sm:$0xff] }
   0x3   :  { %v5134_v8 = vpack.c.bf16 %v55_v4, %v53_v2  ;;  %v5136_v9 = vpack.c.bf16 %v60_v6, %v58_v5  ;;  %v57_v10 = vld [vmem:[%s7678_s1 + $0x20] sm:$0xff]  ;;  %v59_v11 = vld [vmem:[%s7678_s1 + $0x30] sm:$0xff]  ;;  %v62_v12 = vld [vmem:[%s7678_s1 + $0x48] sm:$0xff] }
   0x4   :  { %5133 = vmatprep.subr.bf16.mxu0 %v5132_v3  ;;  %v64_v13 = vld [vmem:[%s7678_s1 + $0x58] sm:$0xff]  ;;  %v5138_v14 = vpack.c.bf16 %v59_v11, %v57_v10  ;;  %v61_v16 = vld [vmem:[%s7678_s1 + $0x40] sm:$0xff]  ;;  %v63_v17 = vld [vmem:[%s7678_s1 + $0x50] sm:$0xff] }
   0x5   :  { %5135 = vmatpush1.bf16.msra.mxu0 %v5134_v8  ;;  %v5140_v15 = vpack.c.bf16 %v64_v13, %v62_v12  ;;  %v66_v18 = vld [vmem:[%s7678_s1 + $0x68] sm:$0xff]  ;;  %v68_v19 = vld [vmem:[%s7678_s1 + $0x78] sm:$0xff]  ;;  %v5142_v20 = vpack.c.bf16 %v63_v17, %v61_v16  ;;  %v65_v23 = vld [vmem:[%s7678_s1 + $0x60] sm:$0xff] }
   0x6   :  { %5137 = vmatprep.subr.bf16.mxu0 %v5136_v9  ;;  %v5144_v22 = vpack.c.bf16 %v68_v19, %v66_v18  ;;  %v67_v24 = vld [vmem:[%s7678_s1 + $0x70] sm:$0xff]  ;;  %v70_v25 = vld [vmem:[%s7678_s1 + $0x88] sm:$0xff]  ;;  %v72_v26 = vld [vmem:[%s7678_s1 + $0x98] sm:$0xff] }
   0x7   :  { %v5146_v27 = vpack.c.bf16 %v67_v24, %v65_v23  ;;  %v5148_v28 = vpack.c.bf16 %v72_v26, %v70_v25  ;;  %v69_v29 = vld [vmem:[%s7678_s1 + $0x80] sm:$0xff]  ;;  %v71_v30 = vld [vmem:[%s7678_s1 + $0x90] sm:$0xff]  ;;  %v74_v31 = vld [vmem:[%s7678_s1 + $0xa8] sm:$0xff] }
   0x8   :  { %v76_v32 = vld [vmem:[%s7678_s1 + $0xb8] sm:$0xff]  ;;  %v5150_v33 = vpack.c.bf16 %v71_v30, %v69_v29  ;;  %v73_v35 = vld [vmem:[%s7678_s1 + $0xa0] sm:$0xff]  ;;  %v75_v36 = vld [vmem:[%s7678_s1 + $0xb0] sm:$0xff] }
   0x9   :  { %5139 = vmatpush1.bf16.msra.mxu0 %v5138_v14  ;;  %v5152_v34 = vpack.c.bf16 %v76_v32, %v74_v31  ;;  %v78_v37 = vld [vmem:[%s7678_s1 + $0xc8] sm:$0xff]  ;;  %v80_v38 = vld [vmem:[%s7678_s1 + $0xd8] sm:$0xff]  ;;  %v5154_v39 = vpack.c.bf16 %v75_v36, %v73_v35  ;;  %v77_v41 = vld [vmem:[%s7678_s1 + $0xc0] sm:$0xff] }
   0xa   :  { %5141 = vmatprep.subr.bf16.mxu0 %v5140_v15  ;;  %v5156_v40 = vpack.c.bf16 %v80_v38, %v78_v37  ;;  %v79_v42 = vld [vmem:[%s7678_s1 + $0xd0] sm:$0xff]  ;;  %v46_v43 = vld [vmem:[%s7677_s0 + $0x8] sm:$0xff]  ;;  %v84_v45 = vld [vmem:[%s7678_s1 + $0xf8] sm:$0xff] }
   0xb   :  { %v82_v44 = vld [vmem:[%s7678_s1 + $0xe8] sm:$0xff]  ;;  %257 = vmatprep.mubr.f32.mxu0 %v46_v43  ;;  %v5158_v46 = vpack.c.bf16 %v79_v42, %v77_v41  ;;  %v81_v48 = vld [vmem:[%s7678_s1 + $0xe0] sm:$0xff]  ;;  %v83_v49 = vld [vmem:[%s7678_s1 + $0xf0] sm:$0xff] }
   0xc   :  { %v5160_v47 = vpack.c.bf16 %v84_v45, %v82_v44  ;;  %v86_v50 = vld [vmem:[%s7678_s1 + $0x108] sm:$0xff]  ;;  %v88_v51 = vld [vmem:[%s7678_s1 + $0x118] sm:$0xff]  ;;  %v5162_v52 = vpack.c.bf16 %v83_v49, %v81_v48  ;;  %v85_v54 = vld [vmem:[%s7678_s1 + $0x100] sm:$0xff] }
   0xd   :  { %5143 = vmatpush1.bf16.msra.mxu0 %v5142_v20  ;;  %v5164_v53 = vpack.c.bf16 %v88_v51, %v86_v50  ;;  %v87_v55 = vld [vmem:[%s7678_s1 + $0x110] sm:$0xff]  ;;  %v90_v56 = vld [vmem:[%s7678_s1 + $0x128] sm:$0xff]  ;;  %v92_v57 = vld [vmem:[%s7678_s1 + $0x138] sm:$0xff] }
   0xe   :  { %5145 = vmatprep.subr.bf16.mxu0 %v5144_v22  ;;  %v5166_v58 = vpack.c.bf16 %v87_v55, %v85_v54  ;;  %v5168_v59 = vpack.c.bf16 %v92_v57, %v90_v56  ;;  %v89_v60 = vld [vmem:[%s7678_s1 + $0x120] sm:$0xff]  ;;  %v91_v61 = vld [vmem:[%s7678_s1 + $0x130] sm:$0xff]  ;;  %v94_v62 = vld [vmem:[%s7678_s1 + $0x148] sm:$0xff] }
   0xf   :  { %v96_v63 = vld [vmem:[%s7678_s1 + $0x158] sm:$0xff]  ;;  %v5170_v0 = vpack.c.bf16 %v91_v61, %v89_v60  ;;  %v93_v2 = vld [vmem:[%s7678_s1 + $0x140] sm:$0xff]  ;;  %v95_v3 = vld [vmem:[%s7678_s1 + $0x150] sm:$0xff] }
  0x10   :  { %v5172_v1 = vpack.c.bf16 %v96_v63, %v94_v62  ;;  %v98_v4 = vld [vmem:[%s7678_s1 + $0x168] sm:$0xff]  ;;  %v100_v5 = vld [vmem:[%s7678_s1 + $0x178] sm:$0xff]  ;;  %v5174_v6 = vpack.c.bf16 %v95_v3, %v93_v2  ;;  %v97_v9 = vld [vmem:[%s7678_s1 + $0x160] sm:$0xff] }
  0x11   :  { %5147 = vmatpush1.bf16.msra.mxu0 %v5146_v27  ;;  %v5176_v8 = vpack.c.bf16 %v100_v5, %v98_v4  ;;  %v99_v10 = vld [vmem:[%s7678_s1 + $0x170] sm:$0xff]  ;;  %v102_v11 = vld [vmem:[%s7678_s1 + $0x188] sm:$0xff]  ;;  %v104_v12 = vld [vmem:[%s7678_s1 + $0x198] sm:$0xff] }
  0x12   :  { %5149 = vmatprep.subr.bf16.mxu0 %v5148_v28  ;;  %v5178_v13 = vpack.c.bf16 %v99_v10, %v97_v9  ;;  %v101_v14 = vld [vmem:[%s7678_s1 + $0x180] sm:$0xff]  ;;  %v352_v16 = vld [vmem:[%s7679_s2 + $0x8] sm:$0xff]  ;;  %v5180_v17 = vpack.c.bf16 %v104_v12, %v102_v11  ;;  %v103_v18 = vld [vmem:[%s7678_s1 + $0x190] sm:$0xff] }
  0x13   :  { %v351_v15 = vld [vmem:[%s7679_s2] sm:$0xff]  ;;  %v353_v20 = vld [vmem:[%s7679_s2 + $0x10] sm:$0xff]  ;;  %v354_v22 = vld [vmem:[%s7679_s2 + $0x18] sm:$0xff]  ;;  %v5182_v26 = vpack.c.bf16 %v103_v18, %v101_v14 }
  0x14   :  { %v6178_v19 = vpack.c.bf16 %v352_v16, %v351_v15  ;;  %v106_v23 = vld [vmem:[%s7678_s1 + $0x1a8] sm:$0xff]  ;;  %v108_v24 = vld [vmem:[%s7678_s1 + $0x1b8] sm:$0xff]  ;;  %v6193_v25 = vpack.c.bf16 %v354_v22, %v353_v20  ;;  %v355_v27 = vld [vmem:[%s7680_s3] sm:$0xff] }
  0x15   :  { %5151 = vmatpush1.bf16.msra.mxu0 %v5150_v33  ;;  %v356_v28 = vld [vmem:[%s7680_s3 + $0x8] sm:$0xff] }
  0x16   :  { %5153 = vmatprep.subr.bf16.mxu0 %v5152_v34  ;;  %5262 = vmatpush3.bf16.msra.mxu1 %v6178_v19 }
  0x17   :  { %5263 = vmatprep.subr.bf16.mxu1 %v5932_v7 }
  0x19   :  { %5155 = vmatpush1.bf16.msra.mxu0 %v5154_v39 }
  0x1a   :  { %5157 = vmatprep.subr.bf16.mxu0 %v5156_v40 }
  0x1d   :  { %5159 = vmatpush1.bf16.msra.mxu0 %v5158_v46 }
  0x1e   :  { %5161 = vmatprep.subr.bf16.mxu0 %v5160_v47 }
  0x21   :  { %5163 = vmatpush1.bf16.msra.mxu0 %v5162_v52 }
  0x22   :  { %5165 = vmatprep.subr.bf16.mxu0 %v5164_v53 }
  0x25   :  { %5167 = vmatpush1.bf16.msra.mxu0 %v5166_v58 }
  0x26   :  { %5169 = vmatprep.subr.bf16.mxu0 %v5168_v59 }
  0x29   :  { %5171 = vmatpush1.bf16.msra.mxu0 %v5170_v0 }
  0x2a   :  { %5173 = vmatprep.subr.bf16.mxu0 %v5172_v1 }
  0x2d   :  { %5175 = vmatpush1.bf16.msra.mxu0 %v5174_v6 }
  0x2e   :  { %5177 = vmatprep.subr.bf16.mxu0 %v5176_v8 }
  0x31   :  { %5179 = vmatpush1.bf16.msra.mxu0 %v5178_v13 }
  0x32   :  { %18 = vsyncpa [#allocation7], 0  ;;  %5181 = vmatprep.subr.bf16.mxu0 %v5180_v17  ;;  %v5184_v29 = vpack.c.bf16 %v108_v24, %v106_v23  ;;  %v105_v30 = vld [vmem:[%s7678_s1 + $0x1a0] sm:$0xff]  ;;  %v107_v31 = vld [vmem:[%s7678_s1 + $0x1b0] sm:$0xff]  ;;  %5265 = vmatpush3.bf16.msra.mxu1 %v6193_v25  ;;  %v6215_v34 = vpack.c.bf16 %v356_v28, %v355_v27  ;;  %vm562_vm1 = vcmask 254976   ;;  %vm361_vm2 = vcmask 261120  }
  0x33   :  { %v110_v32 = vld [vmem:[%s7678_s1 + $0x1c8] sm:$0xff]  ;;  %v112_v33 = vld [vmem:[%s7678_s1 + $0x1d8] sm:$0xff]  ;;  %v5186_v35 = vpack.c.bf16 %v107_v31, %v105_v30  ;;  %5266 = vmatprep.subr.bf16.mxu1 %v5932_v7  ;;  %v357_v36 = vld [vmem:[%s7680_s3 + $0x10] sm:$0xff]  ;;  %vm785_vm3 = vcmask 257026   ;;  %vm1234_vm4 = vcmask 261126   ;;  %vm568_vm5 = vcmask 523526  }
  0x34   :  { %v358_v37 = vld [vmem:[%s7680_s3 + $0x18] sm:$0xff]  ;;  %v5188_v38 = vpack.c.bf16 %v112_v33, %v110_v32  ;;  %v109_v39 = vld [vmem:[%s7678_s1 + $0x1c0] sm:$0xff]  ;;  %v111_v40 = vld [vmem:[%s7678_s1 + $0x1d0] sm:$0xff]  ;;  %vm1017_vm6 = vcmask 519426   ;;  %vm1011_vm7 = vcmask 259076   ;;  %vm791_vm8 = vcmask 521476  }
  0x35   :  { %5183 = vmatpush1.bf16.msra.mxu0 %v5182_v26  ;;  %v114_v41 = vld [vmem:[%s7678_s1 + $0x1e8] sm:$0xff]  ;;  %v116_v42 = vld [vmem:[%s7678_s1 + $0x1f8] sm:$0xff]  ;;  %4770 = vmatmul.mubr.f32.vlgmr.msra.gmra.mrb[0].mxu1 %v5934_v21  ;;  %v6238_v43 = vpack.c.bf16 %v358_v37, %v357_v36  ;;  %v5190_v44 = vpack.c.bf16 %v111_v40, %v109_v39  ;;  %v113_v46 = vld [vmem:[%s7678_s1 + $0x1e0] sm:$0xff]  ;;  %vm1240_vm9 = vcmask 517376   ;;  %vm2184_vm10 = vcmask 523264  }
  0x36   :  { %5185 = vmatprep.subr.bf16.mxu0 %v5184_v29  ;;  %5268 = vmatpush3.bf16.msra.mxu1 %v6215_v34  ;;  %v5192_v45 = vpack.c.bf16 %v116_v42, %v114_v41  ;;  %v115_v47 = vld [vmem:[%s7678_s1 + $0x1f0] sm:$0xff]  ;;  %v118_v48 = vld [vmem:[%s7678_s1 + $0x208] sm:$0xff]  ;;  %v120_v49 = vld [vmem:[%s7678_s1 + $0x218] sm:$0xff] }
  0x37   :  { %4780 = vmatprep.mubr.msk.f32.mxu1 %vm5933_vm0, %v5934_v21  ;;  %5269 = vmatprep.subr.bf16.mxu1 %v5932_v7  ;;  %v5194_v50 = vpack.c.bf16 %v115_v47, %v113_v46  ;;  %v5196_v51 = vpack.c.bf16 %v120_v49, %v118_v48  ;;  %v117_v52 = vld [vmem:[%s7678_s1 + $0x200] sm:$0xff]  ;;  %v119_v53 = vld [vmem:[%s7678_s1 + $0x210] sm:$0xff]  ;;  %v122_v54 = vld [vmem:[%s7678_s1 + $0x228] sm:$0xff] }
  0x38   :  { %v124_v55 = vld [vmem:[%s7678_s1 + $0x238] sm:$0xff]  ;;  %v45_v56 = vld [vmem:[%s7677_s0] sm:$0xff]  ;;  %v5198_v57 = vpack.c.bf16 %v119_v53, %v117_v52  ;;  %v123_v60 = vld [vmem:[%s7678_s1 + $0x230] sm:$0xff] }
  0x39   :  { %5187 = vmatpush1.bf16.msra.mxu0 %v5186_v35  ;;  %v5200_v58 = vpack.c.bf16 %v124_v55, %v122_v54  ;;  %v121_v59 = vld [vmem:[%s7678_s1 + $0x220] sm:$0xff]  ;;  %v50_v61 = vld [vmem:[%s7677_s0 + $0x28] sm:$0xff]  ;;  %v128_v63 = vld [vmem:[%s7678_s1 + $0x258] sm:$0xff] }
  0x3a   :  { %5189 = vmatprep.subr.bf16.mxu0 %v5188_v38  ;;  %5271 = vmatpush3.bf16.msra.mxu1 %v6238_v43  ;;  %v126_v62 = vld [vmem:[%s7678_s1 + $0x248] sm:$0xff]  ;;  %v5202_v0 = vpack.c.bf16 %v123_v60, %v121_v59  ;;  %v49_v1 = vld [vmem:[%s7677_s0 + $0x20] sm:$0xff]  ;;  %v127_v4 = vld [vmem:[%s7678_s1 + $0x250] sm:$0xff] }
  0x3b   :  { %5272 = vmatprep.subr.bf16.mxu1 %v5932_v7  ;;  %v5204_v2 = vpack.c.bf16 %v128_v63, %v126_v62  ;;  %v125_v3 = vld [vmem:[%s7678_s1 + $0x240] sm:$0xff]  ;;  %v48_v5 = vld [vmem:[%s7677_s0 + $0x18] sm:$0xff]  ;;  %v130_v6 = vld [vmem:[%s7678_s1 + $0x268] sm:$0xff] }
  0x3c   :  { %v132_v8 = vld [vmem:[%s7678_s1 + $0x278] sm:$0xff]  ;;  %v5206_v9 = vpack.c.bf16 %v127_v4, %v125_v3  ;;  %v129_v11 = vld [vmem:[%s7678_s1 + $0x260] sm:$0xff]  ;;  %v131_v12 = vld [vmem:[%s7678_s1 + $0x270] sm:$0xff] }
  0x3d   :  { %5191 = vmatpush1.bf16.msra.mxu0 %v5190_v44  ;;  %4781 = vmatmul.mubr.f32.vlgmr.msra.gmra.mrb[2].mxu1 %v5934_v21  ;;  %v5208_v10 = vpack.c.bf16 %v132_v8, %v130_v6  ;;  %v134_v13 = vld [vmem:[%s7678_s1 + $0x288] sm:$0xff]  ;;  %v136_v14 = vld [vmem:[%s7678_s1 + $0x298] sm:$0xff]  ;;  %v5210_v15 = vpack.c.bf16 %v131_v12, %v129_v11  ;;  %v133_v17 = vld [vmem:[%s7678_s1 + $0x280] sm:$0xff] }
  0x3e   :  { %5193 = vmatprep.subr.bf16.mxu0 %v5192_v45  ;;  %5274 = vmatpush3.bf16.msra.mxu1 %v6178_v19  ;;  %v5212_v16 = vpack.c.bf16 %v136_v14, %v134_v13  ;;  %v135_v18 = vld [vmem:[%s7678_s1 + $0x290] sm:$0xff]  ;;  %v138_v20 = vld [vmem:[%s7678_s1 + $0x2a8] sm:$0xff]  ;;  %v140_v22 = vld [vmem:[%s7678_s1 + $0x2b8] sm:$0xff] }
  0x3f   :  { %4791 = vmatprep.mubr.msk.f32.mxu1 %vm5933_vm0, %v5934_v21  ;;  %5275 = vmatprep.subr.bf16.mxu1 %v5932_v7  ;;  %v5214_v23 = vpack.c.bf16 %v135_v18, %v133_v17  ;;  %v5216_v24 = vpack.c.bf16 %v140_v22, %v138_v20  ;;  %v137_v26 = vld [vmem:[%s7678_s1 + $0x2a0] sm:$0xff]  ;;  %v139_v27 = vld [vmem:[%s7678_s1 + $0x2b0] sm:$0xff]  ;;  %v142_v28 = vld [vmem:[%s7678_s1 + $0x2c8] sm:$0xff] }
  0x40   :  { %v144_v29 = vld [vmem:[%s7678_s1 + $0x2d8] sm:$0xff]  ;;  %v5218_v30 = vpack.c.bf16 %v139_v27, %v137_v26  ;;  %v141_v32 = vld [vmem:[%s7678_s1 + $0x2c0] sm:$0xff]  ;;  %v143_v33 = vld [vmem:[%s7678_s1 + $0x2d0] sm:$0xff] }
  0x41   :  { %5195 = vmatpush1.bf16.msra.mxu0 %v5194_v50  ;;  %v5220_v31 = vpack.c.bf16 %v144_v29, %v142_v28  ;;  %v146_v35 = vld [vmem:[%s7678_s1 + $0x2e8] sm:$0xff]  ;;  %v148_v36 = vld [vmem:[%s7678_s1 + $0x2f8] sm:$0xff]  ;;  %v5222_v37 = vpack.c.bf16 %v143_v33, %v141_v32  ;;  %v145_v39 = vld [vmem:[%s7678_s1 + $0x2e0] sm:$0xff] }
  0x42   :  { %5197 = vmatprep.subr.bf16.mxu0 %v5196_v51  ;;  %5277 = vmatpush3.bf16.msra.mxu1 %v6193_v25  ;;  %v5224_v38 = vpack.c.bf16 %v148_v36, %v146_v35  ;;  %v147_v40 = vld [vmem:[%s7678_s1 + $0x2f0] sm:$0xff]  ;;  %v150_v41 = vld [vmem:[%s7678_s1 + $0x308] sm:$0xff]  ;;  %v152_v42 = vld [vmem:[%s7678_s1 + $0x318] sm:$0xff] }
  0x43   :  { %5278 = vmatprep.subr.bf16.mxu1 %v5932_v7  ;;  %v5226_v44 = vpack.c.bf16 %v147_v40, %v145_v39  ;;  %v5228_v45 = vpack.c.bf16 %v152_v42, %v150_v41  ;;  %v149_v46 = vld [vmem:[%s7678_s1 + $0x300] sm:$0xff]  ;;  %v151_v47 = vld [vmem:[%s7678_s1 + $0x310] sm:$0xff]  ;;  %v154_v48 = vld [vmem:[%s7678_s1 + $0x328] sm:$0xff]  ;;  %v183_v39 = vlaneseq }
  0x44   :  { %258 = vmatmul.mubr.f32.vlgmr.msra.gmra.mrb[0].mxu0 %v45_v56  ;;  %v156_v49 = vld [vmem:[%s7678_s1 + $0x338] sm:$0xff]  ;;  %v5230_v50 = vpack.c.bf16 %v151_v47, %v149_v46  ;;  %v153_v52 = vld [vmem:[%s7678_s1 + $0x320] sm:$0xff]  ;;  %v155_v53 = vld [vmem:[%s7678_s1 + $0x330] sm:$0xff] }
  0x45   :  { %5199 = vmatpush1.bf16.msra.mxu0 %v5198_v57  ;;  %263 = vmatprep.mubr.f32.mxu0 %v50_v61  ;;  %v5232_v51 = vpack.c.bf16 %v156_v49, %v154_v48  ;;  %v158_v54 = vld [vmem:[%s7678_s1 + $0x348] sm:$0xff]  ;;  %v160_v55 = vld [vmem:[%s7678_s1 + $0x358] sm:$0xff]  ;;  %v5234_v56 = vpack.c.bf16 %v155_v53, %v153_v52  ;;  %v159_v59 = vld [vmem:[%s7678_s1 + $0x350] sm:$0xff]  ;;  %v6472_v40 = vshrl.u32 %v183_v39, 7 }
  0x46   :  { %5201 = vmatprep.subr.bf16.mxu0 %v5200_v58  ;;  %v5236_v57 = vpack.c.bf16 %v160_v55, %v158_v54  ;;  %v157_v58 = vld [vmem:[%s7678_s1 + $0x340] sm:$0xff]  ;;  %v162_v60 = vld [vmem:[%s7678_s1 + $0x368] sm:$0xff]  ;;  %v164_v61 = vld [vmem:[%s7678_s1 + $0x378] sm:$0xff] }
  0x47   :  { %v5238_v62 = vpack.c.bf16 %v159_v59, %v157_v58  ;;  %v5240_v63 = vpack.c.bf16 %v164_v61, %v162_v60  ;;  %v168_v3 = vld [vmem:[%s7678_s1 + $0x398] sm:$0xff]  ;;  %v165_v6 = vld [vmem:[%s7678_s1 + $0x380] sm:$0xff]  ;;  %v167_v8 = vld [vmem:[%s7678_s1 + $0x390] sm:$0xff]  ;;  %v6475_v41 = vsub.s32 0, %v6472_v40 }
  0x48   :  { %264 = vmatmul.mubr.f32.gmra.mrb[2].mxu0 %v49_v1  ;;  %v163_v1 = vld [vmem:[%s7678_s1 + $0x370] sm:$0xff]  ;;  %v5246_v11 = vpack.c.bf16 %v167_v8, %v165_v6  ;;  %v169_v13 = vld [vmem:[%s7678_s1 + $0x3a0] sm:$0xff]  ;;  %v52_v32 = vld [vmem:[%s7677_s0 + $0x38] sm:$0xff] }
  0x49   :  { %5203 = vmatpush1.bf16.msra.mxu0 %v5202_v0  ;;  %334 = vmatprep.mubr.f32.mxu0 %v48_v5  ;;  %v161_v0 = vld [vmem:[%s7678_s1 + $0x360] sm:$0xff]  ;;  %v171_v14 = vld [vmem:[%s7678_s1 + $0x3b0] sm:$0xff] }
  0x4a   :  { %5205 = vmatprep.subr.bf16.mxu0 %v5204_v2  ;;  %v166_v2 = vld [vmem:[%s7678_s1 + $0x388] sm:$0xff]  ;;  %v5242_v4 = vpack.c.bf16 %v163_v1, %v161_v0  ;;  %v5250_v17 = vpack.c.bf16 %v171_v14, %v169_v13  ;;  %v173_v20 = vld [vmem:[%s7678_s1 + $0x3c0] sm:$0xff]  ;;  %v175_v22 = vld [vmem:[%s7678_s1 + $0x3d0] sm:$0xff] }
  0x4b   :  { %v5244_v5 = vpack.c.bf16 %v168_v3, %v166_v2  ;;  %v5254_v26 = vpack.c.bf16 %v175_v22, %v173_v20  ;;  %v177_v28 = vld [vmem:[%s7678_s1 + $0x3e0] sm:$0xff]  ;;  %v179_v29 = vld [vmem:[%s7678_s1 + $0x3f0] sm:$0xff] }
  0x4c   :  { %v51_v33 = vld [vmem:[%s7677_s0 + $0x30] sm:$0xff]  ;;  %v181_v42 = vld [vmem:[%s7681_s4] sm:$0x3]  ;;  %s5936_s4 = smov 32  }
  0x4d   :  { %5207 = vmatpush1.bf16.msra.mxu0 %v5206_v9  ;;  %v170_v9 = vld [vmem:[%s7678_s1 + $0x3a8] sm:$0xff] }
  0x4e   :  { %5209 = vmatprep.subr.bf16.mxu0 %v5208_v10  ;;  %v172_v10 = vld [vmem:[%s7678_s1 + $0x3b8] sm:$0xff] }
  0x4f   :  { %v5248_v12 = vpack.c.bf16 %v172_v10, %v170_v9 }
  0x51   :  { %5211 = vmatpush1.bf16.msra.mxu0 %v5210_v15  ;;  %v174_v15 = vld [vmem:[%s7678_s1 + $0x3c8] sm:$0xff] }
  0x52   :  { %5213 = vmatprep.subr.bf16.mxu0 %v5212_v16  ;;  %v176_v16 = vld [vmem:[%s7678_s1 + $0x3d8] sm:$0xff] }
  0x53   :  { %v5252_v18 = vpack.c.bf16 %v176_v16, %v174_v15 }
  0x55   :  { %5215 = vmatpush1.bf16.msra.mxu0 %v5214_v23  ;;  %v178_v23 = vld [vmem:[%s7678_s1 + $0x3e8] sm:$0xff] }
  0x56   :  { %5217 = vmatprep.subr.bf16.mxu0 %v5216_v24  ;;  %v180_v24 = vld [vmem:[%s7678_s1 + $0x3f8] sm:$0xff] }
  0x57   :  { %v5256_v27 = vpack.c.bf16 %v180_v24, %v178_v23 }
  0x59   :  { %5219 = vmatpush1.bf16.msra.mxu0 %v5218_v30  ;;  %v5258_v30 = vpack.c.bf16 %v179_v29, %v177_v28 }
  0x5a   :  { %5221 = vmatprep.subr.bf16.mxu0 %v5220_v31  ;;  %v47_v31 = vld [vmem:[%s7677_s0 + $0x10] sm:$0xff]  ;;  %s5935_s0 = smov 64  }
  0x5d   :  { %5223 = vmatpush1.bf16.msra.mxu0 %v5222_v37 }
  0x5e   :  { %5225 = vmatprep.subr.bf16.mxu0 %v5224_v38 }
  0x61   :  { %5227 = vmatpush1.bf16.msra.mxu0 %v5226_v44  ;;  %v6481_v44 = vsub.s32 1, %v6472_v40 }
  0x62   :  { %5229 = vmatprep.subr.bf16.mxu0 %v5228_v45  ;;  %v186_v45 = vrot.slane %v181_v42, %v6475_v41 }
  0x63   :  { %v190_v46 = vrot.slane %v181_v42, %v6481_v44 }
  0x65   :  { %5231 = vmatpush1.bf16.msra.mxu0 %v5230_v50 }
  0x66   :  { %5233 = vmatprep.subr.bf16.mxu0 %v5232_v51 }
  0x69   :  { %5235 = vmatpush1.bf16.msra.mxu0 %v5234_v56 }
  0x6a   :  { %5237 = vmatprep.subr.bf16.mxu0 %v5236_v57 }
  0x6d   :  { %5239 = vmatpush1.bf16.msra.mxu0 %v5238_v62 }
  0x6e   :  { %5241 = vmatprep.subr.bf16.mxu0 %v5240_v63 }
  0x71   :  { %5243 = vmatpush1.bf16.msra.mxu0 %v5242_v4 }
  0x72   :  { %5245 = vmatprep.subr.bf16.mxu0 %v5244_v5 }
  0x75   :  { %5247 = vmatpush1.bf16.msra.mxu0 %v5246_v11 }
  0x76   :  { %5249 = vmatprep.subr.bf16.mxu0 %v5248_v12 }
  0x79   :  { %5251 = vmatpush1.bf16.msra.mxu0 %v5250_v17 }
  0x7a   :  { %5253 = vmatprep.subr.bf16.mxu0 %v5252_v18 }
  0x7d   :  { %5255 = vmatpush1.bf16.msra.mxu0 %v5254_v26 }
  0x7e   :  { %5257 = vmatprep.subr.bf16.mxu0 %v5256_v27 }
  0x81   :  { %5259 = vmatpush1.bf16.msra.mxu0 %v5258_v30 }
  0x84   :  { %335 = vmatmul.mubr.f32.vlgmr.msra.gmra.mrb[0].mxu0 %v47_v31 }
  0x85   :  { %340 = vmatprep.mubr.f32.mxu0 %v52_v32 }
  0x88   :  { %341 = vmatmul.mubr.f32.gmra.mrb[2].mxu0 %v51_v33 }
  0x89   :  { %2255 = vmatprep.mubr.f32.mxu0 %v5934_v21 }
 0x108   :  { %v431_v35 = vpop.f32.mrb[0].mxu1 }
 0x109   :  { %v4771_v36 = vpop.f32.mrb[1].mxu1 }
 0x110   :  { %v526_v37 = vpop.f32.mrb[2].mxu1 }
 0x111   :  { %v4782_v38 = vpop.f32.mrb[3].mxu1  ;;  %v531_v57 = vrot.slane %v526_v37, 2 }
 0x157   :  { %v336_v47 = vpop.f32.mrb[0].mxu0 }
 0x158   :  { %v5628_v48 = vadd.f32 %v336_v47, %v186_v45  ;;  %v338_v49 = vpop.f32.mrb[1].mxu0 }
 0x159   :  { %v5629_v50 = vadd.f32 %v338_v49, %v190_v46 }
 0x15a   :  { %347 = vst [vmem:[#allocation2] sm:$0xff] %v5628_v48 }
 0x15b   :  { %348 = vst [vmem:[#allocation2 + $0x8] sm:$0xff] %v5629_v50  ;;  %v342_v51 = vpop.f32.mrb[2].mxu0 }
 0x15c   :  { %v5630_v52 = vadd.f32 %v342_v51, %v186_v45  ;;  %v344_v53 = vpop.f32.mrb[3].mxu0 }
 0x15d   :  { %v5631_v54 = vadd.f32 %v344_v53, %v190_v46 }
 0x15e   :  { %349 = vst [vmem:[#allocation2 + $0x10] sm:$0xff] %v5630_v52 }
 0x15f   :  { %350 = vst [vmem:[#allocation2 + $0x18] sm:$0xff] %v5631_v54 }
 0x161   :  { %v359_v55 = vld [vmem:[#allocation2] sm:$0x3]  ;;  %v570_v32 = vld [vmem:[#allocation2] sm:$0xc] }
 0x162   :  { %v435_v56 = vadd.f32 %v431_v35, %v359_v55 }
 0x164   :  { %5652 = vtanh.f32 %v435_v56  ;;  %v4524_v62 = vmul.f32 -1.442695, %v435_v56 }
 0x166   :  { %v360_v58 = vld [vmem:[#allocation2 + $0x18] sm:$0xc0]  ;;  %v571_v38 = vld [vmem:[#allocation2 + $0x18] sm:$0x30] }
 0x167   :  { %v533_v59 = vadd.f32 %v531_v57, %v360_v58 }
 0x169   :  { %5654 = vtanh.f32 %v533_v59  ;;  %v4525_v63 = vmul.f32 -1.442695, %v533_v59 }
 0x16a   :  { %5656 = vpow2.f32 %v4524_v62 }
 0x16b   :  { %5658 = vpow2.f32 %v4525_v63 }
 0x16e   :  { %v5653_v60 = vpop.eup %5652 }
 0x16f   :  { %445 = vrot.lane.b32.xlu0 %v5653_v60, %s5935_s0 }
 0x173   :  { %v5655_v61 = vpop.eup %5654 }
 0x174   :  { %543 = vrot.lane.b32.xlu0 %v5655_v61, %s5935_s0  ;;  %v5657_v0 = vpop.eup %5656 }
 0x175   :  { %v439_v1 = vadd.f32 1.0, %v5657_v0  ;;  %v5659_v2 = vpop.eup %5658 }
 0x176   :  { %v537_v3 = vadd.f32 1.0, %v5659_v2 }
 0x177   :  { %5660 = vrcp.f32 %v439_v1 }
 0x178   :  { %5662 = vrcp.f32 %v537_v3 }
 0x181   :  { %v5661_v4 = vpop.eup %5660 }
 0x182   :  { %v5663_v8 = vpop.eup %5662  ;;  %v443_v11 = vmul.f32 0.0, %v5661_v4 }
 0x183   :  { %v541_v14 = vmul.f32 0.0, %v5663_v8 }
 0x1e1   :  { %v446_v5 = vpop.permute.xlu0 %445 }
 0x1e2   :  { %v448_v6 = vmul.f32 %v5661_v4, %v446_v5 }
 0x1e4   :  { %450 = vrot.lane.b32.xlu1 %v448_v6, %s5936_s4 }
 0x1e6   :  { %v544_v9 = vpop.permute.xlu0 %543 }
 0x1e7   :  { %v546_v10 = vmul.f32 %v5663_v8, %v544_v9 }
 0x1e9   :  { %548 = vrot.lane.b32.xlu1 %v546_v10, %s5936_s4 }
 0x256   :  { %v451_v12 = vpop.permute.xlu1 %450 }
 0x257   :  { %v6489_v13 = vadd.f32 %v451_v12, %v443_v11 }
 0x259   :  { %5664 = vtanh.f32 %v6489_v13  ;;  %v656_v58 = vrot.slane %v6489_v13, 6 }
 0x25b   :  { %v549_v15 = vpop.permute.xlu1 %548 }
 0x25c   :  { %v6492_v16 = vadd.f32 %v549_v15, %v541_v14 }
 0x25e   :  { %5666 = vtanh.f32 %v6492_v16  ;;  %v762_v62 = vrot.slane %v6492_v16, 2  ;;  %v793_v16 = vld [vmem:[#allocation2] sm:$0x30] }
 0x263   :  { %v5665_v17 = vpop.eup %5664 }
 0x264   :  { %456 = vrot.lane.b32.xlu0 %v5665_v17, %s5935_s0 }
 0x268   :  { %v5667_v18 = vpop.eup %5666 }
 0x269   :  { %554 = vrot.lane.b32.xlu1 %v5667_v18, %s5935_s0 }
 0x2d6   :  { %v457_v20 = vpop.permute.xlu0 %456 }
 0x2d7   :  { %v459_v22 = vmul.f32 %v5661_v4, %v457_v20 }
 0x2d9   :  { %559 = vrot.lane.b32.xlu0 %v459_v22, %s5936_s4 }
 0x2db   :  { %v555_v23 = vpop.permute.xlu1 %554 }
 0x2dc   :  { %v6498_v24 = vmul.f32 %v5663_v8, %v555_v23  ;;  %v794_v23 = vld [vmem:[#allocation2 + $0x18] sm:$0xc] }
 0x2de   :  { %v675_v26 = vrot.slane %v6498_v24, 6 }
 0x2e0   :  { %676 = vrot.lane.b32.xlu1 %v675_v26, %s5936_s4 }
 0x34b   :  { %v560_v27 = vpop.permute.xlu0 %559 }
 0x34c   :  { %563 = vst.msk [vmem:[#allocation3] sm:$0x3] %vm562_vm1, %v560_v27  ;;  %4792 = vmatmul.mubr.msk.f32.vlgmr.msra.gmra.mrb[4].mxu1 %vm361_vm2, %v560_v27 }
 0x34d   :  { %5280 = vmatpush3.bf16.msra.mxu1 %v6215_v34  ;;  %4802 = vmatprep.mubr.msk.f32.mxu1 %vm5933_vm0, %v5934_v21 }
 0x34e   :  { %5281 = vmatprep.subr.bf16.mxu1 %v5932_v7 }
 0x351   :  { %5283 = vmatpush3.bf16.msra.mxu1 %v6238_v43 }
 0x352   :  { %v677_v28 = vpop.permute.xlu1 %676  ;;  %5284 = vmatprep.subr.bf16.mxu1 %v5932_v7 }
 0x354   :  { %4803 = vmatmul.mubr.msk.f32.vlgmr.msra.gmra.mrb[6].mxu1 %vm361_vm2, %v677_v28 }
 0x355   :  { %5286 = vmatpush3.bf16.msra.mxu1 %v6178_v19  ;;  %4813 = vmatprep.mubr.msk.f32.mxu1 %vm5933_vm0, %v5934_v21 }
 0x356   :  { %5287 = vmatprep.subr.bf16.mxu1 %v5932_v7 }
 0x359   :  { %5289 = vmatpush3.bf16.msra.mxu1 %v6193_v25 }
 0x35a   :  { %5290 = vmatprep.subr.bf16.mxu1 %v5932_v7 }
 0x41f   :  { %v640_v29 = vpop.f32.mrb[4].mxu1 }
 0x420   :  { %v645_v30 = vrot.slane %v640_v29, 6  ;;  %v4793_v31 = vpop.f32.mrb[5].mxu1 }
 0x422   :  { %v647_v33 = vadd.f32 %v645_v30, %v570_v32 }
 0x424   :  { %5668 = vtanh.f32 %v647_v33  ;;  %v4527_v46 = vmul.f32 -1.442695, %v647_v33 }
 0x427   :  { %v746_v35 = vpop.f32.mrb[6].mxu1 }
 0x428   :  { %v751_v36 = vrot.slane %v746_v35, 4  ;;  %v4804_v37 = vpop.f32.mrb[7].mxu1 }
 0x42a   :  { %v753_v39 = vadd.f32 %v751_v36, %v571_v38 }
 0x42c   :  { %5670 = vtanh.f32 %v753_v39  ;;  %v4529_v47 = vmul.f32 -1.442695, %v753_v39 }
 0x42d   :  { %5672 = vpow2.f32 %v4527_v46 }
 0x42e   :  { %v5669_v42 = vpop.eup %5668  ;;  %5674 = vpow2.f32 %v4529_v47 }
 0x42f   :  { %660 = vrot.lane.b32.xlu0 %v5669_v42, %s5935_s0 }
 0x436   :  { %v5671_v45 = vpop.eup %5670 }
 0x437   :  { %766 = vrot.lane.b32.xlu1 %v5671_v45, %s5935_s0  ;;  %v5673_v48 = vpop.eup %5672 }
 0x438   :  { %v651_v49 = vadd.f32 1.0, %v5673_v48  ;;  %v5675_v50 = vpop.eup %5674 }
 0x439   :  { %v757_v51 = vadd.f32 1.0, %v5675_v50 }
 0x43a   :  { %5676 = vrcp.f32 %v651_v49 }
 0x43b   :  { %5678 = vrcp.f32 %v757_v51 }
 0x444   :  { %v5677_v52 = vpop.eup %5676 }
 0x445   :  { %v5679_v55 = vpop.eup %5678  ;;  %v658_v59 = vmul.f32 %v5677_v52, %v656_v58 }
 0x446   :  { %v764_v63 = vmul.f32 %v5679_v55, %v762_v62 }
 0x4a1   :  { %v661_v53 = vpop.permute.xlu0 %660 }
 0x4a2   :  { %v663_v54 = vmul.f32 %v5677_v52, %v661_v53 }
 0x4a4   :  { %665 = vrot.lane.b32.xlu0 %v663_v54, %s5936_s4 }
 0x4a9   :  { %v767_v56 = vpop.permute.xlu1 %766 }
 0x4aa   :  { %v769_v57 = vmul.f32 %v5679_v55, %v767_v56 }
 0x4ac   :  { %771 = vrot.lane.b32.xlu1 %v769_v57, %s5936_s4 }
 0x516   :  { %v666_v60 = vpop.permute.xlu0 %665 }
 0x517   :  { %v6522_v61 = vadd.f32 %v666_v60, %v658_v59 }
 0x519   :  { %5680 = vtanh.f32 %v6522_v61  ;;  %v882_v46 = vrot.slane %v6522_v61, 6 }
 0x51e   :  { %v772_v0 = vpop.permute.xlu1 %771 }
 0x51f   :  { %v6526_v1 = vadd.f32 %v772_v0, %v764_v63 }
 0x521   :  { %5682 = vtanh.f32 %v6526_v1  ;;  %v988_v50 = vrot.slane %v6526_v1, 2 }
 0x523   :  { %v5681_v2 = vpop.eup %5680 }
 0x524   :  { %671 = vrot.lane.b32.xlu0 %v5681_v2, %s5935_s0 }
 0x52b   :  { %v5683_v3 = vpop.eup %5682 }
 0x52c   :  { %777 = vrot.lane.b32.xlu1 %v5683_v3, %s5935_s0  ;;  %v1019_v3 = vld [vmem:[#allocation2] sm:$0xc0] }
 0x596   :  { %v672_v4 = vpop.permute.xlu0 %671 }
 0x597   :  { %v6531_v5 = vmul.f32 %v5677_v52, %v672_v4 }
 0x599   :  { %v795_v6 = vrot.slane %v6531_v5, 2 }
 0x59b   :  { %796 = vrot.lane.b32.xlu0 %v795_v6, %s5936_s4  ;;  %v1020_v6 = vld [vmem:[#allocation2 + $0x18] sm:$0x3] }
 0x59e   :  { %v778_v8 = vpop.permute.xlu1 %777 }
 0x59f   :  { %v6535_v9 = vmul.f32 %v5679_v55, %v778_v8 }
 0x5a1   :  { %v901_v10 = vrot.slane %v6535_v9, 4 }
 0x5a3   :  { %902 = vrot.lane.b32.xlu1 %v901_v10, %s5936_s4 }
 0x60d   :  { %v797_v11 = vpop.permute.xlu0 %796 }
 0x60e   :  { %4814 = vmatmul.mubr.msk.f32.vlgmr.msra.gmra.mrb[8].mxu1 %vm361_vm2, %v797_v11 }
 0x60f   :  { %5292 = vmatpush3.bf16.msra.mxu1 %v6215_v34  ;;  %4824 = vmatprep.mubr.msk.f32.mxu1 %vm5933_vm0, %v5934_v21 }
 0x610   :  { %5293 = vmatprep.subr.bf16.mxu1 %v5932_v7 }
 0x613   :  { %5295 = vmatpush3.bf16.msra.mxu1 %v6238_v43 }
 0x614   :  { %5296 = vmatprep.subr.bf16.mxu1 %v5932_v7 }
 0x615   :  { %v903_v12 = vpop.permute.xlu1 %902 }
 0x616   :  { %4825 = vmatmul.mubr.msk.f32.vlgmr.msra.gmra.mrb[10].mxu1 %vm361_vm2, %v903_v12 }
 0x617   :  { %5298 = vmatpush3.bf16.msra.mxu1 %v6178_v19  ;;  %4835 = vmatprep.mubr.msk.f32.mxu1 %vm5933_vm0, %v5934_v21 }
 0x618   :  { %5299 = vmatprep.subr.bf16.mxu1 %v5932_v7 }
 0x61b   :  { %5301 = vmatpush3.bf16.msra.mxu1 %v6193_v25 }
 0x61c   :  { %5302 = vmatprep.subr.bf16.mxu1 %v5932_v7 }
 0x6e1   :  { %v866_v13 = vpop.f32.mrb[8].mxu1 }
 0x6e2   :  { %v871_v14 = vrot.slane %v866_v13, 4  ;;  %v4815_v15 = vpop.f32.mrb[9].mxu1 }
 0x6e4   :  { %v873_v17 = vadd.f32 %v871_v14, %v793_v16 }
 0x6e6   :  { %5684 = vtanh.f32 %v873_v17  ;;  %v4531_v29 = vmul.f32 -1.442695, %v873_v17 }
 0x6e9   :  { %v972_v18 = vpop.f32.mrb[10].mxu1 }
 0x6ea   :  { %v977_v20 = vrot.slane %v972_v18, 6  ;;  %v4826_v22 = vpop.f32.mrb[11].mxu1 }
 0x6ec   :  { %v979_v26 = vadd.f32 %v977_v20, %v794_v23 }
 0x6ee   :  { %5686 = vtanh.f32 %v979_v26  ;;  %v4533_v30 = vmul.f32 -1.442695, %v979_v26 }
 0x6ef   :  { %5688 = vpow2.f32 %v4531_v29 }
 0x6f0   :  { %v5685_v27 = vpop.eup %5684  ;;  %5690 = vpow2.f32 %v4533_v30 }
 0x6f1   :  { %886 = vrot.lane.b32.xlu0 %v5685_v27, %s5935_s0 }
 0x6f8   :  { %v5687_v28 = vpop.eup %5686 }
 0x6f9   :  { %992 = vrot.lane.b32.xlu1 %v5687_v28, %s5935_s0  ;;  %v5689_v31 = vpop.eup %5688 }
 0x6fa   :  { %v877_v32 = vadd.f32 1.0, %v5689_v31  ;;  %v5691_v33 = vpop.eup %5690 }
 0x6fb   :  { %v983_v35 = vadd.f32 1.0, %v5691_v33 }
 0x6fc   :  { %5692 = vrcp.f32 %v877_v32 }
 0x6fd   :  { %5694 = vrcp.f32 %v983_v35 }
 0x706   :  { %v5693_v36 = vpop.eup %5692 }
 0x707   :  { %v5695_v39 = vpop.eup %5694  ;;  %v884_v47 = vmul.f32 %v5693_v36, %v882_v46 }
 0x708   :  { %v990_v51 = vmul.f32 %v5695_v39, %v988_v50 }
 0x763   :  { %v887_v37 = vpop.permute.xlu0 %886 }
 0x764   :  { %v889_v38 = vmul.f32 %v5693_v36, %v887_v37 }
 0x766   :  { %891 = vrot.lane.b32.xlu0 %v889_v38, %s5936_s4 }
 0x76b   :  { %v993_v42 = vpop.permute.xlu1 %992 }
 0x76c   :  { %v995_v45 = vmul.f32 %v5695_v39, %v993_v42 }
 0x76e   :  { %997 = vrot.lane.b32.xlu1 %v995_v45, %s5936_s4 }
 0x7d8   :  { %v892_v48 = vpop.permute.xlu0 %891 }
 0x7d9   :  { %v6558_v49 = vadd.f32 %v892_v48, %v884_v47 }
 0x7db   :  { %5696 = vtanh.f32 %v6558_v49  ;;  %v1108_v30 = vrot.slane %v6558_v49, 6 }
 0x7e0   :  { %v998_v52 = vpop.permute.xlu1 %997 }
 0x7e1   :  { %v6562_v53 = vadd.f32 %v998_v52, %v990_v51  ;;  %v1242_v52 = vld [vmem:[#allocation2 + $0x10] sm:$0x3] }
 0x7e3   :  { %5698 = vtanh.f32 %v6562_v53  ;;  %v1211_v35 = vrot.slane %v6562_v53, 2 }
 0x7e5   :  { %v5697_v54 = vpop.eup %5696 }
 0x7e6   :  { %897 = vrot.lane.b32.xlu0 %v5697_v54, %s5935_s0 }
 0x7ed   :  { %v5699_v55 = vpop.eup %5698 }
 0x7ee   :  { %1003 = vrot.lane.b32.xlu1 %v5699_v55, %s5935_s0 }
 0x858   :  { %v898_v56 = vpop.permute.xlu0 %897 }
 0x859   :  { %v6567_v57 = vmul.f32 %v5693_v36, %v898_v56 }
 0x85b   :  { %v1021_v58 = vrot.slane %v6567_v57, 4 }
 0x85d   :  { %1022 = vrot.lane.b32.xlu0 %v1021_v58, %s5936_s4 }
 0x860   :  { %v1004_v59 = vpop.permute.xlu1 %1003 }
 0x861   :  { %v6571_v60 = vmul.f32 %v5695_v39, %v1004_v59 }
 0x863   :  { %v1127_v61 = vrot.slane %v6571_v60, 2 }
 0x865   :  { %1128 = vrot.lane.b32.xlu1 %v1127_v61, %s5936_s4  ;;  %v1243_v61 = vld [vmem:[#allocation2 + $0x8] sm:$0xc0] }
 0x8cf   :  { %v1023_v62 = vpop.permute.xlu0 %1022 }
 0x8d0   :  { %4836 = vmatmul.mubr.msk.f32.vlgmr.msra.gmra.mrb[12].mxu1 %vm361_vm2, %v1023_v62 }
 0x8d1   :  { %5304 = vmatpush3.bf16.msra.mxu1 %v6215_v34  ;;  %4846 = vmatprep.mubr.msk.f32.mxu1 %vm5933_vm0, %v5934_v21 }
 0x8d2   :  { %5305 = vmatprep.subr.bf16.mxu1 %v5932_v7 }
 0x8d5   :  { %5307 = vmatpush3.bf16.msra.mxu1 %v6238_v43 }
 0x8d6   :  { %5308 = vmatprep.subr.bf16.mxu1 %v5932_v7 }
 0x8d7   :  { %v1129_v63 = vpop.permute.xlu1 %1128 }
 0x8d8   :  { %4847 = vmatmul.mubr.msk.f32.vlgmr.msra.gmra.mrb[14].mxu1 %vm361_vm2, %v1129_v63 }
 0x8d9   :  { %5310 = vmatpush3.bf16.msra.mxu1 %v6178_v19  ;;  %4857 = vmatprep.mubr.msk.f32.mxu1 %vm5933_vm0, %v5934_v21 }
 0x8da   :  { %5311 = vmatprep.subr.bf16.mxu1 %v5932_v7 }
 0x8dd   :  { %5313 = vmatpush3.bf16.msra.mxu1 %v6193_v25 }
 0x8de   :  { %5314 = vmatprep.subr.bf16.mxu1 %v5932_v7 }
 0x9a3   :  { %v1092_v0 = vpop.f32.mrb[12].mxu1 }
 0x9a4   :  { %v1097_v1 = vrot.slane %v1092_v0, 2  ;;  %v4837_v2 = vpop.f32.mrb[13].mxu1 }
 0x9a6   :  { %v1099_v4 = vadd.f32 %v1097_v1, %v1019_v3 }
 0x9a8   :  { %5700 = vtanh.f32 %v1099_v4  ;;  %v4535_v14 = vmul.f32 -1.442695, %v1099_v4 }
 0x9ab   :  { %v1198_v8 = vpop.f32.mrb[14].mxu1 }
 0x9ac   :  { %v1202_v10 = vadd.f32 %v1198_v8, %v1020_v6  ;;  %v4848_v11 = vpop.f32.mrb[15].mxu1 }
 0x9ae   :  { %5702 = vtanh.f32 %v1202_v10  ;;  %v4537_v15 = vmul.f32 -1.442695, %v1202_v10 }
 0x9af   :  { %5704 = vpow2.f32 %v4535_v14 }
 0x9b0   :  { %5706 = vpow2.f32 %v4537_v15 }
 0x9b2   :  { %v5701_v12 = vpop.eup %5700 }
 0x9b3   :  { %1112 = vrot.lane.b32.xlu0 %v5701_v12, %s5935_s0 }
 0x9b8   :  { %v5703_v13 = vpop.eup %5702 }
 0x9b9   :  { %1215 = vrot.lane.b32.xlu1 %v5703_v13, %s5935_s0  ;;  %v5705_v16 = vpop.eup %5704 }
 0x9ba   :  { %v1103_v17 = vadd.f32 1.0, %v5705_v16  ;;  %v5707_v18 = vpop.eup %5706 }
 0x9bb   :  { %v1206_v20 = vadd.f32 1.0, %v5707_v18 }
 0x9bc   :  { %5708 = vrcp.f32 %v1103_v17 }
 0x9bd   :  { %5710 = vrcp.f32 %v1206_v20 }
 0x9c6   :  { %v5709_v22 = vpop.eup %5708 }
 0x9c7   :  { %v5711_v27 = vpop.eup %5710  ;;  %v1110_v31 = vmul.f32 %v5709_v22, %v1108_v30 }
 0x9c8   :  { %v1213_v36 = vmul.f32 %v5711_v27, %v1211_v35 }
 0xa25   :  { %v1113_v23 = vpop.permute.xlu0 %1112 }
 0xa26   :  { %v1115_v26 = vmul.f32 %v5709_v22, %v1113_v23 }
 0xa28   :  { %1117 = vrot.lane.b32.xlu0 %v1115_v26, %s5936_s4 }
 0xa2b   :  { %v1216_v28 = vpop.permute.xlu1 %1215 }
 0xa2c   :  { %v1218_v29 = vmul.f32 %v5711_v27, %v1216_v28 }
 0xa2e   :  { %1220 = vrot.lane.b32.xlu1 %v1218_v29, %s5936_s4 }
 0xa9a   :  { %v1118_v32 = vpop.permute.xlu0 %1117 }
 0xa9b   :  { %v6594_v33 = vadd.f32 %v1118_v32, %v1110_v31 }
 0xa9d   :  { %5712 = vtanh.f32 %v6594_v33  ;;  %v1328_v16 = vrot.slane %v6594_v33, 6 }
 0xaa0   :  { %v1221_v37 = vpop.permute.xlu1 %1220 }
 0xaa1   :  { %v6598_v38 = vadd.f32 %v1221_v37, %v1213_v36 }
 0xaa3   :  { %5714 = vtanh.f32 %v6598_v38 }
 0xaa7   :  { %v5713_v39 = vpop.eup %5712 }
 0xaa8   :  { %1123 = vrot.lane.b32.xlu0 %v5713_v39, %s5935_s0 }
 0xaad   :  { %v5715_v42 = vpop.eup %5714 }
 0xaae   :  { %1226 = vrot.lane.b32.xlu1 %v5715_v42, %s5935_s0 }
 0xb1a   :  { %v1124_v45 = vpop.permute.xlu0 %1123 }
 0xb1b   :  { %v6603_v46 = vmul.f32 %v5709_v22, %v1124_v45  ;;  %v1433_v22 = vrot.slane %v6598_v38, 2  ;;  %v1462_v45 = vld [vmem:[#allocation2 + $0x10] sm:$0xc] }
 0xb1d   :  { %v1244_v47 = vrot.slane %v6603_v46, 6 }
 0xb1f   :  { %1245 = vrot.lane.b32.xlu0 %v1244_v47, %s5936_s4 }
 0xb20   :  { %v1227_v48 = vpop.permute.xlu1 %1226 }
 0xb21   :  { %v6607_v49 = vmul.f32 %v5711_v27, %v1227_v48 }
 0xb23   :  { %1347 = vrot.lane.b32.xlu1 %v6607_v49, %s5936_s4 }
 0xb91   :  { %v1246_v50 = vpop.permute.xlu0 %1245 }
 0xb92   :  { %4858 = vmatmul.mubr.msk.f32.vlgmr.msra.gmra.mrb[16].mxu1 %vm361_vm2, %v1246_v50 }
 0xb93   :  { %5316 = vmatpush3.bf16.msra.mxu1 %v6215_v34  ;;  %4868 = vmatprep.mubr.msk.f32.mxu1 %vm5933_vm0, %v5934_v21 }
 0xb94   :  { %5317 = vmatprep.subr.bf16.mxu1 %v5932_v7 }
 0xb95   :  { %v1348_v51 = vpop.permute.xlu1 %1347 }
 0xb97   :  { %5319 = vmatpush3.bf16.msra.mxu1 %v6238_v43 }
 0xb98   :  { %5320 = vmatprep.subr.bf16.mxu1 %v5932_v7 }
 0xb9a   :  { %4869 = vmatmul.mubr.msk.f32.vlgmr.msra.gmra.mrb[18].mxu1 %vm361_vm2, %v1348_v51 }
 0xb9b   :  { %5322 = vmatpush3.bf16.msra.mxu1 %v6178_v19  ;;  %4879 = vmatprep.mubr.msk.f32.mxu1 %vm5933_vm0, %v5934_v21 }
 0xb9c   :  { %5323 = vmatprep.subr.bf16.mxu1 %v5932_v7 }
 0xb9f   :  { %5325 = vmatpush3.bf16.msra.mxu1 %v6193_v25 }
 0xba0   :  { %5326 = vmatprep.subr.bf16.mxu1 %v5932_v7 }
 0xc65   :  { %v1315_v53 = vpop.f32.mrb[16].mxu1 }
 0xc66   :  { %v1319_v54 = vadd.f32 %v1315_v53, %v1242_v52  ;;  %v4859_v55 = vpop.f32.mrb[17].mxu1  ;;  %v1463_v52 = vld [vmem:[#allocation2 + $0x8] sm:$0x30] }
 0xc68   :  { %5716 = vtanh.f32 %v1319_v54  ;;  %v4539_v1 = vmul.f32 -1.442695, %v1319_v54 }
 0xc6d   :  { %v1417_v56 = vpop.f32.mrb[18].mxu1 }
 0xc6e   :  { %v1422_v58 = vrot.slane %v1417_v56, 2  ;;  %v4870_v59 = vpop.f32.mrb[19].mxu1 }
 0xc70   :  { %v1424_v62 = vadd.f32 %v1422_v58, %v1243_v61 }
 0xc72   :  { %v5717_v63 = vpop.eup %5716  ;;  %5718 = vtanh.f32 %v1424_v62  ;;  %v4541_v2 = vmul.f32 -1.442695, %v1424_v62 }
 0xc73   :  { %1332 = vrot.lane.b32.xlu0 %v5717_v63, %s5935_s0  ;;  %5720 = vpow2.f32 %v4539_v1 }
 0xc74   :  { %5722 = vpow2.f32 %v4541_v2 }
 0xc7c   :  { %v5719_v0 = vpop.eup %5718 }
 0xc7d   :  { %1437 = vrot.lane.b32.xlu1 %v5719_v0, %s5935_s0  ;;  %v5721_v3 = vpop.eup %5720 }
 0xc7e   :  { %v1323_v4 = vadd.f32 1.0, %v5721_v3  ;;  %v5723_v6 = vpop.eup %5722 }
 0xc7f   :  { %v1428_v8 = vadd.f32 1.0, %v5723_v6 }
 0xc80   :  { %5724 = vrcp.f32 %v1323_v4 }
 0xc81   :  { %5726 = vrcp.f32 %v1428_v8 }
 0xc8a   :  { %v5725_v10 = vpop.eup %5724 }
 0xc8b   :  { %v5727_v13 = vpop.eup %5726  ;;  %v1330_v17 = vmul.f32 %v5725_v10, %v1328_v16 }
 0xc8c   :  { %v1435_v23 = vmul.f32 %v5727_v13, %v1433_v22 }
 0xce5   :  { %v1333_v11 = vpop.permute.xlu0 %1332 }
 0xce6   :  { %v1335_v12 = vmul.f32 %v5725_v10, %v1333_v11 }
 0xce8   :  { %1337 = vrot.lane.b32.xlu0 %v1335_v12, %s5936_s4 }
 0xcef   :  { %v1438_v14 = vpop.permute.xlu1 %1437 }
 0xcf0   :  { %v1440_v15 = vmul.f32 %v5727_v13, %v1438_v14 }
 0xcf2   :  { %1442 = vrot.lane.b32.xlu1 %v1440_v15, %s5936_s4 }
 0xd5a   :  { %v1338_v18 = vpop.permute.xlu0 %1337 }
 0xd5b   :  { %v6630_v20 = vadd.f32 %v1338_v18, %v1330_v17 }
 0xd5d   :  { %5728 = vtanh.f32 %v6630_v20  ;;  %v1548_v8 = vrot.slane %v6630_v20, 6 }
 0xd64   :  { %v1443_v26 = vpop.permute.xlu1 %1442 }
 0xd65   :  { %v6634_v27 = vadd.f32 %v1443_v26, %v1435_v23 }
 0xd67   :  { %v5729_v28 = vpop.eup %5728  ;;  %5730 = vtanh.f32 %v6634_v27 }
 0xd68   :  { %1343 = vrot.lane.b32.xlu0 %v5729_v28, %s5935_s0 }
 0xd71   :  { %v5731_v29 = vpop.eup %5730 }
 0xd72   :  { %1448 = vrot.lane.b32.xlu1 %v5731_v29, %s5935_s0 }
 0xdda   :  { %v1344_v30 = vpop.permute.xlu0 %1343 }
 0xddb   :  { %v1346_v31 = vmul.f32 %v5725_v10, %v1344_v30 }
 0xddd   :  { %1453 = vrot.lane.b32.xlu0 %v1346_v31, %s5936_s4 }
 0xde4   :  { %v1449_v32 = vpop.permute.xlu1 %1448 }
 0xde5   :  { %v6640_v33 = vmul.f32 %v5727_v13, %v1449_v32  ;;  %v1654_v13 = vrot.slane %v6634_v27, 2 }
 0xde7   :  { %v1567_v35 = vrot.slane %v6640_v33, 6 }
 0xde9   :  { %1568 = vrot.lane.b32.xlu1 %v1567_v35, %s5936_s4 }
 0xe4f   :  { %v6644_v36 = vpop.permute.xlu0 %1453 }
 0xe50   :  { %4880 = vmatmul.mubr.msk.f32.vlgmr.msra.gmra.mrb[20].mxu1 %vm361_vm2, %v6644_v36 }
 0xe51   :  { %5328 = vmatpush3.bf16.msra.mxu1 %v6215_v34  ;;  %4890 = vmatprep.mubr.msk.f32.mxu1 %vm5933_vm0, %v5934_v21 }
 0xe52   :  { %5329 = vmatprep.subr.bf16.mxu1 %v5932_v7 }
 0xe55   :  { %5331 = vmatpush3.bf16.msra.mxu1 %v6238_v43 }
 0xe56   :  { %5332 = vmatprep.subr.bf16.mxu1 %v5932_v7 }
 0xe5b   :  { %v1569_v37 = vpop.permute.xlu1 %1568 }
 0xe5c   :  { %4891 = vmatmul.mubr.msk.f32.vlgmr.msra.gmra.mrb[22].mxu1 %vm361_vm2, %v1569_v37  ;;  %v1683_v37 = vld [vmem:[#allocation2 + $0x10] sm:$0x30] }
 0xe5d   :  { %5334 = vmatpush3.bf16.msra.mxu1 %v6178_v19  ;;  %4901 = vmatprep.mubr.msk.f32.mxu1 %vm5933_vm0, %v5934_v21 }
 0xe5e   :  { %5335 = vmatprep.subr.bf16.mxu1 %v5932_v7 }
 0xe61   :  { %5337 = vmatpush3.bf16.msra.mxu1 %v6193_v25 }
 0xe62   :  { %5338 = vmatprep.subr.bf16.mxu1 %v5932_v7 }
 0xf23   :  { %v1532_v38 = vpop.f32.mrb[20].mxu1 }
 0xf24   :  { %v1537_v39 = vrot.slane %v1532_v38, 6  ;;  %v4881_v42 = vpop.f32.mrb[21].mxu1 }
 0xf26   :  { %v1539_v47 = vadd.f32 %v1537_v39, %v1462_v45 }
 0xf28   :  { %5732 = vtanh.f32 %v1539_v47  ;;  %v4543_v56 = vmul.f32 -1.442695, %v1539_v47  ;;  %v1684_v47 = vld [vmem:[#allocation2 + $0x8] sm:$0xc] }
 0xf2f   :  { %v1638_v48 = vpop.f32.mrb[22].mxu1 }
 0xf30   :  { %v1643_v50 = vrot.slane %v1638_v48, 4  ;;  %v4892_v51 = vpop.f32.mrb[23].mxu1 }
 0xf32   :  { %v5733_v53 = vpop.eup %5732  ;;  %v1645_v54 = vadd.f32 %v1643_v50, %v1463_v52 }
 0xf33   :  { %1552 = vrot.lane.b32.xlu0 %v5733_v53, %s5935_s0 }
 0xf34   :  { %5734 = vtanh.f32 %v1645_v54  ;;  %v4545_v58 = vmul.f32 -1.442695, %v1645_v54 }
 0xf35   :  { %5736 = vpow2.f32 %v4543_v56 }
 0xf36   :  { %5738 = vpow2.f32 %v4545_v58 }
 0xf3e   :  { %v5735_v55 = vpop.eup %5734 }
 0xf3f   :  { %1658 = vrot.lane.b32.xlu1 %v5735_v55, %s5935_s0  ;;  %v5737_v59 = vpop.eup %5736 }
 0xf40   :  { %v1543_v61 = vadd.f32 1.0, %v5737_v59  ;;  %v5739_v62 = vpop.eup %5738 }
 0xf41   :  { %v1649_v63 = vadd.f32 1.0, %v5739_v62 }
 0xf42   :  { %5740 = vrcp.f32 %v1543_v61 }
 0xf43   :  { %5742 = vrcp.f32 %v1649_v63 }
 0xf4c   :  { %v5741_v0 = vpop.eup %5740 }
 0xf4d   :  { %v5743_v3 = vpop.eup %5742  ;;  %v1550_v10 = vmul.f32 %v5741_v0, %v1548_v8 }
 0xf4e   :  { %v1656_v14 = vmul.f32 %v5743_v3, %v1654_v13 }
 0xfa5   :  { %v1553_v1 = vpop.permute.xlu0 %1552 }
 0xfa6   :  { %v1555_v2 = vmul.f32 %v5741_v0, %v1553_v1 }
 0xfa8   :  { %1557 = vrot.lane.b32.xlu0 %v1555_v2, %s5936_s4 }
 0xfb1   :  { %v1659_v4 = vpop.permute.xlu1 %1658 }
 0xfb2   :  { %v1661_v6 = vmul.f32 %v5743_v3, %v1659_v4 }
 0xfb4   :  { %1663 = vrot.lane.b32.xlu1 %v1661_v6, %s5936_s4 }
0x101a   :  { %v1558_v11 = vpop.permute.xlu0 %1557 }
0x101b   :  { %v6666_v12 = vadd.f32 %v1558_v11, %v1550_v10 }
0x101d   :  { %5744 = vtanh.f32 %v6666_v12 }
0x1026   :  { %v1664_v15 = vpop.permute.xlu1 %1663 }
0x1027   :  { %v5745_v16 = vpop.eup %5744  ;;  %v6670_v17 = vadd.f32 %v1664_v15, %v1656_v14 }
0x1028   :  { %1563 = vrot.lane.b32.xlu0 %v5745_v16, %s5935_s0 }
0x1029   :  { %5746 = vtanh.f32 %v6670_v17  ;;  %v1878_v4 = vrot.slane %v6670_v17, 2 }
0x1033   :  { %v5747_v18 = vpop.eup %5746 }
0x1034   :  { %1669 = vrot.lane.b32.xlu1 %v5747_v18, %s5935_s0 }
0x109a   :  { %v1564_v20 = vpop.permute.xlu0 %1563 }
0x109b   :  { %v6675_v22 = vmul.f32 %v5741_v0, %v1564_v20  ;;  %v1772_v0 = vrot.slane %v6666_v12, 6 }
0x109d   :  { %v1685_v23 = vrot.slane %v6675_v22, 2 }
0x109f   :  { %1686 = vrot.lane.b32.xlu0 %v1685_v23, %s5936_s4 }
0x10a6   :  { %v1670_v26 = vpop.permute.xlu1 %1669 }
0x10a7   :  { %v6679_v27 = vmul.f32 %v5743_v3, %v1670_v26 }
0x10a9   :  { %v1791_v28 = vrot.slane %v6679_v27, 4 }
0x10ab   :  { %1792 = vrot.lane.b32.xlu1 %v1791_v28, %s5936_s4 }
0x1111   :  { %v1687_v29 = vpop.permute.xlu0 %1686 }
0x1112   :  { %4902 = vmatmul.mubr.msk.f32.vlgmr.msra.gmra.mrb[24].mxu1 %vm361_vm2, %v1687_v29 }
0x1113   :  { %5340 = vmatpush3.bf16.msra.mxu1 %v6215_v34  ;;  %4912 = vmatprep.mubr.msk.f32.mxu1 %vm5933_vm0, %v5934_v21 }
0x1114   :  { %5341 = vmatprep.subr.bf16.mxu1 %v5932_v7 }
0x1117   :  { %5343 = vmatpush3.bf16.msra.mxu1 %v6238_v43 }
0x1118   :  { %5344 = vmatprep.subr.bf16.mxu1 %v5932_v7 }
0x111d   :  { %v1793_v30 = vpop.permute.xlu1 %1792 }
0x111e   :  { %4913 = vmatmul.mubr.msk.f32.vlgmr.msra.gmra.mrb[26].mxu1 %vm361_vm2, %v1793_v30  ;;  %v1907_v30 = vld [vmem:[#allocation2 + $0x10] sm:$0xc0] }
0x111f   :  { %5346 = vmatpush3.bf16.msra.mxu1 %v6178_v19  ;;  %4923 = vmatprep.mubr.msk.f32.mxu1 %vm5933_vm0, %v5934_v21 }
0x1120   :  { %5347 = vmatprep.subr.bf16.mxu1 %v5932_v7 }
0x1123   :  { %5349 = vmatpush3.bf16.msra.mxu1 %v6193_v25 }
0x1124   :  { %5350 = vmatprep.subr.bf16.mxu1 %v5932_v7 }
0x11e5   :  { %v1756_v31 = vpop.f32.mrb[24].mxu1 }
0x11e6   :  { %v1761_v32 = vrot.slane %v1756_v31, 4  ;;  %v4903_v35 = vpop.f32.mrb[25].mxu1 }
0x11e8   :  { %v1763_v38 = vadd.f32 %v1761_v32, %v1683_v37  ;;  %v1908_v32 = vld [vmem:[#allocation2 + $0x8] sm:$0x3] }
0x11ea   :  { %5748 = vtanh.f32 %v1763_v38  ;;  %v4547_v25 = vmul.f32 -1.442695, %v1763_v38 }
0x11f1   :  { %v1862_v39 = vpop.f32.mrb[26].mxu1 }
0x11f2   :  { %v1867_v42 = vrot.slane %v1862_v39, 6  ;;  %v4914_v45 = vpop.f32.mrb[27].mxu1 }
0x11f4   :  { %v5749_v19 = vpop.eup %5748  ;;  %v1869_v48 = vadd.f32 %v1867_v42, %v1684_v47 }
0x11f5   :  { %1776 = vrot.lane.b32.xlu0 %v5749_v19, %s5935_s0 }
0x11f6   :  { %5750 = vtanh.f32 %v1869_v48  ;;  %v4549_v51 = vmul.f32 -1.442695, %v1869_v48 }
0x11f7   :  { %5752 = vpow2.f32 %v4547_v25 }
0x11f8   :  { %5754 = vpow2.f32 %v4549_v51 }
0x1200   :  { %v5751_v50 = vpop.eup %5750 }
0x1201   :  { %1882 = vrot.lane.b32.xlu1 %v5751_v50, %s5935_s0  ;;  %v5753_v52 = vpop.eup %5752 }
0x1202   :  { %v1767_v53 = vadd.f32 1.0, %v5753_v52  ;;  %v5755_v54 = vpop.eup %5754 }
0x1203   :  { %v1873_v55 = vadd.f32 1.0, %v5755_v54 }
0x1204   :  { %5756 = vrcp.f32 %v1767_v53 }
0x1205   :  { %5758 = vrcp.f32 %v1873_v55 }
0x120e   :  { %v5757_v56 = vpop.eup %5756 }
0x120f   :  { %v5759_v61 = vpop.eup %5758  ;;  %v1774_v1 = vmul.f32 %v5757_v56, %v1772_v0 }
0x1210   :  { %v1880_v6 = vmul.f32 %v5759_v61, %v1878_v4  ;;  %v2133_v4 = vld [vmem:[%s7682_s5 + $0x18] sm:$0xff] }
0x1267   :  { %v1777_v58 = vpop.permute.xlu0 %1776 }
0x1268   :  { %v1779_v59 = vmul.f32 %v5757_v56, %v1777_v58 }
0x126a   :  { %1781 = vrot.lane.b32.xlu0 %v1779_v59, %s5936_s4 }
0x1273   :  { %v1883_v62 = vpop.permute.xlu1 %1882 }
0x1274   :  { %v1885_v63 = vmul.f32 %v5759_v61, %v1883_v62 }
0x1276   :  { %1887 = vrot.lane.b32.xlu1 %v1885_v63, %s5936_s4 }
0x12dc   :  { %v1782_v2 = vpop.permute.xlu0 %1781 }
0x12dd   :  { %v6702_v3 = vadd.f32 %v1782_v2, %v1774_v1  ;;  %v2131_v2 = vld [vmem:[%s7682_s5 + $0x8] sm:$0xff] }
0x12df   :  { %5760 = vtanh.f32 %v6702_v3  ;;  %v1996_v59 = vrot.slane %v6702_v3, 6  ;;  %v2135_v3 = vld [vmem:[%s7682_s5 + $0x28] sm:$0xff] }
0x12e8   :  { %v1888_v8 = vpop.permute.xlu1 %1887 }
0x12e9   :  { %v5761_v10 = vpop.eup %5760  ;;  %v6706_v11 = vadd.f32 %v1888_v8, %v1880_v6  ;;  %v5356_v6 = vpack.c.bf16 %v2135_v3, %v2131_v2  ;;  %v2137_v8 = vld [vmem:[%s7682_s5 + $0x38] sm:$0xff] }
0x12ea   :  { %1787 = vrot.lane.b32.xlu0 %v5761_v10, %s5935_s0  ;;  %v2130_v10 = vld [vmem:[%s7682_s5] sm:$0xff] }
0x12eb   :  { %5762 = vtanh.f32 %v6706_v11  ;;  %5357 = vmatprep.subr.bf16.mxu0 %v5356_v6 }
0x12f5   :  { %v5763_v13 = vpop.eup %5762 }
0x12f6   :  { %1893 = vrot.lane.b32.xlu1 %v5763_v13, %s5935_s0  ;;  %v5372_v13 = vpack.c.bf16 %v2137_v8, %v2133_v4  ;;  %v2346_v4 = vld [vmem:[%s7684_s7 + $0x8] sm:$0xff] }
0x135c   :  { %v1788_v12 = vpop.permute.xlu0 %1787 }
0x135d   :  { %v6711_v14 = vmul.f32 %v5757_v56, %v1788_v12 }
0x135f   :  { %v1909_v15 = vrot.slane %v6711_v14, 4 }
0x1361   :  { %1910 = vrot.lane.b32.xlu0 %v1909_v15, %s5936_s4  ;;  %v2132_v15 = vld [vmem:[%s7682_s5 + $0x10] sm:$0xff] }
0x1368   :  { %v1894_v16 = vpop.permute.xlu1 %1893 }
0x1369   :  { %v1896_v17 = vmul.f32 %v5759_v61, %v1894_v16  ;;  %v2136_v16 = vld [vmem:[%s7682_s5 + $0x30] sm:$0xff] }
0x136b   :  { %v2015_v18 = vrot.slane %v1896_v17, 2 }
0x136d   :  { %2016 = vrot.lane.b32.xlu1 %v2015_v18, %s5936_s4 }
0x13d3   :  { %v1911_v20 = vpop.permute.xlu0 %1910 }
0x13d4   :  { %4924 = vmatmul.mubr.msk.f32.vlgmr.msra.gmra.mrb[28].mxu1 %vm361_vm2, %v1911_v20  ;;  %v5374_v20 = vpack.c.bf16 %v2136_v16, %v2132_v15 }
0x13d5   :  { %5352 = vmatpush3.bf16.msra.mxu1 %v6215_v34  ;;  %4934 = vmatprep.mubr.msk.f32.mxu1 %vm5933_vm0, %v5934_v21 }
0x13d6   :  { %5353 = vmatprep.subr.bf16.mxu1 %v5932_v7 }
0x13d9   :  { %5355 = vmatpush3.bf16.msra.mxu1 %v6238_v43 }
0x13da   :  { %5373 = vmatprep.subr.bf16.mxu1 %v5372_v13 }
0x13df   :  { %v2017_v23 = vpop.permute.xlu1 %2016 }
0x13e0   :  { %4935 = vmatmul.mubr.msk.f32.vlgmr.msra.gmra.mrb[30].mxu1 %vm361_vm2, %v2017_v23  ;;  %v2143_v23 = vld [vmem:[%s7682_s5 + $0x68] sm:$0xff] }
0x13e1   :  { %2332 = vmatprep.mubr.f32.mxu1 %v5934_v21  ;;  %5375 = vmatpush1.bf16.msra.mxu1 %v5374_v20  ;;  %v2351_v20 = vld [vmem:[%s7684_s7 + $0x30] sm:$0xff] }
0x14a7   :  { %v1980_v26 = vpop.f32.mrb[28].mxu1 }
0x14a8   :  { %v1985_v28 = vrot.slane %v1980_v26, 2  ;;  %v4925_v29 = vpop.f32.mrb[29].mxu1  ;;  %v2141_v26 = vld [vmem:[%s7682_s5 + $0x58] sm:$0xff] }
0x14aa   :  { %v1987_v31 = vadd.f32 %v1985_v28, %v1907_v30  ;;  %v2145_v28 = vld [vmem:[%s7682_s5 + $0x78] sm:$0xff]  ;;  %v2138_v30 = vld [vmem:[%s7682_s5 + $0x40] sm:$0xff] }
0x14ab   :  { %v5376_v29 = vpack.c.bf16 %v2145_v28, %v2141_v26  ;;  %v2356_v26 = vld [vmem:[%s7684_s7 + $0x58] sm:$0xff] }
0x14ac   :  { %5764 = vtanh.f32 %v1987_v31  ;;  %v4551_v39 = vmul.f32 -1.442695, %v1987_v31  ;;  %v2142_v31 = vld [vmem:[%s7682_s5 + $0x60] sm:$0xff] }
0x14ad   :  { %5377 = vmatprep.subr.bf16.mxu1 %v5376_v29 }
0x14b3   :  { %v2086_v34 = vpop.f32.mrb[30].mxu1 }
0x14b4   :  { %v2090_v35 = vadd.f32 %v2086_v34, %v1908_v32  ;;  %v4936_v37 = vpop.f32.mrb[31].mxu1  ;;  %v2140_v32 = vld [vmem:[%s7682_s5 + $0x50] sm:$0xff]  ;;  %v5362_v34 = vpack.c.bf16 %v2142_v31, %v2138_v30  ;;  %v2353_v30 = vld [vmem:[%s7684_s7 + $0x40] sm:$0xff] }
0x14b5   :  { %v2355_v31 = vld [vmem:[%s7684_s7 + $0x50] sm:$0xff] }
0x14b6   :  { %v5765_v38 = vpop.eup %5764  ;;  %5766 = vtanh.f32 %v2090_v35  ;;  %v4553_v42 = vmul.f32 -1.442695, %v2090_v35  ;;  %v2144_v35 = vld [vmem:[%s7682_s5 + $0x70] sm:$0xff] }
0x14b7   :  { %2000 = vrot.lane.b32.xlu1 %v5765_v38, %s5935_s0  ;;  %5768 = vpow2.f32 %v4551_v39  ;;  %v5378_v38 = vpack.c.bf16 %v2144_v35, %v2140_v32  ;;  %v2151_v39 = vld [vmem:[%s7682_s5 + $0xa8] sm:$0xff]  ;;  %v2360_v32 = vld [vmem:[%s7684_s7 + $0x78] sm:$0xff] }
0x14b8   :  { %5770 = vpow2.f32 %v4553_v42  ;;  %v2149_v42 = vld [vmem:[%s7682_s5 + $0x98] sm:$0xff] }
0x14b9   :  { %5379 = vmatpush1.bf16.msra.mxu1 %v5378_v38  ;;  %v2359_v38 = vld [vmem:[%s7684_s7 + $0x70] sm:$0xff] }
0x14c0   :  { %v5767_v43 = vpop.eup %5766 }
0x14c1   :  { %2103 = vrot.lane.b32.xlu0 %v5767_v43, %s5935_s0  ;;  %v5769_v45 = vpop.eup %5768  ;;  %v2147_v43 = vld [vmem:[%s7682_s5 + $0x88] sm:$0xff] }
0x14c2   :  { %v1991_v47 = vadd.f32 1.0, %v5769_v45  ;;  %v5771_v19 = vpop.eup %5770  ;;  %v5364_v45 = vpack.c.bf16 %v2151_v39, %v2147_v43  ;;  %v2362_v43 = vld [vmem:[%s7684_s7 + $0x88] sm:$0xff]  ;;  %v2364_v39 = vld [vmem:[%s7684_s7 + $0x98] sm:$0xff] }
0x14c3   :  { %v2094_v48 = vadd.f32 1.0, %v5771_v19  ;;  %v2150_v19 = vld [vmem:[%s7682_s5 + $0xa0] sm:$0xff] }
0x14c4   :  { %5772 = vrcp.f32 %v1991_v47  ;;  %v2153_v47 = vld [vmem:[%s7682_s5 + $0xb8] sm:$0xff] }
0x14c5   :  { %5774 = vrcp.f32 %v2094_v48  ;;  %v5380_v48 = vpack.c.bf16 %v2153_v47, %v2149_v42  ;;  %v5404_v47 = vpack.c.bf16 %v2364_v39, %v2362_v43  ;;  %v2397_v43 = vld [vmem:[%s7684_s7 + $0x1a0] sm:$0xff]  ;;  %v2399_v39 = vld [vmem:[%s7684_s7 + $0x1b0] sm:$0xff] }
0x14c7   :  { %5381 = vmatprep.subr.bf16.mxu1 %v5380_v48  ;;  %v2366_v48 = vld [vmem:[%s7684_s7 + $0xa8] sm:$0xff] }
0x14ce   :  { %v6726_v50 = vpop.eup %5772 }
0x14cf   :  { %v6732_v52 = vpop.eup %5774 }
0x1529   :  { %v2001_v25 = vpop.permute.xlu1 %2000 }
0x152a   :  { %v2003_v51 = vmul.f32 %v6726_v50, %v2001_v25 }
0x152c   :  { %2005 = vrot.lane.b32.xlu1 %v2003_v51, %s5936_s4  ;;  %v2148_v51 = vld [vmem:[%s7682_s5 + $0x90] sm:$0xff] }
0x1530   :  { %782 = vrot.lane.b32.xlu1 %v6531_v5, %s5936_s4 }
0x1533   :  { %v2104_v53 = vpop.permute.xlu0 %2103 }
0x1534   :  { %v2106_v54 = vmul.f32 %v6732_v52, %v2104_v53  ;;  %1231 = vrot.lane.b32.xlu1 %v6603_v46, %s5936_s4  ;;  %v2099_v46 = vrot.slane %v6706_v11, 2  ;;  %v2134_v11 = vld [vmem:[%s7682_s5 + $0x20] sm:$0xff]  ;;  %v2152_v53 = vld [vmem:[%s7682_s5 + $0xb0] sm:$0xff] }
0x1535   :  { %v5358_v12 = vpack.c.bf16 %v2134_v11, %v2130_v10  ;;  %v2345_v10 = vld [vmem:[%s7684_s7] sm:$0xff]  ;;  %v2350_v11 = vld [vmem:[%s7684_s7 + $0x28] sm:$0xff] }
0x1536   :  { %2108 = vrot.lane.b32.xlu0 %v2106_v54, %s5936_s4  ;;  %v2101_v56 = vmul.f32 %v6732_v52, %v2099_v46  ;;  %v5382_v54 = vpack.c.bf16 %v2152_v53, %v2148_v51  ;;  %v2157_v46 = vld [vmem:[%s7682_s5 + $0xd8] sm:$0xff] }
0x1537   :  { %5359 = vmatpush1.bf16.msra.mxu0 %v5358_v12 }
0x1538   :  { %1458 = vrot.lane.b32.xlu1 %v6640_v33, %s5935_s0  ;;  %5383 = vmatpush1.bf16.msra.mxu1 %v5382_v54  ;;  %v2365_v54 = vld [vmem:[%s7684_s7 + $0xa0] sm:$0xff] }
0x153c   :  { %1903 = vrot.lane.b32.xlu1 %v1896_v17, %s5935_s0  ;;  %v2139_v17 = vld [vmem:[%s7682_s5 + $0x48] sm:$0xff] }
0x1540   :  { %565 = vrot.lane.b32.xlu1 %v6498_v24, %s5935_s0 }
0x1544   :  { %1014 = vrot.lane.b32.xlu1 %v6571_v60, %s5935_s0 }
0x1548   :  { %1674 = vrot.lane.b32.xlu1 %v6675_v22, %s5936_s4  ;;  %v1998_v22 = vmul.f32 %v6726_v50, %v1996_v59 }
0x159e   :  { %v2006_v5 = vpop.permute.xlu1 %2005 }
0x159f   :  { %v2008_v62 = vadd.f32 %v2006_v5, %v1998_v22  ;;  %v2155_v5 = vld [vmem:[%s7682_s5 + $0xc8] sm:$0xff]  ;;  %v2156_v22 = vld [vmem:[%s7682_s5 + $0xd0] sm:$0xff] }
0x15a2   :  { %v783_v55 = vpop.permute.xlu1 %782 }
0x15a3   :  { %786 = vst.msk [vmem:[#allocation3] sm:$0xc] %vm785_vm3, %v783_v55  ;;  %v2159_v55 = vld [vmem:[%s7682_s5 + $0xe8] sm:$0xff] }
0x15a6   :  { %v1232_v33 = vpop.permute.xlu1 %1231 }
0x15a7   :  { %1235 = vst.msk [vmem:[#allocation3] sm:$0xc0] %vm1234_vm4, %v1232_v33  ;;  %v5368_v33 = vpack.c.bf16 %v2159_v55, %v2155_v5  ;;  %v2367_v5 = vld [vmem:[%s7684_s7 + $0xb0] sm:$0xff]  ;;  %v2370_v55 = vld [vmem:[%s7684_s7 + $0xc8] sm:$0xff] }
0x15a8   :  { %v2109_v24 = vpop.permute.xlu0 %2108 }
0x15a9   :  { %v2111_v58 = vadd.f32 %v2109_v24, %v2101_v56  ;;  %v2161_v56 = vld [vmem:[%s7682_s5 + $0xf8] sm:$0xff]  ;;  %v2154_v24 = vld [vmem:[%s7682_s5 + $0xc0] sm:$0xff] }
0x15aa   :  { %v1459_v60 = vpop.permute.xlu1 %1458 }
0x15ab   :  { %5776 = vtanh.f32 %v2111_v58  ;;  %1461 = vst.msk [vmem:[#allocation3] sm:$0xc0] %vm568_vm5, %v1459_v60  ;;  %v2158_v58 = vld [vmem:[%s7682_s5 + $0xe0] sm:$0xff]  ;;  %v5384_v60 = vpack.c.bf16 %v2161_v56, %v2157_v46  ;;  %v2372_v46 = vld [vmem:[%s7684_s7 + $0xd8] sm:$0xff] }
0x15ac   :  { %5778 = vtanh.f32 %v2008_v62  ;;  %v5370_v59 = vpack.c.bf16 %v2158_v58, %v2154_v24  ;;  %v5412_v56 = vpack.c.bf16 %v2372_v46, %v2370_v55  ;;  %v2369_v24 = vld [vmem:[%s7684_s7 + $0xc0] sm:$0xff]  ;;  %v2371_v58 = vld [vmem:[%s7684_s7 + $0xd0] sm:$0xff] }
0x15ad   :  { %5385 = vmatprep.subr.bf16.mxu1 %v5384_v60  ;;  %v2374_v60 = vld [vmem:[%s7684_s7 + $0xe8] sm:$0xff]  ;;  %v2407_v55 = vld [vmem:[%s7684_s7 + $0x1f0] sm:$0xff] }
0x15ae   :  { %v1904_v61 = vpop.permute.xlu1 %1903 }
0x15af   :  { %1906 = vst.msk [vmem:[#allocation3] sm:$0xc] %vm1017_vm6, %v1904_v61  ;;  %v2160_v61 = vld [vmem:[%s7682_s5 + $0xf0] sm:$0xff] }
0x15b0   :  { %v5386_v62 = vpack.c.bf16 %v2160_v61, %v2156_v22  ;;  %v5414_v22 = vpack.c.bf16 %v2371_v58, %v2369_v24  ;;  %v2643_v58 = vld [vmem:[%s7685_s8] sm:$0xff] }
0x15b2   :  { %v566_v63 = vpop.permute.xlu1 %565  ;;  %5387 = vmatpush1.bf16.msra.mxu1 %v5386_v62  ;;  %v2373_v62 = vld [vmem:[%s7684_s7 + $0xe0] sm:$0xff] }
0x15b3   :  { %569 = vst.msk [vmem:[#allocation3 + $0x8] sm:$0xc0] %vm568_vm5, %v566_v63  ;;  %5516 = vmatprep.subr.bf16.mxu1 %v5932_v7 }
0x15b5   :  { %v5777_v0 = vpop.eup %5776 }
0x15b6   :  { %2114 = vrot.lane.b32.xlu0 %v5777_v0, %s5935_s0  ;;  %v1015_v1 = vpop.permute.xlu1 %1014  ;;  %v5779_v37 = vpop.eup %5778 }
0x15b7   :  { %1018 = vst.msk [vmem:[#allocation3 + $0x8] sm:$0xc] %vm1017_vm6, %v1015_v1 }
0x15ba   :  { %1008 = vrot.lane.b32.xlu0 %v6567_v57, %s5936_s4  ;;  %v1675_v18 = vpop.permute.xlu1 %1674  ;;  %v5360_v57 = vpack.c.bf16 %v2143_v23, %v2139_v17  ;;  %v2354_v23 = vld [vmem:[%s7684_s7 + $0x48] sm:$0xff] }
0x15bb   :  { %1677 = vst.msk [vmem:[#allocation3 + $0x8] sm:$0xc] %vm785_vm3, %v1675_v18  ;;  %v2349_v18 = vld [vmem:[%s7684_s7 + $0x20] sm:$0xff]  ;;  %v5396_v29 = vpack.c.bf16 %v2356_v26, %v2354_v23 }
0x15bc   :  { %5361 = vmatprep.subr.bf16.mxu0 %v5360_v57  ;;  %v5394_v28 = vpack.c.bf16 %v2351_v20, %v2349_v18  ;;  %v2392_v18 = vld [vmem:[%s7684_s7 + $0x178] sm:$0xff]  ;;  %v2389_v26 = vld [vmem:[%s7684_s7 + $0x160] sm:$0xff] }
0x15bd   :  { %5363 = vmatpush1.bf16.msra.mxu0 %v5362_v34  ;;  %v5398_v34 = vpack.c.bf16 %v2355_v31, %v2353_v30 }
0x15be   :  { %2011 = vrot.lane.b32.xlu0 %v5779_v37, %s5935_s0  ;;  %5365 = vmatprep.subr.bf16.mxu0 %v5364_v45  ;;  %v2357_v37 = vld [vmem:[%s7684_s7 + $0x60] sm:$0xff] }
0x15bf   :  { %v5402_v42 = vpack.c.bf16 %v2359_v38, %v2357_v37 }
0x15c2   :  { %1679 = vrot.lane.b32.xlu0 %v6679_v27, %s5935_s0  ;;  %v2146_v27 = vld [vmem:[%s7682_s5 + $0x80] sm:$0xff] }
0x15c3   :  { %v5366_v25 = vpack.c.bf16 %v2150_v19, %v2146_v27  ;;  %v2361_v27 = vld [vmem:[%s7684_s7 + $0x80] sm:$0xff]  ;;  %v2363_v19 = vld [vmem:[%s7684_s7 + $0x90] sm:$0xff] }
0x15c4   :  { %v5406_v51 = vpack.c.bf16 %v2363_v19, %v2361_v27  ;;  %v2401_v19 = vld [vmem:[%s7684_s7 + $0x1c0] sm:$0xff] }
0x15c5   :  { %5367 = vmatpush1.bf16.msra.mxu0 %v5366_v25  ;;  %v2368_v25 = vld [vmem:[%s7684_s7 + $0xb8] sm:$0xff] }
0x15c6   :  { %5369 = vmatprep.subr.bf16.mxu0 %v5368_v33  ;;  %v5408_v53 = vpack.c.bf16 %v2368_v25, %v2366_v48  ;;  %v5410_v33 = vpack.c.bf16 %v2367_v5, %v2365_v54  ;;  %v2403_v48 = vld [vmem:[%s7684_s7 + $0x1d0] sm:$0xff]  ;;  %v2405_v5 = vld [vmem:[%s7684_s7 + $0x1e0] sm:$0xff] }
0x15c7   :  { %v5446_v25 = vpack.c.bf16 %v2403_v48, %v2401_v19  ;;  %v5450_v46 = vpack.c.bf16 %v2407_v55, %v2405_v5  ;;  %v2425_v5 = vld [vmem:[%s7684_s7 + $0x280] sm:$0xff]  ;;  %v2427_v55 = vld [vmem:[%s7684_s7 + $0x290] sm:$0xff] }
0x15c9   :  { %5371 = vmatpush1.bf16.msra.mxu0 %v5370_v59  ;;  %v2376_v59 = vld [vmem:[%s7684_s7 + $0xf8] sm:$0xff] }
0x15ca   :  { %v5416_v61 = vpack.c.bf16 %v2376_v59, %v2374_v60  ;;  %v2644_v60 = vld [vmem:[%s7685_s8 + $0x8] sm:$0xff] }
0x15cb   :  { %v7092_v59 = vpack.c.bf16 %v2644_v60, %v2643_v58  ;;  %v2429_v60 = vld [vmem:[%s7684_s7 + $0x2a0] sm:$0xff] }
0x1628   :  { %v2115_v63 = vpop.permute.xlu0 %2114 }
0x1629   :  { %v2117_v0 = vmul.f32 %v6732_v52, %v2115_v63  ;;  %v2348_v52 = vld [vmem:[%s7684_s7 + $0x18] sm:$0xff]  ;;  %v2375_v63 = vld [vmem:[%s7684_s7 + $0xf0] sm:$0xff] }
0x162a   :  { %v5388_v6 = vpack.c.bf16 %v2348_v52, %v2346_v4  ;;  %v2377_v4 = vld [vmem:[%s7684_s7 + $0x100] sm:$0xff]  ;;  %v2379_v52 = vld [vmem:[%s7684_s7 + $0x110] sm:$0xff] }
0x162b   :  { %2124 = vrot.lane.b32.xlu0 %v2117_v0, %s5935_s0  ;;  %v2378_v0 = vld [vmem:[%s7684_s7 + $0x108] sm:$0xff] }
0x162c   :  { %v1009_v1 = vpop.permute.xlu0 %1008  ;;  %5389 = vmatprep.subr.bf16.mxu0 %v5388_v6  ;;  %v2382_v6 = vld [vmem:[%s7684_s7 + $0x128] sm:$0xff] }
0x162d   :  { %1012 = vst.msk [vmem:[#allocation3] sm:$0x30] %vm1011_vm7, %v1009_v1  ;;  %v2380_v1 = vld [vmem:[%s7684_s7 + $0x118] sm:$0xff] }
0x162f   :  { %788 = vrot.lane.b32.xlu0 %v6535_v9, %s5935_s0 }
0x1630   :  { %v2012_v2 = vpop.permute.xlu0 %2011 }
0x1631   :  { %v2014_v3 = vmul.f32 %v6726_v50, %v2012_v2  ;;  %v5418_v2 = vpack.c.bf16 %v2375_v63, %v2373_v62  ;;  %v2647_v63 = vld [vmem:[%s7686_s9] sm:$0xff] }
0x1633   :  { %1237 = vrot.lane.b32.xlu0 %v6607_v49, %s5935_s0  ;;  %2119 = vrot.lane.b32.xlu1 %v2014_v3, %s5936_s4  ;;  %v2347_v49 = vld [vmem:[%s7684_s7 + $0x10] sm:$0xff]  ;;  %v5420_v3 = vpack.c.bf16 %v2380_v1, %v2378_v0  ;;  %v2648_v0 = vld [vmem:[%s7686_s9 + $0x8] sm:$0xff] }
0x1634   :  { %v1680_v8 = vpop.permute.xlu0 %1679  ;;  %v5390_v13 = vpack.c.bf16 %v2347_v49, %v2345_v10  ;;  %v2381_v10 = vld [vmem:[%s7684_s7 + $0x120] sm:$0xff]  ;;  %v2383_v49 = vld [vmem:[%s7684_s7 + $0x130] sm:$0xff]  ;;  %v7112_v1 = vpack.c.bf16 %v2648_v0, %v2647_v63  ;;  %v2436_v63 = vld [vmem:[%s7684_s7 + $0x2d8] sm:$0xff] }
0x1635   :  { %1682 = vst.msk [vmem:[#allocation3] sm:$0x30] %vm791_vm8, %v1680_v8  ;;  %v2384_v8 = vld [vmem:[%s7684_s7 + $0x138] sm:$0xff] }
0x1637   :  { %1898 = vrot.lane.b32.xlu0 %v6711_v14, %s5936_s4  ;;  %v2352_v14 = vld [vmem:[%s7684_s7 + $0x38] sm:$0xff] }
0x1638   :  { %v5392_v17 = vpack.c.bf16 %v2352_v14, %v2350_v11  ;;  %v2386_v11 = vld [vmem:[%s7684_s7 + $0x148] sm:$0xff]  ;;  %v2388_v14 = vld [vmem:[%s7684_s7 + $0x158] sm:$0xff] }
0x169d   :  { %v2125_v9 = vpop.permute.xlu0 %2124 }
0x169e   :  { %2127 = vst.msk [vmem:[#allocation3] sm:$0x3] %vm1240_vm9, %v2125_v9  ;;  %v5422_v9 = vpack.c.bf16 %v2379_v52, %v2377_v4  ;;  %v7139_v52 = vld [vmem:[%s7683_s6] sm:$0xf] }
0x16a1   :  { %v789_v50 = vpop.permute.xlu0 %788 }
0x16a2   :  { %792 = vst.msk [vmem:[#allocation3 + $0x8] sm:$0x30] %vm791_vm8, %v789_v50  ;;  %v5424_v50 = vpack.c.bf16 %v2384_v8, %v2382_v6  ;;  %v2171_v6 = vrot.slane %v7139_v52, %v6481_v44  ;;  %v2167_v8 = vrot.slane %v7139_v52, %v6475_v41 }
0x16a5   :  { %v2120_v12 = vpop.permute.xlu1 %2119  ;;  %v1238_v15 = vpop.permute.xlu0 %1237  ;;  %v2128_v16 = vld [vmem:[#allocation3] sm:$0xff] }
0x16a6   :  { %2122 = vst.msk [vmem:[#allocation3 + $0x8] sm:$0xc0] %vm1234_vm4, %v2120_v12  ;;  %4554 = vmatmul.mubr.msk.f32.vlgmr.msra.gmra.mrb[4].mxu0 %vm2184_vm10, %v2128_v16  ;;  %4556 = vmatmul.mubr.msk.f32.vlgmr.msra.gmra.mrb[32].mxu1 %vm2184_vm10, %v2128_v16  ;;  %v5428_v12 = vpack.c.bf16 %v2388_v14, %v2386_v11  ;;  %v2387_v16 = vld [vmem:[%s7684_s7 + $0x150] sm:$0xff]  ;;  %v2414_v11 = vld [vmem:[%s7684_s7 + $0x228] sm:$0xff]  ;;  %v2416_v14 = vld [vmem:[%s7684_s7 + $0x238] sm:$0xff] }
0x16a7   :  { %1241 = vst.msk [vmem:[#allocation3 + $0x8] sm:$0x3] %vm1240_vm9, %v1238_v15  ;;  %2261 = vmatprep.mubr.f32.mxu0 %v5934_v21  ;;  %2338 = vmatprep.mubr.f32.mxu1 %v5934_v21  ;;  %v2385_v15 = vld [vmem:[%s7684_s7 + $0x140] sm:$0xff] }
0x16a8   :  { %1456 = vst.msk [vmem:[#allocation3 + $0x8] sm:$0x3] %vm562_vm1, %v6644_v36  ;;  %5391 = vmatpush1.bf16.msra.mxu0 %v5390_v13  ;;  %v2358_v36 = vld [vmem:[%s7684_s7 + $0x68] sm:$0xff]  ;;  %v5426_v13 = vpack.c.bf16 %v2383_v49, %v2381_v10  ;;  %v5430_v20 = vpack.c.bf16 %v2387_v16, %v2385_v15  ;;  %5518 = vmatpush3.bf16.msra.mxu1 %v7092_v59 }
0x16a9   :  { %v1899_v57 = vpop.permute.xlu0 %1898  ;;  %5393 = vmatprep.subr.bf16.mxu0 %v5392_v17  ;;  %v5400_v35 = vpack.c.bf16 %v2360_v32, %v2358_v36  ;;  %v2390_v17 = vld [vmem:[%s7684_s7 + $0x168] sm:$0xff]  ;;  %v2393_v36 = vld [vmem:[%s7684_s7 + $0x180] sm:$0xff]  ;;  %v2395_v32 = vld [vmem:[%s7684_s7 + $0x190] sm:$0xff]  ;;  %5519 = vmatprep.subr.bf16.mxu1 %v5932_v7 }
0x16aa   :  { %1901 = vst.msk [vmem:[#allocation3 + $0x8] sm:$0x30] %vm1011_vm7, %v1899_v57  ;;  %v5432_v23 = vpack.c.bf16 %v2392_v18, %v2390_v17  ;;  %v2394_v57 = vld [vmem:[%s7684_s7 + $0x188] sm:$0xff]  ;;  %v5438_v37 = vpack.c.bf16 %v2395_v32, %v2393_v36  ;;  %v5456_v18 = vpack.c.bf16 %v2416_v14, %v2414_v11  ;;  %v2178_v36 = vsub.s32 3, %v6472_v40  ;;  %v2437_v11 = vld [vmem:[%s7684_s7 + $0x2e0] sm:$0xff]  ;;  %v2439_v14 = vld [vmem:[%s7684_s7 + $0x2f0] sm:$0xff] }
0x16ab   :  { %v2422_v32 = vld [vmem:[%s7684_s7 + $0x268] sm:$0xff] }
0x16ac   :  { %5395 = vmatpush1.bf16.msra.mxu0 %v5394_v28  ;;  %v2391_v28 = vld [vmem:[%s7684_s7 + $0x170] sm:$0xff] }
0x16ad   :  { %5397 = vmatprep.subr.bf16.mxu0 %v5396_v29  ;;  %v2396_v29 = vld [vmem:[%s7684_s7 + $0x198] sm:$0xff]  ;;  %v5434_v30 = vpack.c.bf16 %v2391_v28, %v2389_v26  ;;  %v2418_v26 = vld [vmem:[%s7684_s7 + $0x248] sm:$0xff] }
0x16ae   :  { %v5436_v31 = vpack.c.bf16 %v2396_v29, %v2394_v57  ;;  %v2420_v28 = vld [vmem:[%s7684_s7 + $0x258] sm:$0xff] }
0x16af   :  { %v5460_v29 = vpack.c.bf16 %v2420_v28, %v2418_v26 }
0x16b0   :  { %5399 = vmatpush1.bf16.msra.mxu0 %v5398_v34  ;;  %v2398_v34 = vld [vmem:[%s7684_s7 + $0x1a8] sm:$0xff] }
0x16b1   :  { %v2129_v45 = vld [vmem:[#allocation3 + $0x8] sm:$0xff]  ;;  %5401 = vmatprep.subr.bf16.mxu0 %v5400_v35  ;;  %v2400_v35 = vld [vmem:[%s7684_s7 + $0x1b8] sm:$0xff] }
0x16b2   :  { %4555 = vmatmul.mubr.msk.f32.gmra.mrb[6].mxu0 %vm2184_vm10, %v2129_v45  ;;  %4557 = vmatmul.mubr.msk.f32.gmra.mrb[34].mxu1 %vm2184_vm10, %v2129_v45  ;;  %v5440_v38 = vpack.c.bf16 %v2400_v35, %v2398_v34  ;;  %v2404_v45 = vld [vmem:[%s7684_s7 + $0x1d8] sm:$0xff] }
0x16b3   :  { %4945 = vmatprep.mubr.msk.f32.mxu1 %vm5933_vm0, %v5934_v21  ;;  %v2424_v34 = vld [vmem:[%s7684_s7 + $0x278] sm:$0xff] }
0x16b4   :  { %5403 = vmatpush1.bf16.msra.mxu0 %v5402_v42  ;;  %v2402_v42 = vld [vmem:[%s7684_s7 + $0x1c8] sm:$0xff] }
0x16b5   :  { %5405 = vmatprep.subr.bf16.mxu0 %v5404_v47  ;;  %v5442_v47 = vpack.c.bf16 %v2399_v39, %v2397_v43  ;;  %v5444_v27 = vpack.c.bf16 %v2404_v45, %v2402_v42  ;;  %v2423_v43 = vld [vmem:[%s7684_s7 + $0x270] sm:$0xff]  ;;  %v7191_v39 = vrot.slane %v7139_v52, %v2178_v36 }
0x16b8   :  { %5407 = vmatpush1.bf16.msra.mxu0 %v5406_v51  ;;  %v2406_v51 = vld [vmem:[%s7684_s7 + $0x1e8] sm:$0xff] }
0x16b9   :  { %5409 = vmatprep.subr.bf16.mxu0 %v5408_v53  ;;  %v2408_v53 = vld [vmem:[%s7684_s7 + $0x1f8] sm:$0xff] }
0x16ba   :  { %v5448_v54 = vpack.c.bf16 %v2408_v53, %v2406_v51 }
0x16bc   :  { %5411 = vmatpush1.bf16.msra.mxu0 %v5410_v33  ;;  %v2410_v33 = vld [vmem:[%s7684_s7 + $0x208] sm:$0xff] }
0x16bd   :  { %5413 = vmatprep.subr.bf16.mxu0 %v5412_v56  ;;  %v2412_v56 = vld [vmem:[%s7684_s7 + $0x218] sm:$0xff] }
0x16be   :  { %v5452_v24 = vpack.c.bf16 %v2412_v56, %v2410_v33  ;;  %v2430_v33 = vld [vmem:[%s7684_s7 + $0x2a8] sm:$0xff]  ;;  %v2432_v56 = vld [vmem:[%s7684_s7 + $0x2b8] sm:$0xff] }
0x16bf   :  { %v5472_v58 = vpack.c.bf16 %v2432_v56, %v2430_v33 }
0x16c0   :  { %5415 = vmatpush1.bf16.msra.mxu0 %v5414_v22  ;;  %v2645_v22 = vld [vmem:[%s7685_s8 + $0x10] sm:$0xff] }
0x16c1   :  { %5417 = vmatprep.subr.bf16.mxu0 %v5416_v61  ;;  %v2646_v61 = vld [vmem:[%s7685_s8 + $0x18] sm:$0xff] }
0x16c2   :  { %v7102_v62 = vpack.c.bf16 %v2646_v61, %v2645_v22  ;;  %v2431_v22 = vld [vmem:[%s7684_s7 + $0x2b0] sm:$0xff]  ;;  %v2434_v61 = vld [vmem:[%s7684_s7 + $0x2c8] sm:$0xff] }
0x16c3   :  { %v5474_v0 = vpack.c.bf16 %v2431_v22, %v2429_v60  ;;  %v2466_v60 = vld [vmem:[%s7684_s7 + $0x3c8] sm:$0xff]  ;;  %v2468_v22 = vld [vmem:[%s7684_s7 + $0x3d8] sm:$0xff] }
0x16c4   :  { %5419 = vmatpush1.bf16.msra.mxu0 %v5418_v2  ;;  %5521 = vmatpush3.bf16.msra.mxu1 %v7102_v62  ;;  %v2649_v2 = vld [vmem:[%s7686_s9 + $0x10] sm:$0xff] }
0x16c5   :  { %5421 = vmatprep.subr.bf16.mxu0 %v5420_v3  ;;  %5522 = vmatprep.subr.bf16.mxu1 %v5932_v7  ;;  %v2650_v3 = vld [vmem:[%s7686_s9 + $0x18] sm:$0xff] }
0x16c6   :  { %v7122_v4 = vpack.c.bf16 %v2650_v3, %v2649_v2  ;;  %v5476_v2 = vpack.c.bf16 %v2436_v63, %v2434_v61  ;;  %v2433_v3 = vld [vmem:[%s7684_s7 + $0x2c0] sm:$0xff]  ;;  %v5508_v63 = vpack.c.bf16 %v2468_v22, %v2466_v60 }
0x16c7   :  { %4946 = vmatmul.mubr.f32.vlgmr.msra.gmra.mrb[36].mxu1 %v5934_v21 }
0x16c8   :  { %5423 = vmatpush1.bf16.msra.mxu0 %v5422_v9  ;;  %5524 = vmatpush3.bf16.msra.mxu1 %v7112_v1  ;;  %v2409_v9 = vld [vmem:[%s7684_s7 + $0x200] sm:$0xff] }
0x16c9   :  { %5425 = vmatprep.subr.bf16.mxu0 %v5424_v50  ;;  %4956 = vmatprep.mubr.msk.f32.mxu1 %vm5933_vm0, %v5934_v21  ;;  %v2411_v50 = vld [vmem:[%s7684_s7 + $0x210] sm:$0xff] }
0x16ca   :  { %5525 = vmatprep.subr.bf16.mxu1 %v5932_v7  ;;  %v5454_v16 = vpack.c.bf16 %v2411_v50, %v2409_v9  ;;  %v2440_v9 = vld [vmem:[%s7684_s7 + $0x2f8] sm:$0xff] }
0x16cc   :  { %5427 = vmatpush1.bf16.msra.mxu0 %v5426_v13  ;;  %5527 = vmatpush3.bf16.msra.mxu1 %v7122_v4 }
0x16cd   :  { %5429 = vmatprep.subr.bf16.mxu0 %v5428_v12  ;;  %5528 = vmatprep.subr.bf16.mxu1 %v5932_v7 }
0x16cf   :  { %4957 = vmatmul.mubr.f32.vlgmr.msra.gmra.mrb[38].mxu1 %v5934_v21 }
0x16d0   :  { %5431 = vmatpush1.bf16.msra.mxu0 %v5430_v20  ;;  %5530 = vmatpush3.bf16.msra.mxu1 %v7092_v59  ;;  %v2413_v20 = vld [vmem:[%s7684_s7 + $0x220] sm:$0xff] }
0x16d1   :  { %5433 = vmatprep.subr.bf16.mxu0 %v5432_v23  ;;  %4967 = vmatprep.mubr.msk.f32.mxu1 %vm5933_vm0, %v5934_v21  ;;  %v2415_v23 = vld [vmem:[%s7684_s7 + $0x230] sm:$0xff] }
0x16d2   :  { %5531 = vmatprep.subr.bf16.mxu1 %v5932_v7  ;;  %v5458_v57 = vpack.c.bf16 %v2415_v23, %v2413_v20  ;;  %v2446_v20 = vld [vmem:[%s7684_s7 + $0x328] sm:$0xff]  ;;  %v2448_v23 = vld [vmem:[%s7684_s7 + $0x338] sm:$0xff] }
0x16d3   :  { %v5488_v28 = vpack.c.bf16 %v2448_v23, %v2446_v20 }
0x16d4   :  { %5435 = vmatpush1.bf16.msra.mxu0 %v5434_v30  ;;  %5533 = vmatpush3.bf16.msra.mxu1 %v7102_v62  ;;  %v2417_v30 = vld [vmem:[%s7684_s7 + $0x240] sm:$0xff] }
0x16d5   :  { %5437 = vmatprep.subr.bf16.mxu0 %v5436_v31  ;;  %5534 = vmatprep.subr.bf16.mxu1 %v5932_v7  ;;  %v2419_v31 = vld [vmem:[%s7684_s7 + $0x250] sm:$0xff] }
0x16d6   :  { %v5462_v35 = vpack.c.bf16 %v2419_v31, %v2417_v30  ;;  %v2450_v30 = vld [vmem:[%s7684_s7 + $0x348] sm:$0xff]  ;;  %v2452_v31 = vld [vmem:[%s7684_s7 + $0x358] sm:$0xff] }
0x16d8   :  { %5439 = vmatpush1.bf16.msra.mxu0 %v5438_v37  ;;  %v5464_v37 = vpack.c.bf16 %v2424_v34, %v2422_v32  ;;  %v5492_v32 = vpack.c.bf16 %v2452_v31, %v2450_v30  ;;  %v2449_v34 = vld [vmem:[%s7684_s7 + $0x340] sm:$0xff] }
0x16d9   :  { %5441 = vmatprep.subr.bf16.mxu0 %v5440_v38  ;;  %v2421_v38 = vld [vmem:[%s7684_s7 + $0x260] sm:$0xff] }
0x16da   :  { %v5466_v51 = vpack.c.bf16 %v2423_v43, %v2421_v38  ;;  %v2456_v38 = vld [vmem:[%s7684_s7 + $0x378] sm:$0xff] }
0x16dc   :  { %5443 = vmatpush1.bf16.msra.mxu0 %v5442_v47  ;;  %v2426_v47 = vld [vmem:[%s7684_s7 + $0x288] sm:$0xff] }
0x16dd   :  { %5445 = vmatprep.subr.bf16.mxu0 %v5444_v27  ;;  %v2428_v27 = vld [vmem:[%s7684_s7 + $0x298] sm:$0xff] }
0x16e0   :  { %5447 = vmatpush1.bf16.msra.mxu0 %v5446_v25 }
0x16e1   :  { %5449 = vmatprep.subr.bf16.mxu0 %v5448_v54  ;;  %v5468_v54 = vpack.c.bf16 %v2428_v27, %v2426_v47  ;;  %v2453_v47 = vld [vmem:[%s7684_s7 + $0x360] sm:$0xff]  ;;  %v2455_v27 = vld [vmem:[%s7684_s7 + $0x370] sm:$0xff] }
0x16e4   :  { %5451 = vmatpush1.bf16.msra.mxu0 %v5450_v46 }
0x16e5   :  { %5453 = vmatprep.subr.bf16.mxu0 %v5452_v24  ;;  %v5470_v24 = vpack.c.bf16 %v2427_v55, %v2425_v5  ;;  %v2459_v5 = vld [vmem:[%s7684_s7 + $0x390] sm:$0xff]  ;;  %v2462_v55 = vld [vmem:[%s7684_s7 + $0x3a8] sm:$0xff] }
0x1779   :  { %v2257_v10 = vpop.f32.mrb[4].mxu0  ;;  %v7151_v49 = vpop.f32.mrb[32].mxu1 }
0x177a   :  { %v2259_v13 = vpop.f32.mrb[5].mxu0  ;;  %v2336_v12 = vpop.f32.mrb[33].mxu1  ;;  %v2258_v17 = vadd.f32 %v2257_v10, %v2167_v8 }
0x177b   :  { %v2260_v15 = vadd.f32 %v2259_v13, %v2171_v6  ;;  %v2337_v46 = vadd.f32 %v2336_v12, %v7191_v39  ;;  %v2442_v13 = vld [vmem:[%s7684_s7 + $0x308] sm:$0xff]  ;;  %v2444_v12 = vld [vmem:[%s7684_s7 + $0x318] sm:$0xff] }
0x177d   :  { %2549 = vmatprep.mubr.f32.mxu0 %v2260_v15  ;;  %v5482_v15 = vpack.c.bf16 %v2439_v14, %v2437_v11  ;;  %v2471_v11 = vld [vmem:[%s7684_s7 + $0x3f0] sm:$0xff] }
0x177e   :  { %2550 = vmatmul.mubr.f32.vlgmr.msra.gmra.mrb[8].mxu0 %v2258_v17  ;;  %v2441_v17 = vld [vmem:[%s7684_s7 + $0x300] sm:$0xff] }
0x177f   :  { %5455 = vmatpush1.bf16.msra.mxu0 %v5454_v16  ;;  %v5484_v16 = vpack.c.bf16 %v2444_v12, %v2442_v13 }
0x1780   :  { %5457 = vmatprep.subr.bf16.mxu0 %v5456_v18  ;;  %v2443_v18 = vld [vmem:[%s7684_s7 + $0x310] sm:$0xff] }
0x1781   :  { %v5486_v26 = vpack.c.bf16 %v2443_v18, %v2441_v17 }
0x1783   :  { %5459 = vmatpush1.bf16.msra.mxu0 %v5458_v57  ;;  %v2445_v57 = vld [vmem:[%s7684_s7 + $0x320] sm:$0xff] }
0x1784   :  { %5461 = vmatprep.subr.bf16.mxu0 %v5460_v29  ;;  %v2447_v29 = vld [vmem:[%s7684_s7 + $0x330] sm:$0xff] }
0x1785   :  { %v2263_v42 = vpop.f32.mrb[6].mxu0  ;;  %v7193_v45 = vpop.f32.mrb[34].mxu1  ;;  %v5490_v36 = vpack.c.bf16 %v2447_v29, %v2445_v57 }
0x1786   :  { %v2265_v19 = vpop.f32.mrb[7].mxu0  ;;  %v7201_v48 = vpop.f32.mrb[35].mxu1  ;;  %v2264_v53 = vadd.f32 %v2263_v42, %v2167_v8  ;;  %v2438_v8 = vld [vmem:[%s7684_s7 + $0x2e8] sm:$0xff] }
0x1787   :  { %v2266_v25 = vadd.f32 %v2265_v19, %v2171_v6  ;;  %5463 = vmatpush1.bf16.msra.mxu0 %v5462_v35  ;;  %v2435_v6 = vld [vmem:[%s7684_s7 + $0x2d0] sm:$0xff]  ;;  %v5480_v10 = vpack.c.bf16 %v2440_v9, %v2438_v8  ;;  %v2458_v19 = vld [vmem:[%s7684_s7 + $0x388] sm:$0xff]  ;;  %v2174_v9 = vsub.s32 2, %v6472_v40  ;;  %v2343_v40 = vadd.f32 %v7201_v48, %v7191_v39 }
0x1788   :  { %5465 = vmatprep.subr.bf16.mxu0 %v5464_v37  ;;  %v5478_v50 = vpack.c.bf16 %v2435_v6, %v2433_v3  ;;  %v2451_v35 = vld [vmem:[%s7684_s7 + $0x350] sm:$0xff]  ;;  %v2454_v37 = vld [vmem:[%s7684_s7 + $0x368] sm:$0xff]  ;;  %v2472_v6 = vld [vmem:[%s7684_s7 + $0x3f8] sm:$0xff] }
0x1789   :  { %2555 = vmatprep.mubr.f32.mxu0 %v2266_v25  ;;  %v5494_v43 = vpack.c.bf16 %v2451_v35, %v2449_v34  ;;  %v5496_v42 = vpack.c.bf16 %v2456_v38, %v2454_v37  ;;  %v2460_v25 = vld [vmem:[%s7684_s7 + $0x398] sm:$0xff]  ;;  %v2470_v3 = vld [vmem:[%s7684_s7 + $0x3e8] sm:$0xff]  ;;  %v2175_v13 = vrot.slane %v7139_v52, %v2174_v9  ;;  %v2473_v52 = vld [vmem:[%s7687_s10] sm:$0x3] }
0x178a   :  { %2556 = vmatmul.mubr.f32.gmra.mrb[10].mxu0 %v2264_v53  ;;  %v5500_v53 = vpack.c.bf16 %v2460_v25, %v2458_v19  ;;  %v2478_v23 = vrot.slane %v2473_v52, %v6475_v41 }
0x178b   :  { %5467 = vmatpush1.bf16.msra.mxu0 %v5466_v51  ;;  %2626 = vmatprep.mubr.f32.mxu0 %v2337_v46  ;;  %v5498_v51 = vpack.c.bf16 %v2455_v27, %v2453_v47  ;;  %v2464_v46 = vld [vmem:[%s7684_s7 + $0x3b8] sm:$0xff]  ;;  %v2335_v12 = vadd.f32 %v7151_v49, %v2175_v13  ;;  %v2482_v49 = vrot.slane %v2473_v52, %v6481_v44 }
0x178c   :  { %5469 = vmatprep.subr.bf16.mxu0 %v5468_v54  ;;  %v2457_v54 = vld [vmem:[%s7684_s7 + $0x380] sm:$0xff]  ;;  %v5504_v56 = vpack.c.bf16 %v2464_v46, %v2462_v55 }
0x178d   :  { %v5502_v33 = vpack.c.bf16 %v2459_v5, %v2457_v54 }
0x178f   :  { %5471 = vmatpush1.bf16.msra.mxu0 %v5470_v24  ;;  %v2461_v24 = vld [vmem:[%s7684_s7 + $0x3a0] sm:$0xff] }
0x1790   :  { %5473 = vmatprep.subr.bf16.mxu0 %v5472_v58  ;;  %v2463_v58 = vld [vmem:[%s7684_s7 + $0x3b0] sm:$0xff] }
0x1791   :  { %v5506_v61 = vpack.c.bf16 %v2463_v58, %v2461_v24 }
0x1793   :  { %5475 = vmatpush1.bf16.msra.mxu0 %v5474_v0  ;;  %v2465_v0 = vld [vmem:[%s7684_s7 + $0x3c0] sm:$0xff] }
0x1794   :  { %5477 = vmatprep.subr.bf16.mxu0 %v5476_v2  ;;  %v2467_v2 = vld [vmem:[%s7684_s7 + $0x3d0] sm:$0xff] }
0x1795   :  { %v5510_v8 = vpack.c.bf16 %v2467_v2, %v2465_v0 }
0x1797   :  { %5479 = vmatpush1.bf16.msra.mxu0 %v5478_v50  ;;  %v5512_v50 = vpack.c.bf16 %v2472_v6, %v2470_v3 }
0x1798   :  { %5481 = vmatprep.subr.bf16.mxu0 %v5480_v10  ;;  %v2469_v10 = vld [vmem:[%s7684_s7 + $0x3e0] sm:$0xff] }
0x1799   :  { %v5514_v14 = vpack.c.bf16 %v2471_v11, %v2469_v10 }
0x179b   :  { %5483 = vmatpush1.bf16.msra.mxu0 %v5482_v15  ;;  %v2341_v15 = vadd.f32 %v7193_v45, %v2175_v13 }
0x179c   :  { %5485 = vmatprep.subr.bf16.mxu0 %v5484_v16  ;;  %v2719_v16 = vpop.f32.mrb[36].mxu1 }
0x179d   :  { %v4947_v17 = vpop.f32.mrb[37].mxu1 }
0x179f   :  { %5487 = vmatpush1.bf16.msra.mxu0 %v5486_v26 }
0x17a0   :  { %5489 = vmatprep.subr.bf16.mxu0 %v5488_v28 }
0x17a2   :  { %v2814_v18 = vpop.f32.mrb[38].mxu1 }
0x17a3   :  { %5491 = vmatpush1.bf16.msra.mxu0 %v5490_v36  ;;  %v4958_v20 = vpop.f32.mrb[39].mxu1 }
0x17a4   :  { %5493 = vmatprep.subr.bf16.mxu0 %v5492_v32  ;;  %v2819_v32 = vrot.slane %v2814_v18, 2 }
0x17a7   :  { %5495 = vmatpush1.bf16.msra.mxu0 %v5494_v43 }
0x17a8   :  { %5497 = vmatprep.subr.bf16.mxu0 %v5496_v42 }
0x17ab   :  { %5499 = vmatpush1.bf16.msra.mxu0 %v5498_v51 }
0x17ac   :  { %5501 = vmatprep.subr.bf16.mxu0 %v5500_v53 }
0x17af   :  { %5503 = vmatpush1.bf16.msra.mxu0 %v5502_v33 }
0x17b0   :  { %5505 = vmatprep.subr.bf16.mxu0 %v5504_v56 }
0x17b3   :  { %5507 = vmatpush1.bf16.msra.mxu0 %v5506_v61 }
0x17b4   :  { %5509 = vmatprep.subr.bf16.mxu0 %v5508_v63 }
0x17b7   :  { %5511 = vmatpush1.bf16.msra.mxu0 %v5510_v8 }
0x17b8   :  { %5513 = vmatprep.subr.bf16.mxu0 %v5512_v50 }
0x17bb   :  { %5515 = vmatpush1.bf16.msra.mxu0 %v5514_v14 }
0x17be   :  { %2627 = vmatmul.mubr.f32.vlgmr.msra.gmra.mrb[8].mxu0 %v2335_v12 }
0x17bf   :  { %2632 = vmatprep.mubr.f32.mxu0 %v2343_v40 }
0x17c2   :  { %2633 = vmatmul.mubr.f32.gmra.mrb[10].mxu0 %v2341_v15 }
0x1891   :  { %v2628_v26 = vpop.f32.mrb[8].mxu0 }
0x1892   :  { %v5632_v28 = vadd.f32 %v2628_v26, %v2478_v23  ;;  %v2630_v39 = vpop.f32.mrb[9].mxu0 }
0x1893   :  { %v5633_v48 = vadd.f32 %v2630_v39, %v2482_v49 }
0x1894   :  { %2639 = vst [vmem:[#allocation4] sm:$0xff] %v5632_v28 }
0x1895   :  { %2640 = vst [vmem:[#allocation4 + $0x8] sm:$0xff] %v5633_v48  ;;  %v2634_v45 = vpop.f32.mrb[10].mxu0 }
0x1896   :  { %v5634_v57 = vadd.f32 %v2634_v45, %v2478_v23  ;;  %v2636_v29 = vpop.f32.mrb[11].mxu0 }
0x1897   :  { %v5635_v30 = vadd.f32 %v2636_v29, %v2482_v49 }
0x1898   :  { %2641 = vst [vmem:[#allocation4 + $0x10] sm:$0xff] %v5634_v57 }
0x1899   :  { %2642 = vst [vmem:[#allocation4 + $0x18] sm:$0xff] %v5635_v30 }
0x189b   :  { %v2651_v31 = vld [vmem:[#allocation4] sm:$0x3]  ;;  %v2856_v11 = vld [vmem:[#allocation4] sm:$0xc] }
0x189c   :  { %v2723_v36 = vadd.f32 %v2719_v16, %v2651_v31 }
0x189e   :  { %5780 = vtanh.f32 %v2723_v36  ;;  %v4558_v37 = vmul.f32 -1.442695, %v2723_v36 }
0x18a0   :  { %v2652_v34 = vld [vmem:[#allocation4 + $0x18] sm:$0xc0]  ;;  %v2857_v15 = vld [vmem:[#allocation4 + $0x18] sm:$0x30] }
0x18a1   :  { %v2821_v41 = vadd.f32 %v2819_v32, %v2652_v34 }
0x18a3   :  { %5782 = vtanh.f32 %v2821_v41  ;;  %v4559_v38 = vmul.f32 -1.442695, %v2821_v41 }
0x18a4   :  { %5784 = vpow2.f32 %v4558_v37 }
0x18a5   :  { %5786 = vpow2.f32 %v4559_v38 }
0x18a8   :  { %v5781_v44 = vpop.eup %5780 }
0x18a9   :  { %2733 = vrot.lane.b32.xlu0 %v5781_v44, %s5935_s0 }
0x18ad   :  { %v5783_v35 = vpop.eup %5782 }
0x18ae   :  { %2831 = vrot.lane.b32.xlu1 %v5783_v35, %s5935_s0  ;;  %v5785_v43 = vpop.eup %5784 }
0x18af   :  { %v2727_v42 = vadd.f32 1.0, %v5785_v43  ;;  %v5787_v47 = vpop.eup %5786 }
0x18b0   :  { %v2825_v27 = vadd.f32 1.0, %v5787_v47 }
0x18b1   :  { %5788 = vrcp.f32 %v2727_v42 }
0x18b2   :  { %5790 = vrcp.f32 %v2825_v27 }
0x18bb   :  { %v5789_v19 = vpop.eup %5788 }
0x18bc   :  { %v5791_v53 = vpop.eup %5790  ;;  %v2731_v55 = vmul.f32 0.0, %v5789_v19 }
0x18bd   :  { %v2829_v56 = vmul.f32 0.0, %v5791_v53 }
0x191b   :  { %v2734_v25 = vpop.permute.xlu0 %2733 }
0x191c   :  { %v2736_v51 = vmul.f32 %v5789_v19, %v2734_v25 }
0x191e   :  { %2738 = vrot.lane.b32.xlu0 %v2736_v51, %s5936_s4 }
0x1920   :  { %v2832_v54 = vpop.permute.xlu1 %2831 }
0x1921   :  { %v2834_v5 = vmul.f32 %v5791_v53, %v2832_v54 }
0x1923   :  { %2836 = vrot.lane.b32.xlu1 %v2834_v5, %s5936_s4 }
0x1990   :  { %v2739_v46 = vpop.permute.xlu0 %2738 }
0x1991   :  { %v7357_v33 = vadd.f32 %v2739_v46, %v2731_v55 }
0x1993   :  { %5792 = vtanh.f32 %v7357_v33  ;;  %v2942_v31 = vrot.slane %v7357_v33, 6  ;;  %v3077_v33 = vld [vmem:[#allocation4] sm:$0x30] }
0x1995   :  { %v2837_v24 = vpop.permute.xlu1 %2836 }
0x1996   :  { %v7360_v58 = vadd.f32 %v2837_v24, %v2829_v56 }
0x1998   :  { %5794 = vtanh.f32 %v7360_v58  ;;  %v3048_v41 = vrot.slane %v7360_v58, 2 }
0x199d   :  { %v5793_v60 = vpop.eup %5792 }
0x199e   :  { %2744 = vrot.lane.b32.xlu0 %v5793_v60, %s5935_s0 }
0x19a2   :  { %v5795_v22 = vpop.eup %5794 }
0x19a3   :  { %2842 = vrot.lane.b32.xlu1 %v5795_v22, %s5935_s0  ;;  %v3078_v22 = vld [vmem:[#allocation4 + $0x18] sm:$0xc] }
0x1a10   :  { %v2745_v61 = vpop.permute.xlu0 %2744 }
0x1a11   :  { %v2747_v63 = vmul.f32 %v5789_v19, %v2745_v61 }
0x1a13   :  { %2847 = vrot.lane.b32.xlu0 %v2747_v63, %s5936_s4 }
0x1a15   :  { %v2843_v0 = vpop.permute.xlu1 %2842 }
0x1a16   :  { %v7366_v2 = vmul.f32 %v5791_v53, %v2843_v0 }
0x1a18   :  { %v2961_v3 = vrot.slane %v7366_v2, 6 }
0x1a1a   :  { %2962 = vrot.lane.b32.xlu1 %v2961_v3, %s5936_s4 }
0x1a85   :  { %v2848_v6 = vpop.permute.xlu0 %2847 }
0x1a86   :  { %2850 = vst.msk [vmem:[#allocation5] sm:$0x3] %vm562_vm1, %v2848_v6  ;;  %4968 = vmatmul.mubr.msk.f32.vlgmr.msra.gmra.mrb[40].mxu1 %vm361_vm2, %v2848_v6 }
0x1a87   :  { %5536 = vmatpush3.bf16.msra.mxu1 %v7112_v1  ;;  %4978 = vmatprep.mubr.msk.f32.mxu1 %vm5933_vm0, %v5934_v21 }
0x1a88   :  { %5537 = vmatprep.subr.bf16.mxu1 %v5932_v7 }
0x1a8b   :  { %5539 = vmatpush3.bf16.msra.mxu1 %v7122_v4 }
0x1a8c   :  { %v2963_v8 = vpop.permute.xlu1 %2962  ;;  %5540 = vmatprep.subr.bf16.mxu1 %v5932_v7 }
0x1a8e   :  { %4979 = vmatmul.mubr.msk.f32.vlgmr.msra.gmra.mrb[42].mxu1 %vm361_vm2, %v2963_v8 }
0x1a8f   :  { %5542 = vmatpush3.bf16.msra.mxu1 %v7092_v59  ;;  %4989 = vmatprep.mubr.msk.f32.mxu1 %vm5933_vm0, %v5934_v21 }
0x1a90   :  { %5543 = vmatprep.subr.bf16.mxu1 %v5932_v7 }
0x1a93   :  { %5545 = vmatpush3.bf16.msra.mxu1 %v7102_v62 }
0x1a94   :  { %5546 = vmatprep.subr.bf16.mxu1 %v5932_v7 }
0x1b59   :  { %v2926_v9 = vpop.f32.mrb[40].mxu1 }
0x1b5a   :  { %v2931_v50 = vrot.slane %v2926_v9, 6  ;;  %v4969_v10 = vpop.f32.mrb[41].mxu1 }
0x1b5c   :  { %v2933_v14 = vadd.f32 %v2931_v50, %v2856_v11 }
0x1b5e   :  { %5796 = vtanh.f32 %v2933_v14  ;;  %v4561_v20 = vmul.f32 -1.442695, %v2933_v14 }
0x1b61   :  { %v3032_v13 = vpop.f32.mrb[42].mxu1 }
0x1b62   :  { %v3037_v12 = vrot.slane %v3032_v13, 4  ;;  %v4980_v40 = vpop.f32.mrb[43].mxu1 }
0x1b64   :  { %v3039_v16 = vadd.f32 %v3037_v12, %v2857_v15 }
0x1b66   :  { %5798 = vtanh.f32 %v3039_v16  ;;  %v4563_v52 = vmul.f32 -1.442695, %v3039_v16 }
0x1b67   :  { %5800 = vpow2.f32 %v4561_v20 }
0x1b68   :  { %v5797_v17 = vpop.eup %5796  ;;  %5802 = vpow2.f32 %v4563_v52 }
0x1b69   :  { %2946 = vrot.lane.b32.xlu0 %v5797_v17, %s5935_s0 }
0x1b70   :  { %v5799_v18 = vpop.eup %5798 }
0x1b71   :  { %3052 = vrot.lane.b32.xlu1 %v5799_v18, %s5935_s0  ;;  %v5801_v23 = vpop.eup %5800 }
0x1b72   :  { %v2937_v49 = vadd.f32 1.0, %v5801_v23  ;;  %v5803_v26 = vpop.eup %5802 }
0x1b73   :  { %v3043_v28 = vadd.f32 1.0, %v5803_v26 }
0x1b74   :  { %5804 = vrcp.f32 %v2937_v49 }
0x1b75   :  { %5806 = vrcp.f32 %v3043_v28 }
0x1b7e   :  { %v5805_v39 = vpop.eup %5804 }
0x1b7f   :  { %v5807_v57 = vpop.eup %5806  ;;  %v2944_v36 = vmul.f32 %v5805_v39, %v2942_v31 }
0x1b80   :  { %v3050_v44 = vmul.f32 %v5807_v57, %v3048_v41 }
0x1bdb   :  { %v2947_v48 = vpop.permute.xlu0 %2946 }
0x1bdc   :  { %v2949_v45 = vmul.f32 %v5805_v39, %v2947_v48 }
0x1bde   :  { %2951 = vrot.lane.b32.xlu0 %v2949_v45, %s5936_s4 }
0x1be3   :  { %v3053_v29 = vpop.permute.xlu1 %3052 }
0x1be4   :  { %v3055_v30 = vmul.f32 %v5807_v57, %v3053_v29 }
0x1be6   :  { %3057 = vrot.lane.b32.xlu1 %v3055_v30, %s5936_s4 }
0x1c50   :  { %v2952_v32 = vpop.permute.xlu0 %2951 }
0x1c51   :  { %v7390_v34 = vadd.f32 %v2952_v32, %v2944_v36 }
0x1c53   :  { %5808 = vtanh.f32 %v7390_v34  ;;  %v3166_v16 = vrot.slane %v7390_v34, 6 }
0x1c58   :  { %v3058_v35 = vpop.permute.xlu1 %3057 }
0x1c59   :  { %v7394_v37 = vadd.f32 %v3058_v35, %v3050_v44  ;;  %v3301_v35 = vld [vmem:[#allocation4] sm:$0xc0] }
0x1c5b   :  { %5810 = vtanh.f32 %v7394_v37  ;;  %v3272_v52 = vrot.slane %v7394_v37, 2 }
0x1c5d   :  { %v5809_v38 = vpop.eup %5808 }
0x1c5e   :  { %2957 = vrot.lane.b32.xlu0 %v5809_v38, %s5935_s0  ;;  %v3302_v38 = vld [vmem:[#allocation4 + $0x18] sm:$0x3] }
0x1c65   :  { %v5811_v43 = vpop.eup %5810 }
0x1c66   :  { %3063 = vrot.lane.b32.xlu1 %v5811_v43, %s5935_s0 }
0x1cd0   :  { %v2958_v42 = vpop.permute.xlu0 %2957 }
0x1cd1   :  { %v7399_v47 = vmul.f32 %v5805_v39, %v2958_v42 }
0x1cd3   :  { %v3079_v27 = vrot.slane %v7399_v47, 2 }
0x1cd5   :  { %3080 = vrot.lane.b32.xlu0 %v3079_v27, %s5936_s4 }
0x1cd8   :  { %v3064_v19 = vpop.permute.xlu1 %3063 }
0x1cd9   :  { %v7403_v25 = vmul.f32 %v5807_v57, %v3064_v19 }
0x1cdb   :  { %v3185_v51 = vrot.slane %v7403_v25, 4 }
0x1cdd   :  { %3186 = vrot.lane.b32.xlu1 %v3185_v51, %s5936_s4 }
0x1d47   :  { %v3081_v53 = vpop.permute.xlu0 %3080 }
0x1d48   :  { %4990 = vmatmul.mubr.msk.f32.vlgmr.msra.gmra.mrb[44].mxu1 %vm361_vm2, %v3081_v53 }
0x1d49   :  { %5548 = vmatpush3.bf16.msra.mxu1 %v7112_v1  ;;  %5000 = vmatprep.mubr.msk.f32.mxu1 %vm5933_vm0, %v5934_v21 }
0x1d4a   :  { %5549 = vmatprep.subr.bf16.mxu1 %v5932_v7 }
0x1d4d   :  { %5551 = vmatpush3.bf16.msra.mxu1 %v7122_v4 }
0x1d4e   :  { %5552 = vmatprep.subr.bf16.mxu1 %v5932_v7 }
0x1d4f   :  { %v3187_v54 = vpop.permute.xlu1 %3186 }
0x1d50   :  { %5001 = vmatmul.mubr.msk.f32.vlgmr.msra.gmra.mrb[46].mxu1 %vm361_vm2, %v3187_v54 }
0x1d51   :  { %5554 = vmatpush3.bf16.msra.mxu1 %v7092_v59  ;;  %5011 = vmatprep.mubr.msk.f32.mxu1 %vm5933_vm0, %v5934_v21 }
0x1d52   :  { %5555 = vmatprep.subr.bf16.mxu1 %v5932_v7 }
0x1d55   :  { %5557 = vmatpush3.bf16.msra.mxu1 %v7102_v62 }
0x1d56   :  { %5558 = vmatprep.subr.bf16.mxu1 %v5932_v7 }
0x1e1b   :  { %v3150_v5 = vpop.f32.mrb[44].mxu1 }
0x1e1c   :  { %v3155_v55 = vrot.slane %v3150_v5, 4  ;;  %v4991_v46 = vpop.f32.mrb[45].mxu1 }
0x1e1e   :  { %v3157_v56 = vadd.f32 %v3155_v55, %v3077_v33 }
0x1e20   :  { %5812 = vtanh.f32 %v3157_v56  ;;  %v4565_v3 = vmul.f32 -1.442695, %v3157_v56 }
0x1e23   :  { %v3256_v24 = vpop.f32.mrb[46].mxu1 }
0x1e24   :  { %v3261_v58 = vrot.slane %v3256_v24, 6  ;;  %v5002_v60 = vpop.f32.mrb[47].mxu1 }
0x1e26   :  { %v3263_v61 = vadd.f32 %v3261_v58, %v3078_v22 }
0x1e28   :  { %5814 = vtanh.f32 %v3263_v61  ;;  %v4567_v6 = vmul.f32 -1.442695, %v3263_v61 }
0x1e29   :  { %5816 = vpow2.f32 %v4565_v3 }
0x1e2a   :  { %v5813_v63 = vpop.eup %5812  ;;  %5818 = vpow2.f32 %v4567_v6 }
0x1e2b   :  { %3170 = vrot.lane.b32.xlu0 %v5813_v63, %s5935_s0 }
0x1e32   :  { %v5815_v0 = vpop.eup %5814 }
0x1e33   :  { %3276 = vrot.lane.b32.xlu1 %v5815_v0, %s5935_s0  ;;  %v5817_v8 = vpop.eup %5816 }
0x1e34   :  { %v3161_v9 = vadd.f32 1.0, %v5817_v8  ;;  %v5819_v50 = vpop.eup %5818 }
0x1e35   :  { %v3267_v10 = vadd.f32 1.0, %v5819_v50 }
0x1e36   :  { %5820 = vrcp.f32 %v3161_v9 }
0x1e37   :  { %5822 = vrcp.f32 %v3267_v10 }
0x1e40   :  { %v5821_v11 = vpop.eup %5820 }
0x1e41   :  { %v5823_v12 = vpop.eup %5822  ;;  %v3168_v17 = vmul.f32 %v5821_v11, %v3166_v16 }
0x1e42   :  { %v3274_v23 = vmul.f32 %v5823_v12, %v3272_v52 }
0x1e9d   :  { %v3171_v14 = vpop.permute.xlu0 %3170 }
0x1e9e   :  { %v3173_v13 = vmul.f32 %v5821_v11, %v3171_v14 }
0x1ea0   :  { %3175 = vrot.lane.b32.xlu0 %v3173_v13, %s5936_s4 }
0x1ea5   :  { %v3277_v40 = vpop.permute.xlu1 %3276 }
0x1ea6   :  { %v3279_v15 = vmul.f32 %v5823_v12, %v3277_v40 }
0x1ea8   :  { %3281 = vrot.lane.b32.xlu1 %v3279_v15, %s5936_s4 }
0x1f12   :  { %v3176_v18 = vpop.permute.xlu0 %3175 }
0x1f13   :  { %v7426_v20 = vadd.f32 %v3176_v18, %v3168_v17 }
0x1f15   :  { %5824 = vtanh.f32 %v7426_v20  ;;  %v3390_v63 = vrot.slane %v7426_v20, 6  ;;  %v3522_v20 = vld [vmem:[#allocation4 + $0x10] sm:$0x3] }
0x1f1a   :  { %v3282_v49 = vpop.permute.xlu1 %3281 }
0x1f1b   :  { %v7430_v26 = vadd.f32 %v3282_v49, %v3274_v23 }
0x1f1d   :  { %5826 = vtanh.f32 %v7430_v26  ;;  %v3493_v8 = vrot.slane %v7430_v26, 2 }
0x1f1f   :  { %v5825_v28 = vpop.eup %5824 }
0x1f20   :  { %3181 = vrot.lane.b32.xlu0 %v5825_v28, %s5935_s0 }
0x1f27   :  { %v5827_v39 = vpop.eup %5826 }
0x1f28   :  { %3287 = vrot.lane.b32.xlu1 %v5827_v39, %s5935_s0 }
0x1f92   :  { %v3182_v48 = vpop.permute.xlu0 %3181 }
0x1f93   :  { %v7435_v45 = vmul.f32 %v5821_v11, %v3182_v48  ;;  %v3523_v48 = vld [vmem:[#allocation4 + $0x8] sm:$0xc0] }
0x1f95   :  { %v3303_v57 = vrot.slane %v7435_v45, 4 }
0x1f97   :  { %3304 = vrot.lane.b32.xlu0 %v3303_v57, %s5936_s4 }
0x1f9a   :  { %v3288_v29 = vpop.permute.xlu1 %3287 }
0x1f9b   :  { %v7439_v30 = vmul.f32 %v5823_v12, %v3288_v29 }
0x1f9d   :  { %v3409_v31 = vrot.slane %v7439_v30, 2 }
0x1f9f   :  { %3410 = vrot.lane.b32.xlu1 %v3409_v31, %s5936_s4 }
0x2009   :  { %v3305_v36 = vpop.permute.xlu0 %3304 }
0x200a   :  { %5012 = vmatmul.mubr.msk.f32.vlgmr.msra.gmra.mrb[48].mxu1 %vm361_vm2, %v3305_v36 }
0x200b   :  { %5560 = vmatpush3.bf16.msra.mxu1 %v7112_v1  ;;  %5022 = vmatprep.mubr.msk.f32.mxu1 %vm5933_vm0, %v5934_v21 }
0x200c   :  { %5561 = vmatprep.subr.bf16.mxu1 %v5932_v7 }
0x200f   :  { %5563 = vmatpush3.bf16.msra.mxu1 %v7122_v4 }
0x2010   :  { %5564 = vmatprep.subr.bf16.mxu1 %v5932_v7 }
0x2011   :  { %v3411_v32 = vpop.permute.xlu1 %3410 }
0x2012   :  { %5023 = vmatmul.mubr.msk.f32.vlgmr.msra.gmra.mrb[50].mxu1 %vm361_vm2, %v3411_v32 }
0x2013   :  { %5566 = vmatpush3.bf16.msra.mxu1 %v7092_v59  ;;  %5033 = vmatprep.mubr.msk.f32.mxu1 %vm5933_vm0, %v5934_v21 }
0x2014   :  { %5567 = vmatprep.subr.bf16.mxu1 %v5932_v7 }
0x2017   :  { %5569 = vmatpush3.bf16.msra.mxu1 %v7102_v62 }
0x2018   :  { %5570 = vmatprep.subr.bf16.mxu1 %v5932_v7 }
0x20dd   :  { %v3374_v34 = vpop.f32.mrb[48].mxu1 }
0x20de   :  { %v3379_v41 = vrot.slane %v3374_v34, 2  ;;  %v5013_v44 = vpop.f32.mrb[49].mxu1 }
0x20e0   :  { %v3381_v37 = vadd.f32 %v3379_v41, %v3301_v35 }
0x20e2   :  { %5828 = vtanh.f32 %v3381_v37  ;;  %v4569_v53 = vmul.f32 -1.442695, %v3381_v37 }
0x20e5   :  { %v3480_v43 = vpop.f32.mrb[50].mxu1 }
0x20e6   :  { %v3484_v42 = vadd.f32 %v3480_v43, %v3302_v38  ;;  %v5024_v27 = vpop.f32.mrb[51].mxu1 }
0x20e8   :  { %5830 = vtanh.f32 %v3484_v42  ;;  %v4571_v54 = vmul.f32 -1.442695, %v3484_v42 }
0x20e9   :  { %5832 = vpow2.f32 %v4569_v53 }
0x20ea   :  { %5834 = vpow2.f32 %v4571_v54 }
0x20ec   :  { %v5829_v19 = vpop.eup %5828 }
0x20ed   :  { %3394 = vrot.lane.b32.xlu0 %v5829_v19, %s5935_s0 }
0x20f2   :  { %v5831_v51 = vpop.eup %5830 }
0x20f3   :  { %3497 = vrot.lane.b32.xlu1 %v5831_v51, %s5935_s0  ;;  %v5833_v5 = vpop.eup %5832 }
0x20f4   :  { %v3385_v55 = vadd.f32 1.0, %v5833_v5  ;;  %v5835_v46 = vpop.eup %5834 }
0x20f5   :  { %v3488_v33 = vadd.f32 1.0, %v5835_v46 }
0x20f6   :  { %5836 = vrcp.f32 %v3385_v55 }
0x20f7   :  { %5838 = vrcp.f32 %v3488_v33 }
0x2100   :  { %v5837_v56 = vpop.eup %5836 }
0x2101   :  { %v5839_v60 = vpop.eup %5838  ;;  %v3392_v0 = vmul.f32 %v5837_v56, %v3390_v63 }
0x2102   :  { %v3495_v9 = vmul.f32 %v5839_v60, %v3493_v8 }
0x215f   :  { %v3395_v24 = vpop.permute.xlu0 %3394 }
0x2160   :  { %v3397_v58 = vmul.f32 %v5837_v56, %v3395_v24 }
0x2162   :  { %3399 = vrot.lane.b32.xlu0 %v3397_v58, %s5936_s4 }
0x2165   :  { %v3498_v22 = vpop.permute.xlu1 %3497 }
0x2166   :  { %v3500_v61 = vmul.f32 %v5839_v60, %v3498_v22 }
0x2168   :  { %3502 = vrot.lane.b32.xlu1 %v3500_v61, %s5936_s4 }
0x21d4   :  { %v3400_v3 = vpop.permute.xlu0 %3399 }
0x21d5   :  { %v7462_v6 = vadd.f32 %v3400_v3, %v3392_v0 }
0x21d7   :  { %5840 = vtanh.f32 %v7462_v6  ;;  %v3608_v51 = vrot.slane %v7462_v6, 6 }
0x21da   :  { %v3503_v50 = vpop.permute.xlu1 %3502 }
0x21db   :  { %v7466_v10 = vadd.f32 %v3503_v50, %v3495_v9 }
0x21dd   :  { %5842 = vtanh.f32 %v7466_v10  ;;  %v3713_v55 = vrot.slane %v7466_v10, 2  ;;  %v3742_v10 = vld [vmem:[#allocation4 + $0x10] sm:$0xc] }
0x21e1   :  { %v5841_v11 = vpop.eup %5840 }
0x21e2   :  { %3405 = vrot.lane.b32.xlu0 %v5841_v11, %s5935_s0 }
0x21e7   :  { %v5843_v14 = vpop.eup %5842 }
0x21e8   :  { %3508 = vrot.lane.b32.xlu1 %v5843_v14, %s5935_s0 }
0x2254   :  { %v3406_v13 = vpop.permute.xlu0 %3405 }
0x2255   :  { %v7471_v12 = vmul.f32 %v5837_v56, %v3406_v13 }
0x2257   :  { %v3524_v40 = vrot.slane %v7471_v12, 6 }
0x2259   :  { %3525 = vrot.lane.b32.xlu0 %v3524_v40, %s5936_s4 }
0x225a   :  { %v3509_v15 = vpop.permute.xlu1 %3508 }
0x225b   :  { %v7475_v16 = vmul.f32 %v5839_v60, %v3509_v15  ;;  %v3743_v15 = vld [vmem:[#allocation4 + $0x8] sm:$0x30] }
0x225d   :  { %3627 = vrot.lane.b32.xlu1 %v7475_v16, %s5936_s4 }
0x22cb   :  { %v3526_v17 = vpop.permute.xlu0 %3525 }
0x22cc   :  { %5034 = vmatmul.mubr.msk.f32.vlgmr.msra.gmra.mrb[52].mxu1 %vm361_vm2, %v3526_v17 }
0x22cd   :  { %5572 = vmatpush3.bf16.msra.mxu1 %v7112_v1  ;;  %5044 = vmatprep.mubr.msk.f32.mxu1 %vm5933_vm0, %v5934_v21 }
0x22ce   :  { %5573 = vmatprep.subr.bf16.mxu1 %v5932_v7 }
0x22cf   :  { %v3628_v18 = vpop.permute.xlu1 %3627 }
0x22d1   :  { %5575 = vmatpush3.bf16.msra.mxu1 %v7122_v4 }
0x22d2   :  { %5576 = vmatprep.subr.bf16.mxu1 %v5932_v7 }
0x22d4   :  { %5045 = vmatmul.mubr.msk.f32.vlgmr.msra.gmra.mrb[54].mxu1 %vm361_vm2, %v3628_v18 }
0x22d5   :  { %5578 = vmatpush3.bf16.msra.mxu1 %v7092_v59  ;;  %5055 = vmatprep.mubr.msk.f32.mxu1 %vm5933_vm0, %v5934_v21 }
0x22d6   :  { %5579 = vmatprep.subr.bf16.mxu1 %v5932_v7 }
0x22d9   :  { %5581 = vmatpush3.bf16.msra.mxu1 %v7102_v62 }
0x22da   :  { %5582 = vmatprep.subr.bf16.mxu1 %v5932_v7 }
0x239f   :  { %v3595_v52 = vpop.f32.mrb[52].mxu1 }
0x23a0   :  { %v3599_v23 = vadd.f32 %v3595_v52, %v3522_v20  ;;  %v5035_v49 = vpop.f32.mrb[53].mxu1 }
0x23a2   :  { %5844 = vtanh.f32 %v3599_v23  ;;  %v4573_v36 = vmul.f32 -1.442695, %v3599_v23 }
0x23a7   :  { %v3697_v26 = vpop.f32.mrb[54].mxu1 }
0x23a8   :  { %v3702_v28 = vrot.slane %v3697_v26, 2  ;;  %v5046_v39 = vpop.f32.mrb[55].mxu1 }
0x23aa   :  { %v3704_v57 = vadd.f32 %v3702_v28, %v3523_v48 }
0x23ac   :  { %v5845_v29 = vpop.eup %5844  ;;  %5846 = vtanh.f32 %v3704_v57  ;;  %v4575_v32 = vmul.f32 -1.442695, %v3704_v57 }
0x23ad   :  { %3612 = vrot.lane.b32.xlu0 %v5845_v29, %s5935_s0  ;;  %5848 = vpow2.f32 %v4573_v36 }
0x23ae   :  { %5850 = vpow2.f32 %v4575_v32 }
0x23b6   :  { %v5847_v31 = vpop.eup %5846 }
0x23b7   :  { %3717 = vrot.lane.b32.xlu1 %v5847_v31, %s5935_s0  ;;  %v5849_v34 = vpop.eup %5848 }
0x23b8   :  { %v3603_v41 = vadd.f32 1.0, %v5849_v34  ;;  %v5851_v44 = vpop.eup %5850 }
0x23b9   :  { %v3708_v35 = vadd.f32 1.0, %v5851_v44 }
0x23ba   :  { %5852 = vrcp.f32 %v3603_v41 }
0x23bb   :  { %5854 = vrcp.f32 %v3708_v35 }
0x23c4   :  { %v5853_v37 = vpop.eup %5852 }
0x23c5   :  { %v5855_v42 = vpop.eup %5854  ;;  %v3610_v53 = vmul.f32 %v5853_v37, %v3608_v51 }
0x23c6   :  { %v3715_v46 = vmul.f32 %v5855_v42, %v3713_v55 }
0x241f   :  { %v3613_v38 = vpop.permute.xlu0 %3612 }
0x2420   :  { %v3615_v43 = vmul.f32 %v5853_v37, %v3613_v38 }
0x2422   :  { %3617 = vrot.lane.b32.xlu0 %v3615_v43, %s5936_s4 }
0x2429   :  { %v3718_v27 = vpop.permute.xlu1 %3717 }
0x242a   :  { %v3720_v19 = vmul.f32 %v5855_v42, %v3718_v27 }
0x242c   :  { %3722 = vrot.lane.b32.xlu1 %v3720_v19, %s5936_s4 }
0x2494   :  { %v3618_v54 = vpop.permute.xlu0 %3617 }
0x2495   :  { %v7498_v5 = vadd.f32 %v3618_v54, %v3610_v53 }
0x2497   :  { %5856 = vtanh.f32 %v7498_v5  ;;  %v3828_v34 = vrot.slane %v7498_v5, 6 }
0x249e   :  { %v3723_v33 = vpop.permute.xlu1 %3722 }
0x249f   :  { %v7502_v56 = vadd.f32 %v3723_v33, %v3715_v46 }
0x24a1   :  { %v5857_v24 = vpop.eup %5856  ;;  %5858 = vtanh.f32 %v7502_v56 }
0x24a2   :  { %3623 = vrot.lane.b32.xlu0 %v5857_v24, %s5935_s0 }
0x24ab   :  { %v5859_v58 = vpop.eup %5858 }
0x24ac   :  { %3728 = vrot.lane.b32.xlu1 %v5859_v58, %s5935_s0 }
0x2514   :  { %v3624_v60 = vpop.permute.xlu0 %3623 }
0x2515   :  { %v3626_v22 = vmul.f32 %v5853_v37, %v3624_v60  ;;  %v3934_v37 = vrot.slane %v7502_v56, 2 }
0x2517   :  { %3733 = vrot.lane.b32.xlu0 %v3626_v22, %s5936_s4  ;;  %v3963_v22 = vld [vmem:[#allocation4 + $0x10] sm:$0x30] }
0x251e   :  { %v3729_v61 = vpop.permute.xlu1 %3728 }
0x251f   :  { %v7508_v63 = vmul.f32 %v5855_v42, %v3729_v61 }
0x2521   :  { %v3847_v0 = vrot.slane %v7508_v63, 6 }
0x2523   :  { %3848 = vrot.lane.b32.xlu1 %v3847_v0, %s5936_s4 }
0x2589   :  { %v7512_v3 = vpop.permute.xlu0 %3733 }
0x258a   :  { %5056 = vmatmul.mubr.msk.f32.vlgmr.msra.gmra.mrb[56].mxu1 %vm361_vm2, %v7512_v3 }
0x258b   :  { %5584 = vmatpush3.bf16.msra.mxu1 %v7112_v1  ;;  %5066 = vmatprep.mubr.msk.f32.mxu1 %vm5933_vm0, %v5934_v21 }
0x258c   :  { %5585 = vmatprep.subr.bf16.mxu1 %v5932_v7 }
0x258f   :  { %5587 = vmatpush3.bf16.msra.mxu1 %v7122_v4 }
0x2590   :  { %5588 = vmatprep.subr.bf16.mxu1 %v5932_v7 }
0x2595   :  { %v3849_v6 = vpop.permute.xlu1 %3848 }
0x2596   :  { %5067 = vmatmul.mubr.msk.f32.vlgmr.msra.gmra.mrb[58].mxu1 %vm361_vm2, %v3849_v6 }
0x2597   :  { %5590 = vmatpush3.bf16.msra.mxu1 %v7092_v59  ;;  %5077 = vmatprep.mubr.msk.f32.mxu1 %vm5933_vm0, %v5934_v21 }
0x2598   :  { %5591 = vmatprep.subr.bf16.mxu1 %v5932_v7 }
0x259b   :  { %5593 = vmatpush3.bf16.msra.mxu1 %v7102_v62 }
0x259c   :  { %5594 = vmatprep.subr.bf16.mxu1 %v5932_v7 }
0x265d   :  { %v3812_v8 = vpop.f32.mrb[56].mxu1 }
0x265e   :  { %v3817_v9 = vrot.slane %v3812_v8, 6  ;;  %v5057_v50 = vpop.f32.mrb[57].mxu1 }
0x2660   :  { %v3819_v11 = vadd.f32 %v3817_v9, %v3742_v10  ;;  %v3964_v9 = vld [vmem:[#allocation4 + $0x8] sm:$0xc] }
0x2662   :  { %5860 = vtanh.f32 %v3819_v11  ;;  %v4577_v52 = vmul.f32 -1.442695, %v3819_v11 }
0x2669   :  { %v3918_v14 = vpop.f32.mrb[58].mxu1 }
0x266a   :  { %v3923_v13 = vrot.slane %v3918_v14, 4  ;;  %v5068_v40 = vpop.f32.mrb[59].mxu1 }
0x266c   :  { %v5861_v17 = vpop.eup %5860  ;;  %v3925_v18 = vadd.f32 %v3923_v13, %v3743_v15 }
0x266d   :  { %3832 = vrot.lane.b32.xlu0 %v5861_v17, %s5935_s0 }
0x266e   :  { %5862 = vtanh.f32 %v3925_v18  ;;  %v4579_v23 = vmul.f32 -1.442695, %v3925_v18 }
0x266f   :  { %5864 = vpow2.f32 %v4577_v52 }
0x2670   :  { %5866 = vpow2.f32 %v4579_v23 }
0x2678   :  { %v5863_v20 = vpop.eup %5862 }
0x2679   :  { %3938 = vrot.lane.b32.xlu1 %v5863_v20, %s5935_s0  ;;  %v5865_v49 = vpop.eup %5864 }
0x267a   :  { %v3823_v26 = vadd.f32 1.0, %v5865_v49  ;;  %v5867_v28 = vpop.eup %5866 }
0x267b   :  { %v3929_v39 = vadd.f32 1.0, %v5867_v28 }
0x267c   :  { %5868 = vrcp.f32 %v3823_v26 }
0x267d   :  { %5870 = vrcp.f32 %v3929_v39 }
0x2686   :  { %v5869_v48 = vpop.eup %5868 }
0x2687   :  { %v5871_v31 = vpop.eup %5870  ;;  %v3830_v41 = vmul.f32 %v5869_v48, %v3828_v34 }
0x2688   :  { %v3936_v38 = vmul.f32 %v5871_v31, %v3934_v37 }
0x26df   :  { %v3833_v57 = vpop.permute.xlu0 %3832 }
0x26e0   :  { %v3835_v29 = vmul.f32 %v5869_v48, %v3833_v57 }
0x26e2   :  { %3837 = vrot.lane.b32.xlu0 %v3835_v29, %s5936_s4 }
0x26eb   :  { %v3939_v36 = vpop.permute.xlu1 %3938 }
0x26ec   :  { %v3941_v32 = vmul.f32 %v5871_v31, %v3939_v36 }
0x26ee   :  { %3943 = vrot.lane.b32.xlu1 %v3941_v32, %s5936_s4 }
0x2754   :  { %v3838_v44 = vpop.permute.xlu0 %3837 }
0x2755   :  { %v7534_v35 = vadd.f32 %v3838_v44, %v3830_v41 }
0x2757   :  { %5872 = vtanh.f32 %v7534_v35  ;;  %v4052_v26 = vrot.slane %v7534_v35, 6 }
0x2760   :  { %v3944_v43 = vpop.permute.xlu1 %3943 }
0x2761   :  { %v5873_v42 = vpop.eup %5872  ;;  %v7538_v27 = vadd.f32 %v3944_v43, %v3936_v38 }
0x2762   :  { %3843 = vrot.lane.b32.xlu0 %v5873_v42, %s5935_s0 }
0x2763   :  { %5874 = vtanh.f32 %v7538_v27  ;;  %v4158_v57 = vrot.slane %v7538_v27, 2 }
0x276d   :  { %v5875_v19 = vpop.eup %5874 }
0x276e   :  { %3949 = vrot.lane.b32.xlu1 %v5875_v19, %s5935_s0 }
0x27d4   :  { %v3844_v51 = vpop.permute.xlu0 %3843 }
0x27d5   :  { %v7543_v53 = vmul.f32 %v5869_v48, %v3844_v51 }
0x27d7   :  { %v3965_v54 = vrot.slane %v7543_v53, 2 }
0x27d9   :  { %3966 = vrot.lane.b32.xlu0 %v3965_v54, %s5936_s4 }
0x27e0   :  { %v3950_v5 = vpop.permute.xlu1 %3949 }
0x27e1   :  { %v7547_v55 = vmul.f32 %v5871_v31, %v3950_v5  ;;  %v4187_v5 = vld [vmem:[#allocation4 + $0x10] sm:$0xc0] }
0x27e3   :  { %v4071_v46 = vrot.slane %v7547_v55, 4 }
0x27e5   :  { %4072 = vrot.lane.b32.xlu1 %v4071_v46, %s5936_s4 }
0x284b   :  { %v3967_v33 = vpop.permute.xlu0 %3966 }
0x284c   :  { %5078 = vmatmul.mubr.msk.f32.vlgmr.msra.gmra.mrb[60].mxu1 %vm361_vm2, %v3967_v33  ;;  %v4188_v33 = vld [vmem:[#allocation4 + $0x8] sm:$0x3] }
0x284d   :  { %5596 = vmatpush3.bf16.msra.mxu1 %v7112_v1  ;;  %5088 = vmatprep.mubr.msk.f32.mxu1 %vm5933_vm0, %v5934_v21 }
0x284e   :  { %5597 = vmatprep.subr.bf16.mxu1 %v5932_v7 }
0x2851   :  { %5599 = vmatpush3.bf16.msra.mxu1 %v7122_v4 }
0x2852   :  { %5600 = vmatprep.subr.bf16.mxu1 %v5932_v7 }
0x2857   :  { %v4073_v56 = vpop.permute.xlu1 %4072 }
0x2858   :  { %5089 = vmatmul.mubr.msk.f32.vlgmr.msra.gmra.mrb[62].mxu1 %vm361_vm2, %v4073_v56 }
0x2859   :  { %5602 = vmatpush3.bf16.msra.mxu1 %v7092_v59  ;;  %5099 = vmatprep.mubr.msk.f32.mxu1 %vm5933_vm0, %v5934_v21 }
0x285a   :  { %5603 = vmatprep.subr.bf16.mxu1 %v5932_v7 }
0x285d   :  { %5605 = vmatpush3.bf16.msra.mxu1 %v7102_v62 }
0x285e   :  { %5606 = vmatprep.subr.bf16.mxu1 %v5932_v7 }
0x291f   :  { %v4036_v24 = vpop.f32.mrb[60].mxu1 }
0x2920   :  { %v4041_v58 = vrot.slane %v4036_v24, 4  ;;  %v5079_v60 = vpop.f32.mrb[61].mxu1 }
0x2922   :  { %v4043_v61 = vadd.f32 %v4041_v58, %v3963_v22 }
0x2924   :  { %5876 = vtanh.f32 %v4043_v61  ;;  %v4581_v62 = vmul.f32 -1.442695, %v4043_v61 }
0x292b   :  { %v4142_v0 = vpop.f32.mrb[62].mxu1 }
0x292c   :  { %v4147_v6 = vrot.slane %v4142_v0, 6  ;;  %v5090_v8 = vpop.f32.mrb[63].mxu1 }
0x292e   :  { %v5877_v59 = vpop.eup %5876  ;;  %v4149_v50 = vadd.f32 %v4147_v6, %v3964_v9 }
0x292f   :  { %4056 = vrot.lane.b32.xlu0 %v5877_v59, %s5935_s0 }
0x2930   :  { %5878 = vtanh.f32 %v4149_v50  ;;  %v4583_v11 = vmul.f32 -1.442695, %v4149_v50 }
0x2931   :  { %5880 = vpow2.f32 %v4581_v62 }
0x2932   :  { %5882 = vpow2.f32 %v4583_v11 }
0x293a   :  { %v5879_v10 = vpop.eup %5878 }
0x293b   :  { %4162 = vrot.lane.b32.xlu1 %v5879_v10, %s5935_s0  ;;  %v5881_v14 = vpop.eup %5880 }
0x293c   :  { %v4047_v13 = vadd.f32 1.0, %v5881_v14  ;;  %v5883_v40 = vpop.eup %5882 }
0x293d   :  { %v4153_v15 = vadd.f32 1.0, %v5883_v40 }
0x293e   :  { %5884 = vrcp.f32 %v4047_v13 }
0x293f   :  { %5886 = vrcp.f32 %v4153_v15 }
0x2948   :  { %v5885_v17 = vpop.eup %5884 }
0x2949   :  { %v5887_v52 = vpop.eup %5886  ;;  %v4054_v28 = vmul.f32 %v5885_v17, %v4052_v26  ;;  %v4416_v26 = vld [vmem:[%s7688_s11 + $0x30] sm:$0xff] }
0x294a   :  { %v4160_v29 = vmul.f32 %v5887_v52, %v4158_v57 }
0x29a1   :  { %v4057_v18 = vpop.permute.xlu0 %4056 }
0x29a2   :  { %v4059_v20 = vmul.f32 %v5885_v17, %v4057_v18 }
0x29a4   :  { %4061 = vrot.lane.b32.xlu0 %v4059_v20, %s5936_s4 }
0x29ad   :  { %v4163_v23 = vpop.permute.xlu1 %4162 }
0x29ae   :  { %v4165_v49 = vmul.f32 %v5887_v52, %v4163_v23 }
0x29b0   :  { %4167 = vrot.lane.b32.xlu1 %v4165_v49, %s5936_s4 }
0x2a16   :  { %v4062_v39 = vpop.permute.xlu0 %4061 }
0x2a17   :  { %v4064_v48 = vadd.f32 %v4062_v39, %v4054_v28  ;;  %v4417_v28 = vld [vmem:[%s7688_s11 + $0x38] sm:$0xff] }
0x2a18   :  { %v5624_v39 = vpack.c.bf16 %v4417_v28, %v4416_v26 }
0x2a19   :  { %5888 = vtanh.f32 %v4064_v48  ;;  %v4276_v62 = vrot.slane %v4064_v48, 6 }
0x2a22   :  { %v4168_v31 = vpop.permute.xlu1 %4167 }
0x2a23   :  { %v5889_v36 = vpop.eup %5888  ;;  %v4170_v32 = vadd.f32 %v4168_v31, %v4160_v29 }
0x2a24   :  { %4067 = vrot.lane.b32.xlu0 %v5889_v36, %s5935_s0 }
0x2a25   :  { %5890 = vtanh.f32 %v4170_v32  ;;  %v4379_v40 = vrot.slane %v4170_v32, 2 }
0x2a2f   :  { %v5891_v34 = vpop.eup %5890 }
0x2a30   :  { %4173 = vrot.lane.b32.xlu1 %v5891_v34, %s5935_s0 }
0x2a96   :  { %v4068_v41 = vpop.permute.xlu0 %4067 }
0x2a97   :  { %v7573_v44 = vmul.f32 %v5885_v17, %v4068_v41 }
0x2a99   :  { %v4189_v35 = vrot.slane %v7573_v44, 4 }
0x2a9b   :  { %4190 = vrot.lane.b32.xlu0 %v4189_v35, %s5936_s4 }
0x2aa2   :  { %v4174_v37 = vpop.permute.xlu1 %4173 }
0x2aa3   :  { %v7577_v38 = vmul.f32 %v5887_v52, %v4174_v37 }
0x2aa5   :  { %v4295_v43 = vrot.slane %v7577_v38, 2 }
0x2aa7   :  { %4296 = vrot.lane.b32.xlu1 %v4295_v43, %s5936_s4 }
0x2b0d   :  { %v4191_v42 = vpop.permute.xlu0 %4190 }
0x2b0e   :  { %5100 = vmatmul.mubr.msk.f32.vlgmr.msra.gmra.mrb[64].mxu1 %vm361_vm2, %v4191_v42 }
0x2b0f   :  { %5608 = vmatpush3.bf16.msra.mxu1 %v7112_v1  ;;  %5110 = vmatprep.mubr.msk.f32.mxu1 %vm5933_vm0, %v5934_v21 }
0x2b10   :  { %5609 = vmatprep.subr.bf16.mxu1 %v5932_v7 }
0x2b13   :  { %5611 = vmatpush3.bf16.msra.mxu1 %v7122_v4 }
0x2b19   :  { %v4297_v27 = vpop.permute.xlu1 %4296 }
0x2b1a   :  { %5111 = vmatmul.mubr.msk.f32.vlgmr.msra.gmra.mrb[66].mxu1 %vm361_vm2, %v4297_v27 }
0x2be1   :  { %v4260_v19 = vpop.f32.mrb[64].mxu1 }
0x2be2   :  { %v4265_v51 = vrot.slane %v4260_v19, 2  ;;  %v5101_v54 = vpop.f32.mrb[65].mxu1 }
0x2be4   :  { %v4267_v46 = vadd.f32 %v4265_v51, %v4187_v5 }
0x2be6   :  { %5892 = vtanh.f32 %v4267_v46  ;;  %v4585_v21 = vmul.f32 -1.442695, %v4267_v46 }
0x2bed   :  { %v4366_v56 = vpop.f32.mrb[66].mxu1 }
0x2bee   :  { %v4370_v24 = vadd.f32 %v4366_v56, %v4188_v33  ;;  %v5112_v1 = vpop.f32.mrb[67].mxu1 }
0x2bf0   :  { %v5893_v58 = vpop.eup %5892  ;;  %5894 = vtanh.f32 %v4370_v24  ;;  %v4587_v4 = vmul.f32 -1.442695, %v4370_v24 }
0x2bf1   :  { %4280 = vrot.lane.b32.xlu1 %v5893_v58, %s5935_s0  ;;  %5896 = vpow2.f32 %v4585_v21 }
0x2bf2   :  { %5898 = vpow2.f32 %v4587_v4 }
0x2bfa   :  { %v5895_v7 = vpop.eup %5894 }
0x2bfb   :  { %4383 = vrot.lane.b32.xlu0 %v5895_v7, %s5935_s0  ;;  %v5897_v60 = vpop.eup %5896 }
0x2bfc   :  { %v4271_v22 = vadd.f32 1.0, %v5897_v60  ;;  %v5899_v61 = vpop.eup %5898 }
0x2bfd   :  { %v4374_v0 = vadd.f32 1.0, %v5899_v61 }
0x2bfe   :  { %5900 = vrcp.f32 %v4271_v22 }
0x2bff   :  { %5902 = vrcp.f32 %v4374_v0 }
0x2c08   :  { %v5901_v6 = vpop.eup %5900 }
0x2c09   :  { %v5903_v59 = vpop.eup %5902  ;;  %v4278_v11 = vmul.f32 %v5901_v6, %v4276_v62 }
0x2c0a   :  { %v4381_v15 = vmul.f32 %v5903_v59, %v4379_v40 }
0x2c63   :  { %v4281_v8 = vpop.permute.xlu1 %4280 }
0x2c64   :  { %v4283_v9 = vmul.f32 %v5901_v6, %v4281_v8 }
0x2c66   :  { %4285 = vrot.lane.b32.xlu1 %v4283_v9, %s5936_s4 }
0x2c6d   :  { %v4384_v50 = vpop.permute.xlu0 %4383 }
0x2c6e   :  { %v4386_v10 = vmul.f32 %v5903_v59, %v4384_v50 }
0x2c70   :  { %4388 = vrot.lane.b32.xlu0 %v4386_v10, %s5936_s4 }
0x2cd8   :  { %v4286_v14 = vpop.permute.xlu1 %4285 }
0x2cd9   :  { %v4288_v13 = vadd.f32 %v4286_v14, %v4278_v11 }
0x2cdb   :  { %5904 = vtanh.f32 %v4288_v13 }
0x2ce2   :  { %v4389_v17 = vpop.permute.xlu0 %4388 }
0x2ce3   :  { %v4391_v18 = vadd.f32 %v4389_v17, %v4381_v15 }
0x2ce5   :  { %v5905_v20 = vpop.eup %5904  ;;  %5906 = vtanh.f32 %v4391_v18 }
0x2ce6   :  { %4291 = vrot.lane.b32.xlu1 %v5905_v20, %s5935_s0 }
0x2cea   :  { %3292 = vrot.lane.b32.xlu1 %v7435_v45, %s5936_s4 }
0x2cee   :  { %2852 = vrot.lane.b32.xlu1 %v7366_v2, %s5935_s0  ;;  %v4410_v2 = vld [vmem:[%s7688_s11] sm:$0xff] }
0x2cef   :  { %v5907_v52 = vpop.eup %5906 }
0x2cf0   :  { %4394 = vrot.lane.b32.xlu0 %v5907_v52, %s5935_s0 }
0x2cf2   :  { %3297 = vrot.lane.b32.xlu1 %v7439_v30, %s5935_s0  ;;  %v4413_v30 = vld [vmem:[%s7688_s11 + $0x18] sm:$0xff] }
0x2cf4   :  { %3068 = vrot.lane.b32.xlu0 %v7399_v47, %s5936_s4  ;;  %v4411_v47 = vld [vmem:[%s7688_s11 + $0x8] sm:$0xff] }
0x2cf5   :  { %v5612_v45 = vpack.c.bf16 %v4411_v47, %v4410_v2 }
0x2cf6   :  { %3738 = vrot.lane.b32.xlu1 %v7508_v63, %s5935_s0 }
0x2cf7   :  { %5613 = vmatprep.subr.bf16.mxu0 %v5612_v45 }
0x2cf8   :  { %3513 = vrot.lane.b32.xlu0 %v7471_v12, %s5936_s4  ;;  %5615 = vmatpush3.bf16.msra.mxu0 %v5612_v45 }
0x2cfa   :  { %4183 = vrot.lane.b32.xlu1 %v7577_v38, %s5935_s0 }
0x2cfc   :  { %3073 = vrot.lane.b32.xlu0 %v7403_v25, %s5935_s0  ;;  %v4412_v25 = vld [vmem:[%s7688_s11 + $0x10] sm:$0xff] }
0x2cfd   :  { %v5616_v12 = vpack.c.bf16 %v4413_v30, %v4412_v25 }
0x2cfe   :  { %3954 = vrot.lane.b32.xlu1 %v7543_v53, %s5936_s4  ;;  %v4414_v53 = vld [vmem:[%s7688_s11 + $0x20] sm:$0xff] }
0x2cff   :  { %5617 = vmatprep.subr.bf16.mxu0 %v5616_v12 }
0x2d00   :  { %3518 = vrot.lane.b32.xlu0 %v7475_v16, %s5935_s0  ;;  %5619 = vmatpush3.bf16.msra.mxu0 %v5616_v12 }
0x2d04   :  { %3959 = vrot.lane.b32.xlu0 %v7547_v55, %s5935_s0  ;;  %v4415_v55 = vld [vmem:[%s7688_s11 + $0x28] sm:$0xff] }
0x2d05   :  { %v5620_v23 = vpack.c.bf16 %v4415_v55, %v4414_v53 }
0x2d07   :  { %5621 = vmatprep.subr.bf16.mxu0 %v5620_v23 }
0x2d08   :  { %5623 = vmatpush3.bf16.msra.mxu0 %v5620_v23 }
0x2d09   :  { %5625 = vmatprep.subr.bf16.mxu0 %v5624_v39 }
0x2d0c   :  { %5627 = vmatpush3.bf16.msra.mxu0 %v5624_v39 }
0x2d58   :  { %v4292_v16 = vpop.permute.xlu1 %4291 }
0x2d59   :  { %v4294_v63 = vmul.f32 %v5901_v6, %v4292_v16 }
0x2d5b   :  { %4399 = vrot.lane.b32.xlu1 %v4294_v63, %s5936_s4 }
0x2d5c   :  { %v3293_v49 = vpop.permute.xlu1 %3292 }
0x2d5d   :  { %3295 = vst.msk [vmem:[#allocation5] sm:$0x30] %vm1011_vm7, %v3293_v49 }
0x2d60   :  { %v2853_v48 = vpop.permute.xlu1 %2852 }
0x2d61   :  { %2855 = vst.msk [vmem:[#allocation5 + $0x8] sm:$0xc0] %vm568_vm5, %v2853_v48 }
0x2d62   :  { %v4395_v57 = vpop.permute.xlu0 %4394 }
0x2d63   :  { %v4397_v29 = vmul.f32 %v5903_v59, %v4395_v57 }
0x2d64   :  { %v3298_v31 = vpop.permute.xlu1 %3297 }
0x2d65   :  { %3300 = vst.msk [vmem:[#allocation5 + $0x8] sm:$0xc] %vm1017_vm6, %v3298_v31  ;;  %4404 = vrot.lane.b32.xlu0 %v4397_v29, %s5935_s0 }
0x2d66   :  { %v3069_v36 = vpop.permute.xlu0 %3068 }
0x2d67   :  { %3071 = vst.msk [vmem:[#allocation5] sm:$0xc] %vm785_vm3, %v3069_v36 }
0x2d68   :  { %v3739_v32 = vpop.permute.xlu1 %3738 }
0x2d69   :  { %4178 = vrot.lane.b32.xlu0 %v7573_v44, %s5936_s4  ;;  %s5937_s4 = smov [#allocation6]  }
0x2d6a   :  { %v3514_v34 = vpop.permute.xlu0 %3513  ;;  %s4513_s8 = sshll.u32 %s5937_s4, 4  ;;  %s4514_s8 = int_to_ptr.vmem [resolvable:$true] %s4513_s8 }
0x2d6b   :  { %3516 = vst.msk [vmem:[#allocation5] sm:$0xc0] %vm1234_vm4, %v3514_v34  ;;  %s5908_s27 = scalar_lea.vmem %s4514_s8, 256  ;;  %p5913_p1 = scmp.lt.s32.totalorder %s4514_s8, %s4514_s8 }
0x2d6c   :  { %3741 = vst.msk [vmem:[#allocation5] sm:$0xc0] %vm568_vm5, %v3739_v32  ;;  %v4184_v41 = vpop.permute.xlu1 %4183  ;;  %p5909_p0 = scmp.ne.s32.totalorder %s4514_s8, %s5908_s27  ;;  %p5914_p2 = scmp.lt.s32.totalorder %s5908_s27, %s5908_s27 }
0x2d6d   :  { %4186 = vst.msk [vmem:[#allocation5] sm:$0xc] %vm1017_vm6, %v4184_v41 }
0x2d6e   :  { %v3074_v35 = vpop.permute.xlu0 %3073  ;;  %p5915_p3 = por %p5914_p2, %p5913_p1 }
0x2d6f   :  { %3076 = vst.msk [vmem:[#allocation5 + $0x8] sm:$0x30] %vm791_vm8, %v3074_v35 }
0x2d70   :  { %v3955_v37 = vpop.permute.xlu1 %3954  ;;  %p5916_p4 = pnand %p5915_p3, %p5909_p0 }
0x2d71   :  { %3957 = vst.msk [vmem:[#allocation5 + $0x8] sm:$0xc] %vm785_vm3, %v3955_v37 }
0x2d72   :  { %v3519_v38 = vpop.permute.xlu0 %3518 }
0x2d73   :  { %3521 = vst.msk [vmem:[#allocation5 + $0x8] sm:$0x3] %vm1240_vm9, %v3519_v38 }
0x2d74   :  { %3736 = vst.msk [vmem:[#allocation5 + $0x8] sm:$0x3] %vm562_vm1, %v7512_v3  ;;  %v4588_v3 = vld [vmem:[%s7689_s12] ss:$0 sm:$0xff] }
0x2d76   :  { %v3960_v44 = vpop.permute.xlu0 %3959 }
0x2d77   :  { %3962 = vst.msk [vmem:[#allocation5] sm:$0x30] %vm791_vm8, %v3960_v44 }
0x2dcd   :  { %v4400_v43 = vpop.permute.xlu1 %4399 }
0x2dce   :  { %4402 = vst.msk [vmem:[#allocation5 + $0x8] sm:$0xc0] %vm1234_vm4, %v4400_v43 }
0x2dd7   :  { %v4405_v42 = vpop.permute.xlu0 %4404 }
0x2dd8   :  { %4407 = vst.msk [vmem:[#allocation5] sm:$0x3] %vm1240_vm9, %v4405_v42 }
0x2ddb   :  { %v4179_v27 = vpop.permute.xlu0 %4178 }
0x2ddc   :  { %4181 = vst.msk [vmem:[#allocation5 + $0x8] sm:$0x30] %vm1011_vm7, %v4179_v27 }
0x2ddf   :  { %v4408_v19 = vld [vmem:[#allocation5] sm:$0xff] }
0x2de0   :  { %5129 = vmatprep.mubr.msk.f32.mxu0 %vm2184_vm10, %v4408_v19 }
0x2de3   :  { %v4409_v51 = vld [vmem:[#allocation5 + $0x8] sm:$0xff] }
0x2de4   :  { %5130 = vmatmul.mubr.msk.f32.vlgmr.msra.gmra.mrb[12].mxu0 %vm2184_vm10, %v4409_v51 }
0x2eb7   :  { %v5131_v54 = vpop.f32.mrb[12].mxu0 }
0x2eb8   :  { %v4503_v5 = vadd.f32 %v5131_v54, %v4588_v3  ;;  %v4497_v46 = vpop.f32.mrb[13].mxu0 }
0x2eb9   :  { %v4498_v33 = vadd.f32 %v4588_v3, %v4497_v46 }
0x2eba   :  { %4507 = vst [vmem:[#allocation6 + $0x8] sm:$0xff] %v4503_v5 }
0x2ebb   :  { %4506 = vst [vmem:[#allocation6] sm:$0xff] %v4498_v33 }
0x2ebc   :  { %5919 = shalt.err (!%p5916_p4)
}
0x2ebd   :  { %s5920_s12 = scalar_lea.hbm %s7690_s13, 256 }
0x2ebe   :  { %p5921_p5 = scmp.ne.s32.totalorder %s7690_s13, %s5920_s12  ;;  %p5924_p6 = scmp.lt.u32.totalorder %s5920_s12, %s7690_s13 }
0x2ec0   :  { %p5926_p7 = pnand %p5924_p6, %p5921_p5 }
0x2ec2   :  { %5929 = shalt.err (!%p5926_p7)
}
0x2ec3   :  { %s5938_s7 = smov 128   ;;  %s5939_s14 = smov 8  }
0x2ec4   :  { %4519 = dma.vmem_to_hbm [thread:$0]  %s4514_s8, 256, %s7690_s13, [#allocation7], %s5938_s7, %s5938_s7, %s5939_s14  }
0x2ec5   :  { %5930 = dma.done.wait [#allocation7], 256  }
0x2ec6   :  { %5931 = vsyncadd [#allocation7], 4294967040 }
0x2ec7   :  { %4523 = vsyncpa [#allocation7], 1 }

</bundles_post_ra>
